<compile_context>
chip_gen: v7x
topology: tpu7x:2x2x1
jax: 0.10.0
libtpu: 0.0.40
codegen_flags: <defaults>
</compile_context>

<pallas_src>
import jax
import jax.numpy as jnp
from jax import lax
from jax.experimental import pallas as pl
from jax.experimental.pallas import tpu as pltpu


WIDTH = 64          # internal channel width of the decoder
C_OUT = 3           # output channels of the final layer


# ----------------------------- Pallas kernel -------------------------------------


def _decoder_kernel(x_ref, w3_ref, b3_ref, w1_ref, b1_ref, o_ref, pad_ref):
    """Fused 4-layer gated-conv decoder for one batch element.

    x_ref   : (1, H+2, W+2, C)  spatially halo-padded, channel-zero-extended input
    w3_ref  : (27, C, 2C)       per-tap fused 3x3 weights (conv || gate along Cout)
    b3_ref  : (3, 1, 2C)        per-layer fused 3x3 biases
    w1_ref  : (C, 4C)           fused 1x1 weights: [:, :2C]=conv, [:, 2C:]=gate
                                (each padded from c_out=3 to 2C=128 lanes)
    b1_ref  : (1, 4C)           fused/padded 1x1 bias
    o_ref   : (1, H*W, 2C)      lane-dense output (only lanes [0:c_out] meaningful)
    pad_ref : (H+2, W+2, C)     persistent VMEM scratch, padded activations (f32)
    """
    hp2, wp2, c = pad_ref.shape
    h, w = hp2 - 2, wp2 - 2
    hw = h * w
    c2 = 2 * c

    # Zero only the 1-pixel halo ring of the persistent scratch; the interior is
    # fully overwritten before every read, so nothing else needs clearing.
    zrow = jnp.zeros((1, wp2, c), jnp.float32)
    pad_ref[0:1, :, :] = zrow
    pad_ref[h + 1:h + 2, :, :] = zrow
    zcol = jnp.zeros((hp2, 1, c), jnp.float32)
    pad_ref[:, 0:1, :] = zcol
    pad_ref[:, w + 1:w + 2, :] = zcol

    def sigmoid(v):
        # exp on EUP + approximate reciprocal (EUP slot) keeps the divide off VALU.
        return pl.reciprocal(1.0 + jnp.exp(-v), approx=True)

    def gated_conv3x3(src, layer):
        """src: (H+2, W+2, C) padded activations; returns (H*W, C) gated output."""
        src16 = src.astype(jnp.bfloat16)           # one cast, reused by all 9 taps
        acc = None
        for k in range(9):
            kh, kw = divmod(k, 3)
            lhs = src16[kh:kh + h, kw:kw + w, :].reshape(hw, c)
            d = jnp.dot(lhs, w3_ref[layer * 9 + k, :, :],
                        preferred_element_type=jnp.float32)
            acc = d if acc is None else acc + d
        y = acc + b3_ref[layer]                    # (H*W, 2C) f32
        return y[:, :c] * sigmoid(y[:, c:])        # gated activation, (H*W, C)

    # Layer 0 reads the pre-padded input block directly (no in-kernel copy).
    a = gated_conv3x3(x_ref[0], 0)

    # Layers 1-2: write the activation into the padded scratch interior, then reuse
    # the same 9-tap matmul path.
    for layer in (1, 2):
        pad_ref[1:h + 1, 1:w + 1, :] = a.reshape(h, w, c)
        a = gated_conv3x3(pad_ref[...], layer)

    # Final gated 1x1 (C -> c_out), conv and gate fused into one dot with each half
    # padded to 2C lanes so the elementwise gating and the store are lane-dense.
    y1 = jnp.dot(a.astype(jnp.bfloat16), w1_ref[...],
                 preferred_element_type=jnp.float32) + b1_ref[...]   # (H*W, 4C)
    out = y1[:, :c2] * sigmoid(y1[:, c2:])          # (H*W, 2C); lanes >= c_out are 0
    o_ref[0, :, :] = out


def combine_carrier_decoder(x_padded, fused, *, width=WIDTH):
    """Fused decoder on pre-padded NHWC input (B, H+2, W+2, width) -> (B, H*W, 2*width)."""
    B, hp2, wp2, cp = x_padded.shape
    H, W = hp2 - 2, wp2 - 2
    w3, b3, w1, b1 = fused
    return pl.pallas_call(
        _decoder_kernel,
        out_shape=jax.ShapeDtypeStruct((B, H * W, 2 * width), jnp.float32),
        grid_spec=pltpu.PrefetchScalarGridSpec(
            num_scalar_prefetch=0,
            grid=(B,),
            in_specs=[
                pl.BlockSpec((1, hp2, wp2, cp), lambda b: (b, 0, 0, 0)),
                pl.BlockSpec(w3.shape, lambda b: (0, 0, 0)),
                pl.BlockSpec(b3.shape, lambda b: (0, 0, 0)),
                pl.BlockSpec(w1.shape, lambda b: (0, 0)),
                pl.BlockSpec(b1.shape, lambda b: (0, 0)),
            ],
            out_specs=pl.BlockSpec((1, H * W, 2 * width), lambda b: (b, 0, 0)),
            scratch_shapes=[
                pltpu.VMEM((hp2, wp2, width), jnp.float32),  # padded activations
            ],
        ),
        compiler_params=pltpu.CompilerParams(
            dimension_semantics=("parallel",),
            vmem_limit_bytes=32 * 1024 * 1024),
    )(x_padded, w3, b3, w1, b1)


# ------------------------- parameters & weight packing ---------------------------


def init_gated_block_params(key, c_in, c_out, ksize):
    """PyTorch-Conv2d-default-style init: U(-1/sqrt(fan_in), 1/sqrt(fan_in))."""
    kwc, kbc, kwg, kbg = jax.random.split(key, 4)
    fan_in = c_in * ksize * ksize
    bound = 1.0 / (fan_in ** 0.5)
    shape = (ksize * ksize, c_in, c_out)          # (taps, Cin, Cout)
    return dict(
        ksize=ksize,
        wc=jax.random.uniform(kwc, shape, jnp.float32, -bound, bound),
        bc=jax.random.uniform(kbc, (c_out,), jnp.float32, -bound, bound),
        wg=jax.random.uniform(kwg, shape, jnp.float32, -bound, bound),
        bg=jax.random.uniform(kbg, (c_out,), jnp.float32, -bound, bound),
    )


def init_decoder_params(key, conv_dim=3, n_layers=4, width=WIDTH, c_out=C_OUT):
    keys = jax.random.split(key, n_layers)
    params = [init_gated_block_params(keys[0], conv_dim, width, 3)]
    for i in range(1, n_layers - 1):
        params.append(init_gated_block_params(keys[i], width, width, 3))
    params.append(init_gated_block_params(keys[-1], width, c_out, 1))
    return params


def prepare_fused_params(params, width=WIDTH):
    """Pack parameters into the layout the fused kernel consumes.

    3x3 layers: (9, Cin, 64) weights are channel-zero-extended to (9, 64, 64), the
    conv and gate weights are concatenated along Cout -> (9, 64, 128), and the three
    layers are stacked tap-major -> (27, 64, 128) bf16.  Biases -> (3, 1, 128) f32.
    Final 1x1: conv/gate weights each N-padded from 3 to 128 columns and fused
    -> (64, 256) bf16; bias -> (1, 256) f32.
    """
    w_list, b_list = [], []
    for p in params[:3]:
        wc, wg = p["wc"], p["wg"]                          # (9, Cin, 64)
        cin = wc.shape[1]
        if cin < width:
            padding = ((0, 0), (0, width - cin), (0, 0))
            wc = jnp.pad(wc, padding)
            wg = jnp.pad(wg, padding)
        w_list.append(jnp.concatenate([wc, wg], axis=2))   # (9, 64, 128)
        b_list.append(jnp.concatenate([p["bc"], p["bg"]]).reshape(1, 2 * width))
    w3 = jnp.concatenate(w_list, axis=0).astype(jnp.bfloat16)   # (27, 64, 128)
    b3 = jnp.stack(b_list)                                      # (3, 1, 128) f32

    p_last = params[3]                                     # 1x1, 64 -> 3
    c_out = p_last["wc"].shape[2]
    lane = 2 * width                                       # 128-lane half-width
    wc1 = jnp.pad(p_last["wc"].reshape(width, c_out), ((0, 0), (0, lane - c_out)))
    wg1 = jnp.pad(p_last["wg"].reshape(width, c_out), ((0, 0), (0, lane - c_out)))
    w1 = jnp.concatenate([wc1, wg1], axis=1).astype(jnp.bfloat16)    # (64, 256)
    bc1 = jnp.pad(p_last["bc"], (0, lane - c_out))
    bg1 = jnp.pad(p_last["bg"], (0, lane - c_out))
    b1 = jnp.concatenate([bc1, bg1]).reshape(1, 2 * lane)            # (1, 256) f32
    return (w3, b3, w1, b1)


@jax.jit
def decoder_forward(x_nchw, w3, b3, w1, b1):
    """NCHW in / NCHW out, matching the PyTorch module convention."""
    B, cin, H, W = x_nchw.shape
    x = jnp.transpose(x_nchw, (0, 2, 3, 1))                # NCHW -> NHWC
    # Pre-pad spatial halo (for padding=1) and zero-extend channels to the internal
    # width so every in-kernel load/store is full-width (no 3-lane masked ops).
    x = jnp.pad(x, ((0, 0), (1, 1), (1, 1), (0, WIDTH - cin)))
    y = combine_carrier_decoder(x, (w3, b3, w1, b1))       # (B, H*W, 128)
    y = y[:, :, :C_OUT].reshape(B, H, W, C_OUT)
    return jnp.transpose(y, (0, 3, 1, 2))                  # NHWC -> NCHW


# ------------------------------- pure-JAX reference -------------------------------


def _ref_gated_block(x_nhwc, p):
    ks = p["ksize"]
    pad = (ks - 1) // 2

    def conv(wt, b):
        whwio = wt.reshape(ks, ks, wt.shape[1], wt.shape[2])
        y = lax.conv_general_dilated(
            x_nhwc, whwio, window_strides=(1, 1),
            padding=[(pad, pad), (pad, pad)],
            dimension_numbers=("NHWC", "HWIO", "NHWC"))
        return y + b

    return conv(p["wc"], p["bc"]) * jax.nn.sigmoid(conv(p["wg"], p["bg"]))


def _ref_decoder(x_nchw, params):
    x = jnp.transpose(x_nchw, (0, 2, 3, 1))
    for p in params:
        x = _ref_gated_block(x, p)
    return jnp.transpose(x, (0, 3, 1, 2))


# -------------------------------------- main --------------------------------------


if __name__ == "__main__":
    key = jax.random.PRNGKey(0)
    k_x, k_p = jax.random.split(key)

    # CombineCarrierDecoder(conv_dim=3) -> 3 input channels, 3 output channels (NCHW).
    B, C, H, W = 2, 3, 16, 16
    x = jax.random.normal(k_x, (B, C, H, W), jnp.float32)

    params = init_decoder_params(k_p, conv_dim=C, n_layers=4, width=WIDTH, c_out=C_OUT)
    fused = prepare_fused_params(params)

    out = jax.block_until_ready(decoder_forward(x, *fused))
    ref = jax.block_until_ready(_ref_decoder(x, params))

    assert out.shape == (B, C_OUT, H, W), out.shape
    # bf16 MXU operands vs the f32 reference -> loosened parity tolerance.
    max_err = float(jnp.max(jnp.abs(out - ref)))
    assert jnp.allclose(out, ref, rtol=5e-2, atol=2e-2), max_err

    print("KERNEL_OK")
</pallas_src>

<mosaic_0001>
module attributes {stable_mosaic.version = 11 : i64} {
  func.func @_decoder_kernel(%arg0: i32, %arg1: memref<1x18x18x64xf32, #tpu.memory_space<vmem>>, %arg2: memref<27x64x128xbf16, #tpu.memory_space<vmem>>, %arg3: memref<3x1x128xf32, #tpu.memory_space<vmem>>, %arg4: memref<64x256xbf16, #tpu.memory_space<vmem>>, %arg5: memref<1x256xf32, #tpu.memory_space<vmem>>, %arg6: memref<1x256x128xf32, #tpu.memory_space<vmem>>, %arg7: memref<18x18x64xf32, #tpu.memory_space<vmem>>) attributes {dimension_semantics = [#tpu.dimension_semantics<parallel>], iteration_bounds = array<i64: 2>, scalar_prefetch = 0 : i64, scratch_operands = 1 : i64, tpu.core_type = #tpu.core_type<tc>, window_params = [{transform_indices = @transform_0, window_bounds = array<i64: 1, 18, 18, 64>}, {pipeline_mode = #tpu.pipeline_mode<synchronous>, transform_indices = @transform_1, window_bounds = array<i64: 27, 64, 128>}, {pipeline_mode = #tpu.pipeline_mode<synchronous>, transform_indices = @transform_2, window_bounds = array<i64: 3, 1, 128>}, {pipeline_mode = #tpu.pipeline_mode<synchronous>, transform_indices = @transform_3, window_bounds = array<i64: 64, 256>}, {pipeline_mode = #tpu.pipeline_mode<synchronous>, transform_indices = @transform_4, window_bounds = array<i64: 1, 256>}, {transform_indices = @transform_5, window_bounds = array<i64: 1, 256, 128>}]} {
    %cst = arith.constant 0.000000e+00 : f32
    %0 = vector.broadcast %cst : f32 to vector<1x18x64xf32>
    %c0 = arith.constant 0 : index
    %c0_0 = arith.constant 0 : index
    %c0_1 = arith.constant 0 : index
    %1 = vector.load %arg7[%c0, %c0_0, %c0_1] : memref<18x18x64xf32, #tpu.memory_space<vmem>>, vector<1x18x64xf32>
    tpu.vector_store %arg7[%c0, %c0_0, %c0_1], %0 {strides = array<i32>} : memref<18x18x64xf32, #tpu.memory_space<vmem>>, vector<1x18x64xf32>,
    %c17 = arith.constant 17 : index
    %c0_2 = arith.constant 0 : index
    %c0_3 = arith.constant 0 : index
    %2 = vector.load %arg7[%c17, %c0_2, %c0_3] : memref<18x18x64xf32, #tpu.memory_space<vmem>>, vector<1x18x64xf32>
    tpu.vector_store %arg7[%c17, %c0_2, %c0_3], %0 {strides = array<i32>} : memref<18x18x64xf32, #tpu.memory_space<vmem>>, vector<1x18x64xf32>,
    %cst_4 = arith.constant 0.000000e+00 : f32
    %3 = vector.broadcast %cst_4 : f32 to vector<18x1x64xf32>
    %c0_5 = arith.constant 0 : index
    %c0_6 = arith.constant 0 : index
    %c0_7 = arith.constant 0 : index
    %4 = vector.load %arg7[%c0_5, %c0_6, %c0_7] : memref<18x18x64xf32, #tpu.memory_space<vmem>>, vector<18x1x64xf32>
    tpu.vector_store %arg7[%c0_5, %c0_6, %c0_7], %3 {strides = array<i32>} : memref<18x18x64xf32, #tpu.memory_space<vmem>>, vector<18x1x64xf32>,
    %c0_8 = arith.constant 0 : index
    %c17_9 = arith.constant 17 : index
    %c0_10 = arith.constant 0 : index
    %5 = vector.load %arg7[%c0_8, %c17_9, %c0_10] : memref<18x18x64xf32, #tpu.memory_space<vmem>>, vector<18x1x64xf32>
    tpu.vector_store %arg7[%c0_8, %c17_9, %c0_10], %3 {strides = array<i32>} : memref<18x18x64xf32, #tpu.memory_space<vmem>>, vector<18x1x64xf32>,
    %c0_11 = arith.constant 0 : index
    %c0_12 = arith.constant 0 : index
    %c0_13 = arith.constant 0 : index
    %c0_14 = arith.constant 0 : index
    %6 = vector.load %arg1[%c0_11, %c0_12, %c0_13, %c0_14] : memref<1x18x18x64xf32, #tpu.memory_space<vmem>>, vector<1x18x18x64xf32>
    %7 = vector.shape_cast %6 : vector<1x18x18x64xf32> to vector<18x18x64xf32>
    %8 = arith.truncf %7 : vector<18x18x64xf32> to vector<18x18x64xbf16>
    %9 = vector.extract_strided_slice %8 {offsets = [0, 0, 0], sizes = [16, 16, 64], strides = [1, 1, 1]} : vector<18x18x64xbf16> to vector<16x16x64xbf16>
    %10 = vector.shape_cast %9 : vector<16x16x64xbf16> to vector<256x64xbf16>
    %c0_15 = arith.constant 0 : index
    %c0_16 = arith.constant 0 : index
    %c0_17 = arith.constant 0 : index
    %11 = vector.load %arg2[%c0_15, %c0_16, %c0_17] : memref<27x64x128xbf16, #tpu.memory_space<vmem>>, vector<1x64x128xbf16>
    %12 = vector.shape_cast %11 : vector<1x64x128xbf16> to vector<64x128xbf16>
    %cst_18 = arith.constant dense<0.000000e+00> : vector<256x128xf32>
    %13 = tpu.matmul %10, %12, %cst_18 {dimension_numbers = #tpu.dot_dimension_numbers<[1], [0], [0], [1], [0, 0, 1, 1], [], []>} : vector<256x64xbf16>, vector<64x128xbf16>, vector<256x128xf32> -> vector<256x128xf32>
    %14 = vector.extract_strided_slice %8 {offsets = [0, 1, 0], sizes = [16, 16, 64], strides = [1, 1, 1]} : vector<18x18x64xbf16> to vector<16x16x64xbf16>
    %15 = vector.shape_cast %14 : vector<16x16x64xbf16> to vector<256x64xbf16>
    %c1 = arith.constant 1 : index
    %c0_19 = arith.constant 0 : index
    %c0_20 = arith.constant 0 : index
    %16 = vector.load %arg2[%c1, %c0_19, %c0_20] : memref<27x64x128xbf16, #tpu.memory_space<vmem>>, vector<1x64x128xbf16>
    %17 = vector.shape_cast %16 : vector<1x64x128xbf16> to vector<64x128xbf16>
    %cst_21 = arith.constant dense<0.000000e+00> : vector<256x128xf32>
    %18 = tpu.matmul %15, %17, %cst_21 {dimension_numbers = #tpu.dot_dimension_numbers<[1], [0], [0], [1], [0, 0, 1, 1], [], []>} : vector<256x64xbf16>, vector<64x128xbf16>, vector<256x128xf32> -> vector<256x128xf32>
    %19 = arith.addf %13, %18 : vector<256x128xf32>
    %20 = vector.extract_strided_slice %8 {offsets = [0, 2, 0], sizes = [16, 16, 64], strides = [1, 1, 1]} : vector<18x18x64xbf16> to vector<16x16x64xbf16>
    %21 = vector.shape_cast %20 : vector<16x16x64xbf16> to vector<256x64xbf16>
    %c2 = arith.constant 2 : index
    %c0_22 = arith.constant 0 : index
    %c0_23 = arith.constant 0 : index
    %22 = vector.load %arg2[%c2, %c0_22, %c0_23] : memref<27x64x128xbf16, #tpu.memory_space<vmem>>, vector<1x64x128xbf16>
    %23 = vector.shape_cast %22 : vector<1x64x128xbf16> to vector<64x128xbf16>
    %cst_24 = arith.constant dense<0.000000e+00> : vector<256x128xf32>
    %24 = tpu.matmul %21, %23, %cst_24 {dimension_numbers = #tpu.dot_dimension_numbers<[1], [0], [0], [1], [0, 0, 1, 1], [], []>} : vector<256x64xbf16>, vector<64x128xbf16>, vector<256x128xf32> -> vector<256x128xf32>
    %25 = arith.addf %19, %24 : vector<256x128xf32>
    %26 = vector.extract_strided_slice %8 {offsets = [1, 0, 0], sizes = [16, 16, 64], strides = [1, 1, 1]} : vector<18x18x64xbf16> to vector<16x16x64xbf16>
    %27 = vector.shape_cast %26 : vector<16x16x64xbf16> to vector<256x64xbf16>
    %c3 = arith.constant 3 : index
    %c0_25 = arith.constant 0 : index
    %c0_26 = arith.constant 0 : index
    %28 = vector.load %arg2[%c3, %c0_25, %c0_26] : memref<27x64x128xbf16, #tpu.memory_space<vmem>>, vector<1x64x128xbf16>
    %29 = vector.shape_cast %28 : vector<1x64x128xbf16> to vector<64x128xbf16>
    %cst_27 = arith.constant dense<0.000000e+00> : vector<256x128xf32>
    %30 = tpu.matmul %27, %29, %cst_27 {dimension_numbers = #tpu.dot_dimension_numbers<[1], [0], [0], [1], [0, 0, 1, 1], [], []>} : vector<256x64xbf16>, vector<64x128xbf16>, vector<256x128xf32> -> vector<256x128xf32>
    %31 = arith.addf %25, %30 : vector<256x128xf32>
    %32 = vector.extract_strided_slice %8 {offsets = [1, 1, 0], sizes = [16, 16, 64], strides = [1, 1, 1]} : vector<18x18x64xbf16> to vector<16x16x64xbf16>
    %33 = vector.shape_cast %32 : vector<16x16x64xbf16> to vector<256x64xbf16>
    %c4 = arith.constant 4 : index
    %c0_28 = arith.constant 0 : index
    %c0_29 = arith.constant 0 : index
    %34 = vector.load %arg2[%c4, %c0_28, %c0_29] : memref<27x64x128xbf16, #tpu.memory_space<vmem>>, vector<1x64x128xbf16>
    %35 = vector.shape_cast %34 : vector<1x64x128xbf16> to vector<64x128xbf16>
    %cst_30 = arith.constant dense<0.000000e+00> : vector<256x128xf32>
    %36 = tpu.matmul %33, %35, %cst_30 {dimension_numbers = #tpu.dot_dimension_numbers<[1], [0], [0], [1], [0, 0, 1, 1], [], []>} : vector<256x64xbf16>, vector<64x128xbf16>, vector<256x128xf32> -> vector<256x128xf32>
    %37 = arith.addf %31, %36 : vector<256x128xf32>
    %38 = vector.extract_strided_slice %8 {offsets = [1, 2, 0], sizes = [16, 16, 64], strides = [1, 1, 1]} : vector<18x18x64xbf16> to vector<16x16x64xbf16>
    %39 = vector.shape_cast %38 : vector<16x16x64xbf16> to vector<256x64xbf16>
    %c5 = arith.constant 5 : index
    %c0_31 = arith.constant 0 : index
    %c0_32 = arith.constant 0 : index
    %40 = vector.load %arg2[%c5, %c0_31, %c0_32] : memref<27x64x128xbf16, #tpu.memory_space<vmem>>, vector<1x64x128xbf16>
    %41 = vector.shape_cast %40 : vector<1x64x128xbf16> to vector<64x128xbf16>
    %cst_33 = arith.constant dense<0.000000e+00> : vector<256x128xf32>
    %42 = tpu.matmul %39, %41, %cst_33 {dimension_numbers = #tpu.dot_dimension_numbers<[1], [0], [0], [1], [0, 0, 1, 1], [], []>} : vector<256x64xbf16>, vector<64x128xbf16>, vector<256x128xf32> -> vector<256x128xf32>
    %43 = arith.addf %37, %42 : vector<256x128xf32>
    %44 = vector.extract_strided_slice %8 {offsets = [2, 0, 0], sizes = [16, 16, 64], strides = [1, 1, 1]} : vector<18x18x64xbf16> to vector<16x16x64xbf16>
    %45 = vector.shape_cast %44 : vector<16x16x64xbf16> to vector<256x64xbf16>
    %c6 = arith.constant 6 : index
    %c0_34 = arith.constant 0 : index
    %c0_35 = arith.constant 0 : index
    %46 = vector.load %arg2[%c6, %c0_34, %c0_35] : memref<27x64x128xbf16, #tpu.memory_space<vmem>>, vector<1x64x128xbf16>
    %47 = vector.shape_cast %46 : vector<1x64x128xbf16> to vector<64x128xbf16>
    %cst_36 = arith.constant dense<0.000000e+00> : vector<256x128xf32>
    %48 = tpu.matmul %45, %47, %cst_36 {dimension_numbers = #tpu.dot_dimension_numbers<[1], [0], [0], [1], [0, 0, 1, 1], [], []>} : vector<256x64xbf16>, vector<64x128xbf16>, vector<256x128xf32> -> vector<256x128xf32>
    %49 = arith.addf %43, %48 : vector<256x128xf32>
    %50 = vector.extract_strided_slice %8 {offsets = [2, 1, 0], sizes = [16, 16, 64], strides = [1, 1, 1]} : vector<18x18x64xbf16> to vector<16x16x64xbf16>
    %51 = vector.shape_cast %50 : vector<16x16x64xbf16> to vector<256x64xbf16>
    %c7 = arith.constant 7 : index
    %c0_37 = arith.constant 0 : index
    %c0_38 = arith.constant 0 : index
    %52 = vector.load %arg2[%c7, %c0_37, %c0_38] : memref<27x64x128xbf16, #tpu.memory_space<vmem>>, vector<1x64x128xbf16>
    %53 = vector.shape_cast %52 : vector<1x64x128xbf16> to vector<64x128xbf16>
    %cst_39 = arith.constant dense<0.000000e+00> : vector<256x128xf32>
    %54 = tpu.matmul %51, %53, %cst_39 {dimension_numbers = #tpu.dot_dimension_numbers<[1], [0], [0], [1], [0, 0, 1, 1], [], []>} : vector<256x64xbf16>, vector<64x128xbf16>, vector<256x128xf32> -> vector<256x128xf32>
    %55 = arith.addf %49, %54 : vector<256x128xf32>
    %56 = vector.extract_strided_slice %8 {offsets = [2, 2, 0], sizes = [16, 16, 64], strides = [1, 1, 1]} : vector<18x18x64xbf16> to vector<16x16x64xbf16>
    %57 = vector.shape_cast %56 : vector<16x16x64xbf16> to vector<256x64xbf16>
    %c8 = arith.constant 8 : index
    %c0_40 = arith.constant 0 : index
    %c0_41 = arith.constant 0 : index
    %58 = vector.load %arg2[%c8, %c0_40, %c0_41] : memref<27x64x128xbf16, #tpu.memory_space<vmem>>, vector<1x64x128xbf16>
    %59 = vector.shape_cast %58 : vector<1x64x128xbf16> to vector<64x128xbf16>
    %cst_42 = arith.constant dense<0.000000e+00> : vector<256x128xf32>
    %60 = tpu.matmul %57, %59, %cst_42 {dimension_numbers = #tpu.dot_dimension_numbers<[1], [0], [0], [1], [0, 0, 1, 1], [], []>} : vector<256x64xbf16>, vector<64x128xbf16>, vector<256x128xf32> -> vector<256x128xf32>
    %61 = arith.addf %55, %60 : vector<256x128xf32>
    %c0_43 = arith.constant 0 : index
    %c0_44 = arith.constant 0 : index
    %c0_45 = arith.constant 0 : index
    %62 = vector.load %arg3[%c0_43, %c0_44, %c0_45] : memref<3x1x128xf32, #tpu.memory_space<vmem>>, vector<1x1x128xf32>
    %63 = vector.shape_cast %62 : vector<1x1x128xf32> to vector<1x128xf32>
    %64 = vector.broadcast %63 : vector<1x128xf32> to vector<256x128xf32>
    %65 = arith.addf %61, %64 : vector<256x128xf32>
    %66 = vector.extract_strided_slice %65 {offsets = [0, 0], sizes = [256, 64], strides = [1, 1]} : vector<256x128xf32> to vector<256x64xf32>
    %67 = vector.extract_strided_slice %65 {offsets = [0, 64], sizes = [256, 64], strides = [1, 1]} : vector<256x128xf32> to vector<256x64xf32>
    %cst_46 = arith.constant 0.000000e+00 : f32
    %68 = vector.broadcast %cst_46 : f32 to vector<256x64xf32>
    %69 = arith.subf %68, %67 : vector<256x64xf32>
    %70 = math.exp %69 : vector<256x64xf32>
    %cst_47 = arith.constant 1.000000e+00 : f32
    %71 = vector.broadcast %cst_47 : f32 to vector<256x64xf32>
    %72 = arith.addf %71, %70 : vector<256x64xf32>
    %73 = tpu.reciprocal %72 {approx = true} : vector<256x64xf32> -> vector<256x64xf32>
    %74 = arith.mulf %66, %73 : vector<256x64xf32>
    %75 = vector.shape_cast %74 : vector<256x64xf32> to vector<16x16x64xf32>
    %c1_48 = arith.constant 1 : index
    %c1_49 = arith.constant 1 : index
    %c0_50 = arith.constant 0 : index
    %76 = vector.load %arg7[%c1_48, %c1_49, %c0_50] : memref<18x18x64xf32, #tpu.memory_space<vmem>>, vector<16x16x64xf32>
    tpu.vector_store %arg7[%c1_48, %c1_49, %c0_50], %75 {strides = array<i32>} : memref<18x18x64xf32, #tpu.memory_space<vmem>>, vector<16x16x64xf32>,
    %c0_51 = arith.constant 0 : index
    %c0_52 = arith.constant 0 : index
    %c0_53 = arith.constant 0 : index
    %77 = vector.load %arg7[%c0_51, %c0_52, %c0_53] : memref<18x18x64xf32, #tpu.memory_space<vmem>>, vector<18x18x64xf32>
    %78 = arith.truncf %77 : vector<18x18x64xf32> to vector<18x18x64xbf16>
    %79 = vector.extract_strided_slice %78 {offsets = [0, 0, 0], sizes = [16, 16, 64], strides = [1, 1, 1]} : vector<18x18x64xbf16> to vector<16x16x64xbf16>
    %80 = vector.shape_cast %79 : vector<16x16x64xbf16> to vector<256x64xbf16>
    %c9 = arith.constant 9 : index
    %c0_54 = arith.constant 0 : index
    %c0_55 = arith.constant 0 : index
    %81 = vector.load %arg2[%c9, %c0_54, %c0_55] : memref<27x64x128xbf16, #tpu.memory_space<vmem>>, vector<1x64x128xbf16>
    %82 = vector.shape_cast %81 : vector<1x64x128xbf16> to vector<64x128xbf16>
    %cst_56 = arith.constant dense<0.000000e+00> : vector<256x128xf32>
    %83 = tpu.matmul %80, %82, %cst_56 {dimension_numbers = #tpu.dot_dimension_numbers<[1], [0], [0], [1], [0, 0, 1, 1], [], []>} : vector<256x64xbf16>, vector<64x128xbf16>, vector<256x128xf32> -> vector<256x128xf32>
    %84 = vector.extract_strided_slice %78 {offsets = [0, 1, 0], sizes = [16, 16, 64], strides = [1, 1, 1]} : vector<18x18x64xbf16> to vector<16x16x64xbf16>
    %85 = vector.shape_cast %84 : vector<16x16x64xbf16> to vector<256x64xbf16>
    %c10 = arith.constant 10 : index
    %c0_57 = arith.constant 0 : index
    %c0_58 = arith.constant 0 : index
    %86 = vector.load %arg2[%c10, %c0_57, %c0_58] : memref<27x64x128xbf16, #tpu.memory_space<vmem>>, vector<1x64x128xbf16>
    %87 = vector.shape_cast %86 : vector<1x64x128xbf16> to vector<64x128xbf16>
    %cst_59 = arith.constant dense<0.000000e+00> : vector<256x128xf32>
    %88 = tpu.matmul %85, %87, %cst_59 {dimension_numbers = #tpu.dot_dimension_numbers<[1], [0], [0], [1], [0, 0, 1, 1], [], []>} : vector<256x64xbf16>, vector<64x128xbf16>, vector<256x128xf32> -> vector<256x128xf32>
    %89 = arith.addf %83, %88 : vector<256x128xf32>
    %90 = vector.extract_strided_slice %78 {offsets = [0, 2, 0], sizes = [16, 16, 64], strides = [1, 1, 1]} : vector<18x18x64xbf16> to vector<16x16x64xbf16>
    %91 = vector.shape_cast %90 : vector<16x16x64xbf16> to vector<256x64xbf16>
    %c11 = arith.constant 11 : index
    %c0_60 = arith.constant 0 : index
    %c0_61 = arith.constant 0 : index
    %92 = vector.load %arg2[%c11, %c0_60, %c0_61] : memref<27x64x128xbf16, #tpu.memory_space<vmem>>, vector<1x64x128xbf16>
    %93 = vector.shape_cast %92 : vector<1x64x128xbf16> to vector<64x128xbf16>
    %cst_62 = arith.constant dense<0.000000e+00> : vector<256x128xf32>
    %94 = tpu.matmul %91, %93, %cst_62 {dimension_numbers = #tpu.dot_dimension_numbers<[1], [0], [0], [1], [0, 0, 1, 1], [], []>} : vector<256x64xbf16>, vector<64x128xbf16>, vector<256x128xf32> -> vector<256x128xf32>
    %95 = arith.addf %89, %94 : vector<256x128xf32>
    %96 = vector.extract_strided_slice %78 {offsets = [1, 0, 0], sizes = [16, 16, 64], strides = [1, 1, 1]} : vector<18x18x64xbf16> to vector<16x16x64xbf16>
    %97 = vector.shape_cast %96 : vector<16x16x64xbf16> to vector<256x64xbf16>
    %c12 = arith.constant 12 : index
    %c0_63 = arith.constant 0 : index
    %c0_64 = arith.constant 0 : index
    %98 = vector.load %arg2[%c12, %c0_63, %c0_64] : memref<27x64x128xbf16, #tpu.memory_space<vmem>>, vector<1x64x128xbf16>
    %99 = vector.shape_cast %98 : vector<1x64x128xbf16> to vector<64x128xbf16>
    %cst_65 = arith.constant dense<0.000000e+00> : vector<256x128xf32>
    %100 = tpu.matmul %97, %99, %cst_65 {dimension_numbers = #tpu.dot_dimension_numbers<[1], [0], [0], [1], [0, 0, 1, 1], [], []>} : vector<256x64xbf16>, vector<64x128xbf16>, vector<256x128xf32> -> vector<256x128xf32>
    %101 = arith.addf %95, %100 : vector<256x128xf32>
    %102 = vector.extract_strided_slice %78 {offsets = [1, 1, 0], sizes = [16, 16, 64], strides = [1, 1, 1]} : vector<18x18x64xbf16> to vector<16x16x64xbf16>
    %103 = vector.shape_cast %102 : vector<16x16x64xbf16> to vector<256x64xbf16>
    %c13 = arith.constant 13 : index
    %c0_66 = arith.constant 0 : index
    %c0_67 = arith.constant 0 : index
    %104 = vector.load %arg2[%c13, %c0_66, %c0_67] : memref<27x64x128xbf16, #tpu.memory_space<vmem>>, vector<1x64x128xbf16>
    %105 = vector.shape_cast %104 : vector<1x64x128xbf16> to vector<64x128xbf16>
    %cst_68 = arith.constant dense<0.000000e+00> : vector<256x128xf32>
    %106 = tpu.matmul %103, %105, %cst_68 {dimension_numbers = #tpu.dot_dimension_numbers<[1], [0], [0], [1], [0, 0, 1, 1], [], []>} : vector<256x64xbf16>, vector<64x128xbf16>, vector<256x128xf32> -> vector<256x128xf32>
    %107 = arith.addf %101, %106 : vector<256x128xf32>
    %108 = vector.extract_strided_slice %78 {offsets = [1, 2, 0], sizes = [16, 16, 64], strides = [1, 1, 1]} : vector<18x18x64xbf16> to vector<16x16x64xbf16>
    %109 = vector.shape_cast %108 : vector<16x16x64xbf16> to vector<256x64xbf16>
    %c14 = arith.constant 14 : index
    %c0_69 = arith.constant 0 : index
    %c0_70 = arith.constant 0 : index
    %110 = vector.load %arg2[%c14, %c0_69, %c0_70] : memref<27x64x128xbf16, #tpu.memory_space<vmem>>, vector<1x64x128xbf16>
    %111 = vector.shape_cast %110 : vector<1x64x128xbf16> to vector<64x128xbf16>
    %cst_71 = arith.constant dense<0.000000e+00> : vector<256x128xf32>
    %112 = tpu.matmul %109, %111, %cst_71 {dimension_numbers = #tpu.dot_dimension_numbers<[1], [0], [0], [1], [0, 0, 1, 1], [], []>} : vector<256x64xbf16>, vector<64x128xbf16>, vector<256x128xf32> -> vector<256x128xf32>
    %113 = arith.addf %107, %112 : vector<256x128xf32>
    %114 = vector.extract_strided_slice %78 {offsets = [2, 0, 0], sizes = [16, 16, 64], strides = [1, 1, 1]} : vector<18x18x64xbf16> to vector<16x16x64xbf16>
    %115 = vector.shape_cast %114 : vector<16x16x64xbf16> to vector<256x64xbf16>
    %c15 = arith.constant 15 : index
    %c0_72 = arith.constant 0 : index
    %c0_73 = arith.constant 0 : index
    %116 = vector.load %arg2[%c15, %c0_72, %c0_73] : memref<27x64x128xbf16, #tpu.memory_space<vmem>>, vector<1x64x128xbf16>
    %117 = vector.shape_cast %116 : vector<1x64x128xbf16> to vector<64x128xbf16>
    %cst_74 = arith.constant dense<0.000000e+00> : vector<256x128xf32>
    %118 = tpu.matmul %115, %117, %cst_74 {dimension_numbers = #tpu.dot_dimension_numbers<[1], [0], [0], [1], [0, 0, 1, 1], [], []>} : vector<256x64xbf16>, vector<64x128xbf16>, vector<256x128xf32> -> vector<256x128xf32>
    %119 = arith.addf %113, %118 : vector<256x128xf32>
    %120 = vector.extract_strided_slice %78 {offsets = [2, 1, 0], sizes = [16, 16, 64], strides = [1, 1, 1]} : vector<18x18x64xbf16> to vector<16x16x64xbf16>
    %121 = vector.shape_cast %120 : vector<16x16x64xbf16> to vector<256x64xbf16>
    %c16 = arith.constant 16 : index
    %c0_75 = arith.constant 0 : index
    %c0_76 = arith.constant 0 : index
    %122 = vector.load %arg2[%c16, %c0_75, %c0_76] : memref<27x64x128xbf16, #tpu.memory_space<vmem>>, vector<1x64x128xbf16>
    %123 = vector.shape_cast %122 : vector<1x64x128xbf16> to vector<64x128xbf16>
    %cst_77 = arith.constant dense<0.000000e+00> : vector<256x128xf32>
    %124 = tpu.matmul %121, %123, %cst_77 {dimension_numbers = #tpu.dot_dimension_numbers<[1], [0], [0], [1], [0, 0, 1, 1], [], []>} : vector<256x64xbf16>, vector<64x128xbf16>, vector<256x128xf32> -> vector<256x128xf32>
    %125 = arith.addf %119, %124 : vector<256x128xf32>
    %126 = vector.extract_strided_slice %78 {offsets = [2, 2, 0], sizes = [16, 16, 64], strides = [1, 1, 1]} : vector<18x18x64xbf16> to vector<16x16x64xbf16>
    %127 = vector.shape_cast %126 : vector<16x16x64xbf16> to vector<256x64xbf16>
    %c17_78 = arith.constant 17 : index
    %c0_79 = arith.constant 0 : index
    %c0_80 = arith.constant 0 : index
    %128 = vector.load %arg2[%c17_78, %c0_79, %c0_80] : memref<27x64x128xbf16, #tpu.memory_space<vmem>>, vector<1x64x128xbf16>
    %129 = vector.shape_cast %128 : vector<1x64x128xbf16> to vector<64x128xbf16>
    %cst_81 = arith.constant dense<0.000000e+00> : vector<256x128xf32>
    %130 = tpu.matmul %127, %129, %cst_81 {dimension_numbers = #tpu.dot_dimension_numbers<[1], [0], [0], [1], [0, 0, 1, 1], [], []>} : vector<256x64xbf16>, vector<64x128xbf16>, vector<256x128xf32> -> vector<256x128xf32>
    %131 = arith.addf %125, %130 : vector<256x128xf32>
    %c1_82 = arith.constant 1 : index
    %c0_83 = arith.constant 0 : index
    %c0_84 = arith.constant 0 : index
    %132 = vector.load %arg3[%c1_82, %c0_83, %c0_84] : memref<3x1x128xf32, #tpu.memory_space<vmem>>, vector<1x1x128xf32>
    %133 = vector.shape_cast %132 : vector<1x1x128xf32> to vector<1x128xf32>
    %134 = vector.broadcast %133 : vector<1x128xf32> to vector<256x128xf32>
    %135 = arith.addf %131, %134 : vector<256x128xf32>
    %136 = vector.extract_strided_slice %135 {offsets = [0, 0], sizes = [256, 64], strides = [1, 1]} : vector<256x128xf32> to vector<256x64xf32>
    %137 = vector.extract_strided_slice %135 {offsets = [0, 64], sizes = [256, 64], strides = [1, 1]} : vector<256x128xf32> to vector<256x64xf32>
    %cst_85 = arith.constant 0.000000e+00 : f32
    %138 = vector.broadcast %cst_85 : f32 to vector<256x64xf32>
    %139 = arith.subf %138, %137 : vector<256x64xf32>
    %140 = math.exp %139 : vector<256x64xf32>
    %cst_86 = arith.constant 1.000000e+00 : f32
    %141 = vector.broadcast %cst_86 : f32 to vector<256x64xf32>
    %142 = arith.addf %141, %140 : vector<256x64xf32>
    %143 = tpu.reciprocal %142 {approx = true} : vector<256x64xf32> -> vector<256x64xf32>
    %144 = arith.mulf %136, %143 : vector<256x64xf32>
    %145 = vector.shape_cast %144 : vector<256x64xf32> to vector<16x16x64xf32>
    %c1_87 = arith.constant 1 : index
    %c1_88 = arith.constant 1 : index
    %c0_89 = arith.constant 0 : index
    %146 = vector.load %arg7[%c1_87, %c1_88, %c0_89] : memref<18x18x64xf32, #tpu.memory_space<vmem>>, vector<16x16x64xf32>
    tpu.vector_store %arg7[%c1_87, %c1_88, %c0_89], %145 {strides = array<i32>} : memref<18x18x64xf32, #tpu.memory_space<vmem>>, vector<16x16x64xf32>,
    %c0_90 = arith.constant 0 : index
    %c0_91 = arith.constant 0 : index
    %c0_92 = arith.constant 0 : index
    %147 = vector.load %arg7[%c0_90, %c0_91, %c0_92] : memref<18x18x64xf32, #tpu.memory_space<vmem>>, vector<18x18x64xf32>
    %148 = arith.truncf %147 : vector<18x18x64xf32> to vector<18x18x64xbf16>
    %149 = vector.extract_strided_slice %148 {offsets = [0, 0, 0], sizes = [16, 16, 64], strides = [1, 1, 1]} : vector<18x18x64xbf16> to vector<16x16x64xbf16>
    %150 = vector.shape_cast %149 : vector<16x16x64xbf16> to vector<256x64xbf16>
    %c18 = arith.constant 18 : index
    %c0_93 = arith.constant 0 : index
    %c0_94 = arith.constant 0 : index
    %151 = vector.load %arg2[%c18, %c0_93, %c0_94] : memref<27x64x128xbf16, #tpu.memory_space<vmem>>, vector<1x64x128xbf16>
    %152 = vector.shape_cast %151 : vector<1x64x128xbf16> to vector<64x128xbf16>
    %cst_95 = arith.constant dense<0.000000e+00> : vector<256x128xf32>
    %153 = tpu.matmul %150, %152, %cst_95 {dimension_numbers = #tpu.dot_dimension_numbers<[1], [0], [0], [1], [0, 0, 1, 1], [], []>} : vector<256x64xbf16>, vector<64x128xbf16>, vector<256x128xf32> -> vector<256x128xf32>
    %154 = vector.extract_strided_slice %148 {offsets = [0, 1, 0], sizes = [16, 16, 64], strides = [1, 1, 1]} : vector<18x18x64xbf16> to vector<16x16x64xbf16>
    %155 = vector.shape_cast %154 : vector<16x16x64xbf16> to vector<256x64xbf16>
    %c19 = arith.constant 19 : index
    %c0_96 = arith.constant 0 : index
    %c0_97 = arith.constant 0 : index
    %156 = vector.load %arg2[%c19, %c0_96, %c0_97] : memref<27x64x128xbf16, #tpu.memory_space<vmem>>, vector<1x64x128xbf16>
    %157 = vector.shape_cast %156 : vector<1x64x128xbf16> to vector<64x128xbf16>
    %cst_98 = arith.constant dense<0.000000e+00> : vector<256x128xf32>
    %158 = tpu.matmul %155, %157, %cst_98 {dimension_numbers = #tpu.dot_dimension_numbers<[1], [0], [0], [1], [0, 0, 1, 1], [], []>} : vector<256x64xbf16>, vector<64x128xbf16>, vector<256x128xf32> -> vector<256x128xf32>
    %159 = arith.addf %153, %158 : vector<256x128xf32>
    %160 = vector.extract_strided_slice %148 {offsets = [0, 2, 0], sizes = [16, 16, 64], strides = [1, 1, 1]} : vector<18x18x64xbf16> to vector<16x16x64xbf16>
    %161 = vector.shape_cast %160 : vector<16x16x64xbf16> to vector<256x64xbf16>
    %c20 = arith.constant 20 : index
    %c0_99 = arith.constant 0 : index
    %c0_100 = arith.constant 0 : index
    %162 = vector.load %arg2[%c20, %c0_99, %c0_100] : memref<27x64x128xbf16, #tpu.memory_space<vmem>>, vector<1x64x128xbf16>
    %163 = vector.shape_cast %162 : vector<1x64x128xbf16> to vector<64x128xbf16>
    %cst_101 = arith.constant dense<0.000000e+00> : vector<256x128xf32>
    %164 = tpu.matmul %161, %163, %cst_101 {dimension_numbers = #tpu.dot_dimension_numbers<[1], [0], [0], [1], [0, 0, 1, 1], [], []>} : vector<256x64xbf16>, vector<64x128xbf16>, vector<256x128xf32> -> vector<256x128xf32>
    %165 = arith.addf %159, %164 : vector<256x128xf32>
    %166 = vector.extract_strided_slice %148 {offsets = [1, 0, 0], sizes = [16, 16, 64], strides = [1, 1, 1]} : vector<18x18x64xbf16> to vector<16x16x64xbf16>
    %167 = vector.shape_cast %166 : vector<16x16x64xbf16> to vector<256x64xbf16>
    %c21 = arith.constant 21 : index
    %c0_102 = arith.constant 0 : index
    %c0_103 = arith.constant 0 : index
    %168 = vector.load %arg2[%c21, %c0_102, %c0_103] : memref<27x64x128xbf16, #tpu.memory_space<vmem>>, vector<1x64x128xbf16>
    %169 = vector.shape_cast %168 : vector<1x64x128xbf16> to vector<64x128xbf16>
    %cst_104 = arith.constant dense<0.000000e+00> : vector<256x128xf32>
    %170 = tpu.matmul %167, %169, %cst_104 {dimension_numbers = #tpu.dot_dimension_numbers<[1], [0], [0], [1], [0, 0, 1, 1], [], []>} : vector<256x64xbf16>, vector<64x128xbf16>, vector<256x128xf32> -> vector<256x128xf32>
    %171 = arith.addf %165, %170 : vector<256x128xf32>
    %172 = vector.extract_strided_slice %148 {offsets = [1, 1, 0], sizes = [16, 16, 64], strides = [1, 1, 1]} : vector<18x18x64xbf16> to vector<16x16x64xbf16>
    %173 = vector.shape_cast %172 : vector<16x16x64xbf16> to vector<256x64xbf16>
    %c22 = arith.constant 22 : index
    %c0_105 = arith.constant 0 : index
    %c0_106 = arith.constant 0 : index
    %174 = vector.load %arg2[%c22, %c0_105, %c0_106] : memref<27x64x128xbf16, #tpu.memory_space<vmem>>, vector<1x64x128xbf16>
    %175 = vector.shape_cast %174 : vector<1x64x128xbf16> to vector<64x128xbf16>
    %cst_107 = arith.constant dense<0.000000e+00> : vector<256x128xf32>
    %176 = tpu.matmul %173, %175, %cst_107 {dimension_numbers = #tpu.dot_dimension_numbers<[1], [0], [0], [1], [0, 0, 1, 1], [], []>} : vector<256x64xbf16>, vector<64x128xbf16>, vector<256x128xf32> -> vector<256x128xf32>
    %177 = arith.addf %171, %176 : vector<256x128xf32>
    %178 = vector.extract_strided_slice %148 {offsets = [1, 2, 0], sizes = [16, 16, 64], strides = [1, 1, 1]} : vector<18x18x64xbf16> to vector<16x16x64xbf16>
    %179 = vector.shape_cast %178 : vector<16x16x64xbf16> to vector<256x64xbf16>
    %c23 = arith.constant 23 : index
    %c0_108 = arith.constant 0 : index
    %c0_109 = arith.constant 0 : index
    %180 = vector.load %arg2[%c23, %c0_108, %c0_109] : memref<27x64x128xbf16, #tpu.memory_space<vmem>>, vector<1x64x128xbf16>
    %181 = vector.shape_cast %180 : vector<1x64x128xbf16> to vector<64x128xbf16>
    %cst_110 = arith.constant dense<0.000000e+00> : vector<256x128xf32>
    %182 = tpu.matmul %179, %181, %cst_110 {dimension_numbers = #tpu.dot_dimension_numbers<[1], [0], [0], [1], [0, 0, 1, 1], [], []>} : vector<256x64xbf16>, vector<64x128xbf16>, vector<256x128xf32> -> vector<256x128xf32>
    %183 = arith.addf %177, %182 : vector<256x128xf32>
    %184 = vector.extract_strided_slice %148 {offsets = [2, 0, 0], sizes = [16, 16, 64], strides = [1, 1, 1]} : vector<18x18x64xbf16> to vector<16x16x64xbf16>
    %185 = vector.shape_cast %184 : vector<16x16x64xbf16> to vector<256x64xbf16>
    %c24 = arith.constant 24 : index
    %c0_111 = arith.constant 0 : index
    %c0_112 = arith.constant 0 : index
    %186 = vector.load %arg2[%c24, %c0_111, %c0_112] : memref<27x64x128xbf16, #tpu.memory_space<vmem>>, vector<1x64x128xbf16>
    %187 = vector.shape_cast %186 : vector<1x64x128xbf16> to vector<64x128xbf16>
    %cst_113 = arith.constant dense<0.000000e+00> : vector<256x128xf32>
    %188 = tpu.matmul %185, %187, %cst_113 {dimension_numbers = #tpu.dot_dimension_numbers<[1], [0], [0], [1], [0, 0, 1, 1], [], []>} : vector<256x64xbf16>, vector<64x128xbf16>, vector<256x128xf32> -> vector<256x128xf32>
    %189 = arith.addf %183, %188 : vector<256x128xf32>
    %190 = vector.extract_strided_slice %148 {offsets = [2, 1, 0], sizes = [16, 16, 64], strides = [1, 1, 1]} : vector<18x18x64xbf16> to vector<16x16x64xbf16>
    %191 = vector.shape_cast %190 : vector<16x16x64xbf16> to vector<256x64xbf16>
    %c25 = arith.constant 25 : index
    %c0_114 = arith.constant 0 : index
    %c0_115 = arith.constant 0 : index
    %192 = vector.load %arg2[%c25, %c0_114, %c0_115] : memref<27x64x128xbf16, #tpu.memory_space<vmem>>, vector<1x64x128xbf16>
    %193 = vector.shape_cast %192 : vector<1x64x128xbf16> to vector<64x128xbf16>
    %cst_116 = arith.constant dense<0.000000e+00> : vector<256x128xf32>
    %194 = tpu.matmul %191, %193, %cst_116 {dimension_numbers = #tpu.dot_dimension_numbers<[1], [0], [0], [1], [0, 0, 1, 1], [], []>} : vector<256x64xbf16>, vector<64x128xbf16>, vector<256x128xf32> -> vector<256x128xf32>
    %195 = arith.addf %189, %194 : vector<256x128xf32>
    %196 = vector.extract_strided_slice %148 {offsets = [2, 2, 0], sizes = [16, 16, 64], strides = [1, 1, 1]} : vector<18x18x64xbf16> to vector<16x16x64xbf16>
    %197 = vector.shape_cast %196 : vector<16x16x64xbf16> to vector<256x64xbf16>
    %c26 = arith.constant 26 : index
    %c0_117 = arith.constant 0 : index
    %c0_118 = arith.constant 0 : index
    %198 = vector.load %arg2[%c26, %c0_117, %c0_118] : memref<27x64x128xbf16, #tpu.memory_space<vmem>>, vector<1x64x128xbf16>
    %199 = vector.shape_cast %198 : vector<1x64x128xbf16> to vector<64x128xbf16>
    %cst_119 = arith.constant dense<0.000000e+00> : vector<256x128xf32>
    %200 = tpu.matmul %197, %199, %cst_119 {dimension_numbers = #tpu.dot_dimension_numbers<[1], [0], [0], [1], [0, 0, 1, 1], [], []>} : vector<256x64xbf16>, vector<64x128xbf16>, vector<256x128xf32> -> vector<256x128xf32>
    %201 = arith.addf %195, %200 : vector<256x128xf32>
    %c2_120 = arith.constant 2 : index
    %c0_121 = arith.constant 0 : index
    %c0_122 = arith.constant 0 : index
    %202 = vector.load %arg3[%c2_120, %c0_121, %c0_122] : memref<3x1x128xf32, #tpu.memory_space<vmem>>, vector<1x1x128xf32>
    %203 = vector.shape_cast %202 : vector<1x1x128xf32> to vector<1x128xf32>
    %204 = vector.broadcast %203 : vector<1x128xf32> to vector<256x128xf32>
    %205 = arith.addf %201, %204 : vector<256x128xf32>
    %206 = vector.extract_strided_slice %205 {offsets = [0, 0], sizes = [256, 64], strides = [1, 1]} : vector<256x128xf32> to vector<256x64xf32>
    %207 = vector.extract_strided_slice %205 {offsets = [0, 64], sizes = [256, 64], strides = [1, 1]} : vector<256x128xf32> to vector<256x64xf32>
    %cst_123 = arith.constant 0.000000e+00 : f32
    %208 = vector.broadcast %cst_123 : f32 to vector<256x64xf32>
    %209 = arith.subf %208, %207 : vector<256x64xf32>
    %210 = math.exp %209 : vector<256x64xf32>
    %cst_124 = arith.constant 1.000000e+00 : f32
    %211 = vector.broadcast %cst_124 : f32 to vector<256x64xf32>
    %212 = arith.addf %211, %210 : vector<256x64xf32>
    %213 = tpu.reciprocal %212 {approx = true} : vector<256x64xf32> -> vector<256x64xf32>
    %214 = arith.mulf %206, %213 : vector<256x64xf32>
    %215 = arith.truncf %214 : vector<256x64xf32> to vector<256x64xbf16>
    %c0_125 = arith.constant 0 : index
    %c0_126 = arith.constant 0 : index
    %216 = vector.load %arg4[%c0_125, %c0_126] : memref<64x256xbf16, #tpu.memory_space<vmem>>, vector<64x256xbf16>
    %cst_127 = arith.constant dense<0.000000e+00> : vector<256x256xf32>
    %217 = tpu.matmul %215, %216, %cst_127 {dimension_numbers = #tpu.dot_dimension_numbers<[1], [0], [0], [1], [0, 0, 1, 1], [], []>} : vector<256x64xbf16>, vector<64x256xbf16>, vector<256x256xf32> -> vector<256x256xf32>
    %c0_128 = arith.constant 0 : index
    %c0_129 = arith.constant 0 : index
    %218 = vector.load %arg5[%c0_128, %c0_129] : memref<1x256xf32, #tpu.memory_space<vmem>>, vector<1x256xf32>
    %219 = vector.broadcast %218 : vector<1x256xf32> to vector<256x256xf32>
    %220 = arith.addf %217, %219 : vector<256x256xf32>
    %221 = vector.extract_strided_slice %220 {offsets = [0, 0], sizes = [256, 128], strides = [1, 1]} : vector<256x256xf32> to vector<256x128xf32>
    %222 = vector.extract_strided_slice %220 {offsets = [0, 128], sizes = [256, 128], strides = [1, 1]} : vector<256x256xf32> to vector<256x128xf32>
    %cst_130 = arith.constant 0.000000e+00 : f32
    %223 = vector.broadcast %cst_130 : f32 to vector<256x128xf32>
    %224 = arith.subf %223, %222 : vector<256x128xf32>
    %225 = math.exp %224 : vector<256x128xf32>
    %cst_131 = arith.constant 1.000000e+00 : f32
    %226 = vector.broadcast %cst_131 : f32 to vector<256x128xf32>
    %227 = arith.addf %226, %225 : vector<256x128xf32>
    %228 = tpu.reciprocal %227 {approx = true} : vector<256x128xf32> -> vector<256x128xf32>
    %229 = arith.mulf %221, %228 : vector<256x128xf32>
    %c0_132 = arith.constant 0 : index
    %c0_133 = arith.constant 0 : index
    %c0_134 = arith.constant 0 : index
    %230 = vector.load %arg6[%c0_132, %c0_133, %c0_134] : memref<1x256x128xf32, #tpu.memory_space<vmem>>, vector<1x256x128xf32>
    %231 = vector.shape_cast %230 : vector<1x256x128xf32> to vector<256x128xf32>
    %232 = vector.shape_cast %229 : vector<256x128xf32> to vector<1x256x128xf32>
    tpu.vector_store %arg6[%c0_132, %c0_133, %c0_134], %232 {strides = array<i32>} : memref<1x256x128xf32, #tpu.memory_space<vmem>>, vector<1x256x128xf32>,
    return
  }
  func.func @transform_0(%arg0: i32) -> (i32, i32, i32, i32) {
    %c0_i32 = arith.constant 0 : i32
    %c0_i32_0 = arith.constant 0 : i32
    %c0_i32_1 = arith.constant 0 : i32
    %c0_i32_2 = arith.constant 0 : i32
    return %arg0, %c0_i32, %c0_i32_0, %c0_i32_1 : i32, i32, i32, i32
  }
  func.func @transform_1(%arg0: i32) -> (i32, i32, i32) {
    %c0_i32 = arith.constant 0 : i32
    %c0_i32_0 = arith.constant 0 : i32
    %c0_i32_1 = arith.constant 0 : i32
    %c0_i32_2 = arith.constant 0 : i32
    return %c0_i32, %c0_i32_0, %c0_i32_1 : i32, i32, i32
  }
  func.func @transform_2(%arg0: i32) -> (i32, i32, i32) {
    %c0_i32 = arith.constant 0 : i32
    %c0_i32_0 = arith.constant 0 : i32
    %c0_i32_1 = arith.constant 0 : i32
    %c0_i32_2 = arith.constant 0 : i32
    return %c0_i32, %c0_i32_0, %c0_i32_1 : i32, i32, i32
  }
  func.func @transform_3(%arg0: i32) -> (i32, i32) {
    %c0_i32 = arith.constant 0 : i32
    %c0_i32_0 = arith.constant 0 : i32
    %c0_i32_1 = arith.constant 0 : i32
    return %c0_i32, %c0_i32_0 : i32, i32
  }
  func.func @transform_4(%arg0: i32) -> (i32, i32) {
    %c0_i32 = arith.constant 0 : i32
    %c0_i32_0 = arith.constant 0 : i32
    %c0_i32_1 = arith.constant 0 : i32
    return %c0_i32, %c0_i32_0 : i32, i32
  }
  func.func @transform_5(%arg0: i32) -> (i32, i32, i32) {
    %c0_i32 = arith.constant 0 : i32
    %c0_i32_0 = arith.constant 0 : i32
    %c0_i32_1 = arith.constant 0 : i32
    return %arg0, %c0_i32, %c0_i32_0 : i32, i32, i32
  }
}

</mosaic_0001>

<bundles_post_ra>
// kernel: decoder_forward.1
= control target key start
LH: loop header
LB: loop body
LE: loop exit
PB: predicated region body
PF: predicated region fallthrough
CT: control target
= control target key end

     0   :  { %s13416_s18 = smov 0   ;;  %s16522_s0 = inlined_call_operand.vmem [shape: f32[2,18,18,64], index: 0, kind: input, shape index: {}]   ;;  %s16523_s1 = inlined_call_operand.vmem [shape: bf16[27,64,128], index: 1, kind: input, shape index: {}]   ;;  %s16524_s2 = inlined_call_operand.vmem [shape: f32[3,1,128], index: 2, kind: input, shape index: {}]   ;;  %s16525_s3 = inlined_call_operand.vmem [shape: bf16[64,256], index: 3, kind: input, shape index: {}]   ;;  %s16526_s4 = inlined_call_operand.vmem [shape: f32[1,256], index: 4, kind: input, shape index: {}]   ;;  %s16527_s5 = inlined_call_operand.vmem [shape: f32[2,256,128], index: 5, kind: output, shape index: {}]  }
   0x1 LB: > { %s9543_s19 = sadd.s32 4294967295, %s13381_s18   ;;  %p9547_p0 = scmp.ge.s32.totalorder %s13381_s18, 1  ;;  %s13381_s18 = sphi %s13416_s18, %s15_s18  }
   0x2   : > { %p187_p1 = scmp.lt.s32.totalorder %s13381_s18, 3 }
   0x4   : > { %p188_p2 = pnand %p9547_p0, %p187_p1 }
   0x6   : > { %191 = sbr.rel (%p188_p2) target bundleno = 2844 (0xb1c), region = 40 }
   0xd   : > { %v12739_v0 = vld [vmem:[%s16523_s1 + $0x20] sm:$0xff]   ;;  %p215_p3 = scmp.lt.s32.totalorder %s9543_s19, 1  ;;  %v12741_v2 = vld [vmem:[%s16523_s1 + $0x28] sm:$0xff]   ;;  %v12743_v4 = vld [vmem:[%s16523_s1 + $0x30] sm:$0xff]   ;;  %vm226_vm0 = vcmask 523264   ;;  %vm1054_vm2 = vcmask 1046528  }
   0xe   : > { %v13430_v1 = vld [vmem:[%s16523_s1 + $0x60] sm:$0xff]   ;;  %10871 = vmatprep.subr.bf16.mxu1 %v12739_v0  ;;  %v12742_v3 = vld [vmem:[%s16523_s1 + $0x68] sm:$0xff]   ;;  %v12744_v5 = vld [vmem:[%s16523_s1 + $0x70] sm:$0xff]   ;;  %vm370_vm1 = vsmask.f32 7424  ;;  %vm235_vm3 = vcmask 516096  }
   0xf   : > { %s16536_s19 = smov (!%p215_p3, %s9543_s19), 1  ;;  %10991 = vmatprep.subr.bf16.mxu0 %v13430_v1  ;;  %10872 = vmatpush3.bf16.msra.mxu1 %v12739_v0  ;;  %v12745_v6 = vld [vmem:[%s16523_s1 + $0x38] sm:$0xff]   ;;  %v12747_v24 = vld [vmem:[%s16523_s1 + $0x80] sm:$0xff]   ;;  %v12748_v45 = vld [vmem:[%s16523_s1 + $0x88] sm:$0xff]   ;;  %vm229_vm4 = vcmask 517120   ;;  %s13384_s22 = smov 64  }
  0x10   : > { %10992 = vmatpush3.bf16.msra.mxu0 %v13430_v1  ;;  %10873 = vmatprep.subr.bf16.mxu1 %v12741_v2  ;;  %s12727_s30 = smul.u32 432, %s16536_s19  ;;  %v12746_v7 = vld [vmem:[%s16523_s1 + $0x78] sm:$0xff]   ;;  %s10330_s28 = sshll.u32 %s16536_s19, 8 }
  0x11   : > { %10993 = vmatprep.subr.bf16.mxu0 %v12742_v3  ;;  %s16358_s6 = scalar_lea.vmem %s16527_s5, %s10330_s28 }
  0x12   : > { %s13455_s12 = scalar_lea.vmem %s16522_s0, %s12727_s30 }
  0x13   : > { %10874 = vmatpush3.bf16.msra.mxu1 %v12741_v2  ;;  %v272_v8 = vld [vmem:[%s13455_s12] sm:$0xff]  ;;  %v273_v9 = vld [vmem:[%s13455_s12 + $0x8] sm:$0xff]  ;;  %v274_v10 = vld [vmem:[%s13455_s12 + $0x10] sm:$0x3] }
  0x14   : > { %10994 = vmatpush3.bf16.msra.mxu0 %v12742_v3  ;;  %10875 = vmatprep.subr.bf16.mxu1 %v12743_v4  ;;  %v13463_v11 = vpack.c.bf16 %v273_v9, %v272_v8  ;;  %v13465_v12 = vpack.c.bf16 %v274_v10, %v274_v10  ;;  %v275_v13 = vld [vmem:[%s13455_s12 + $0x18] sm:$0xff]  ;;  %v276_v14 = vld [vmem:[%s13455_s12 + $0x20] sm:$0xff]  ;;  %v277_v15 = vld [vmem:[%s13455_s12 + $0x28] sm:$0x3] }
  0x15   : > { %10995 = vmatprep.subr.bf16.mxu0 %v12744_v5  ;;  %v13470_v16 = vpack.c.bf16 %v276_v14, %v275_v13  ;;  %v13472_v17 = vpack.c.bf16 %v277_v15, %v277_v15  ;;  %v278_v18 = vld [vmem:[%s13455_s12 + $0x30] sm:$0xff]  ;;  %v279_v19 = vld [vmem:[%s13455_s12 + $0x38] sm:$0xff]  ;;  %v280_v28 = vld [vmem:[%s13455_s12 + $0x40] sm:$0x3] }
  0x16   : > { %v372_v20 = vshrl.u32 %v13463_v11, 16  ;;  %v374_v21 = vshll.u32 %v13463_v11, 16  ;;  %v379_v22 = vshll.u32 %v13465_v12, 16  ;;  %v13479_v23 = vpack.c.bf16 %v279_v19, %v278_v18  ;;  %v281_v29 = vld [vmem:[%s13455_s12 + $0x48] sm:$0xff]  ;;  %v282_v34 = vld [vmem:[%s13455_s12 + $0x50] sm:$0xff]  ;;  %v284_v40 = vld [vmem:[%s13455_s12 + $0x60] sm:$0xff] }
  0x17   : > { %10876 = vmatpush3.bf16.msra.mxu1 %v12743_v4  ;;  %v384_v25 = vshrl.u32 %v13470_v16, 16  ;;  %v386_v26 = vshll.u32 %v13470_v16, 16  ;;  %v391_v27 = vshll.u32 %v13472_v17, 16  ;;  %10999 = vmatprep.mubr.msk.bf16.mxu0 %vm226_vm0, %v13470_v16  ;;  %v13491_v32 = vpack.c.bf16 %v280_v28, %v280_v28  ;;  %v283_v35 = vld [vmem:[%s13455_s12 + $0x58] sm:$0x3]  ;;  %v285_v41 = vld [vmem:[%s13455_s12 + $0x68] sm:$0xff] }
  0x18   : > { %10996 = vmatpush3.bf16.msra.mxu0 %v12744_v5  ;;  %10877 = vmatprep.subr.bf16.mxu1 %v12745_v6  ;;  %v376_v30 = vrot.slane %v374_v21, 1  ;;  %v381_v31 = vrot.slane %v379_v22, 1  ;;  %v396_v33 = vshrl.u32 %v13479_v23, 16  ;;  %v398_v38 = vshll.u32 %v13479_v23, 16  ;;  %v286_v50 = vld [vmem:[%s13455_s12 + $0x70] sm:$0x3] }
  0x19   : > { %10997 = vmatprep.subr.bf16.mxu0 %v12746_v7  ;;  %v388_v36 = vrot.slane %v386_v26, 1  ;;  %v393_v37 = vrot.slane %v391_v27, 1  ;;  %v13497_v39 = vpack.c.bf16 %v282_v34, %v281_v29  ;;  %v403_v43 = vshll.u32 %v13491_v32, 16  ;;  %v287_v51 = vld [vmem:[%s13455_s12 + $0x78] sm:$0xff]  ;;  %v288_v56 = vld [vmem:[%s13455_s12 + $0x80] sm:$0xff]  ;;  %v290_v58 = vld [vmem:[%s13455_s12 + $0x90] sm:$0xff] }
  0x1a   : > { %v377_v42 = vor.u32 %v376_v30, %v372_v20  ;;  %v13502_v44 = vpack.c.bf16 %v283_v35, %v283_v35  ;;  %v400_v47 = vrot.slane %v398_v38, 1  ;;  %v13513_v55 = vpack.c.bf16 %v285_v41, %v284_v40  ;;  %v289_v57 = vld [vmem:[%s13455_s12 + $0x88] sm:$0x3]  ;;  %v291_v63 = vld [vmem:[%s13455_s12 + $0x98] sm:$0xff]  ;;  %v292_v5 = vld [vmem:[%s13455_s12 + $0xa0] sm:$0x3] }
  0x1b   : > { %10878 = vmatpush3.bf16.msra.mxu1 %v12745_v6  ;;  %v389_v46 = vor.u32 %v388_v36, %v384_v25  ;;  %v408_v48 = vshrl.u32 %v13497_v39, 16  ;;  %v410_v49 = vshll.u32 %v13497_v39, 16  ;;  %v405_v53 = vrot.slane %v403_v43, 1  ;;  %v12749_v10 = vld [vmem:[%s16523_s1 + $0x90] sm:$0xff]   ;;  %v293_v18 = vld [vmem:[%s13455_s12 + $0xa8] sm:$0xff]  ;;  %v296_v20 = vld [vmem:[%s13455_s12 + $0xc0] sm:$0xff] }
  0x1c   : > { %10998 = vmatpush3.bf16.msra.mxu0 %v12746_v7  ;;  %v382_v52 = vsel %vm370_vm1, %v377_v42, %v381_v31  ;;  %v415_v54 = vshll.u32 %v13502_v44, 16  ;;  %v401_v60 = vor.u32 %v400_v47, %v396_v33  ;;  %v13522_v62 = vpack.c.bf16 %v286_v50, %v286_v50  ;;  %v294_v19 = vld [vmem:[%s13455_s12 + $0xb0] sm:$0xff]  ;;  %v295_v34 = vld [vmem:[%s13455_s12 + $0xb8] sm:$0x3] }
  0x1d   : > { %11031 = vmatprep.subr.bf16.mxu0 %v12747_v24  ;;  %10879 = vmatprep.mubr.msk.bf16.mxu1 %vm226_vm0, %v382_v52  ;;  %v13520_v59 = vsel %vm370_vm1, %v389_v46, %v393_v37  ;;  %v412_v61 = vrot.slane %v410_v49, 1  ;;  %v420_v2 = vshrl.u32 %v13513_v55, 16  ;;  %v422_v3 = vshll.u32 %v13513_v55, 16  ;;  %v12750_v40 = vld [vmem:[%s16523_s1 + $0x98] sm:$0xff]   ;;  %v298_v41 = vld [vmem:[%s13455_s12 + $0xd0] sm:$0x3] }
  0x1e   : > { %10880 = vmatmul.mubr.msk.bf16.vlgmr.msra.gmra.mrb[0].mxu1 %vm226_vm0, %v13520_v59  ;;  %v417_v0 = vrot.slane %v415_v54, 1  ;;  %v13531_v4 = vpack.c.bf16 %v288_v56, %v287_v51  ;;  %v13535_v6 = vsel %vm370_vm1, %v401_v60, %v405_v53  ;;  %v427_v8 = vshll.u32 %v13522_v62, 16  ;;  %v299_v47 = vld [vmem:[%s13455_s12 + $0xd8] sm:$0xff]  ;;  %v300_v52 = vld [vmem:[%s13455_s12 + $0xe0] sm:$0xff]  ;;  %v302_v54 = vld [vmem:[%s13455_s12 + $0xf0] sm:$0xff] }
  0x1f   : > { %11000 = vmatmul.mubr.msk.bf16.vlgmr.msra.gmra.mrb[0].mxu0 %vm226_vm0, %v13479_v23  ;;  %16530 = vst [vmem:[#allocation3_spill] sm:$0xff] %v13535_v6  ;;  %v413_v7 = vor.u32 %v412_v61, %v408_v48  ;;  %v13540_v9 = vpack.c.bf16 %v289_v57, %v289_v57  ;;  %10883 = vmatprep.mubr.msk.bf16.mxu1 %vm226_vm0, %v13535_v6  ;;  %v424_v13 = vrot.slane %v422_v3, 1  ;;  %v13595_v53 = vld [vmem:[%s16523_s1 + $0xa0] sm:$0xff]   ;;  %v301_v56 = vld [vmem:[%s13455_s12 + $0xe8] sm:$0x3]  ;;  %v303_v57 = vld [vmem:[%s13455_s12 + $0xf8] sm:$0xff] }
  0x20   : > { %11032 = vmatpush3.bf16.msra.mxu0 %v12747_v24  ;;  %11003 = vmatprep.mubr.msk.bf16.mxu0 %vm226_vm0, %v13497_v39  ;;  %v434_v14 = vshll.u32 %v13531_v4, 16  ;;  %v13548_v15 = vpack.c.bf16 %v291_v63, %v290_v58  ;;  %v429_v21 = vrot.slane %v427_v8, 1  ;;  %v13553_v22 = vpack.c.bf16 %v292_v5, %v292_v5  ;;  %v297_v24 = vld [vmem:[%s13455_s12 + $0xc8] sm:$0xff]  ;;  %v12752_v58 = vld [vmem:[%s16523_s1] sm:$0xff]  }
  0x21   : > { %11033 = vmatprep.subr.bf16.mxu0 %v12748_v45  ;;  %v13557_v25 = vsel %vm370_vm1, %v413_v7, %v417_v0  ;;  %v425_v26 = vor.u32 %v424_v13, %v420_v2  ;;  %v432_v27 = vshrl.u32 %v13531_v4, 16  ;;  %v439_v30 = vshll.u32 %v13540_v9, 16  ;;  %v304_v63 = vld [vmem:[%s13455_s12 + $0x100] sm:$0x3]  ;;  %10911 = vmatprep.subr.bf16.mxu1 %v12752_v58 }
  0x22   : > { %16531 = vst [vmem:[#allocation4_spill] sm:$0xff] %v13557_v25  ;;  %v446_v28 = vshll.u32 %v13548_v15, 16  ;;  %v436_v29 = vrot.slane %v434_v14, 1  ;;  %v444_v31 = vshrl.u32 %v13548_v15, 16  ;;  %v13563_v33 = vpack.c.bf16 %v294_v19, %v293_v18  ;;  %10912 = vmatpush3.bf16.msra.mxu1 %v12752_v58  ;;  %v12754_v14 = vld [vmem:[%s16523_s1 + $0x8] sm:$0xff]   ;;  %v311_v58 = vld [vmem:[%s13455_s12 + $0x138] sm:$0xff] }
  0x23   : > { %v13567_v35 = vsel %vm370_vm1, %v425_v26, %v429_v21  ;;  %v451_v37 = vshll.u32 %v13553_v22, 16  ;;  %v13570_v38 = vpack.c.bf16 %v297_v24, %v296_v20  ;;  %v13580_v42 = vpack.c.bf16 %v295_v34, %v295_v34  ;;  %v305_v26 = vld [vmem:[%s13455_s12 + $0x108] sm:$0xff]  ;;  %v308_v34 = vld [vmem:[%s13455_s12 + $0x120] sm:$0xff]  ;;  %10913 = vmatprep.subr.bf16.mxu1 %v12754_v14 }
  0x24   : > { %11034 = vmatpush3.bf16.msra.mxu0 %v12748_v45  ;;  %v448_v36 = vrot.slane %v446_v28, 1  ;;  %v437_v43 = vor.u32 %v436_v29, %v432_v27  ;;  %v441_v45 = vrot.slane %v439_v30, 1  ;;  %v458_v46 = vshll.u32 %v13563_v33, 16  ;;  %v306_v27 = vld [vmem:[%s13455_s12 + $0x110] sm:$0xff] }
  0x25   : > { %11035 = vmatprep.subr.bf16.mxu0 %v12749_v10  ;;  %v453_v49 = vrot.slane %v451_v37, 1  ;;  %v13588_v50 = vpack.c.bf16 %v298_v41, %v298_v41  ;;  %v470_v51 = vshll.u32 %v13570_v38, 16  ;;  %v456_v60 = vshrl.u32 %v13563_v33, 16  ;;  %v309_v37 = vld [vmem:[%s13455_s12 + $0x128] sm:$0xff] }
  0x26   : > { %10884 = vmatmul.mubr.msk.bf16.gmra.mrb[4].mxu1 %vm226_vm0, %v13557_v25  ;;  %v449_v48 = vor.u32 %v448_v36, %v444_v31  ;;  %v463_v61 = vshll.u32 %v13580_v42, 16  ;;  %v13607_v0 = vsel %vm370_vm1, %v437_v43, %v441_v45  ;;  %v460_v2 = vrot.slane %v458_v46, 1  ;;  %v307_v31 = vld [vmem:[%s13455_s12 + $0x118] sm:$0x3]  ;;  %v12755_v36 = vld [vmem:[%s16523_s1 + $0x10] sm:$0xff]  }
  0x27   : > { %11004 = vmatmul.mubr.msk.bf16.gmra.mrb[4].mxu0 %vm226_vm0, %v13513_v55  ;;  %10887 = vmatprep.mubr.msk.bf16.mxu1 %vm226_vm0, %v13567_v35  ;;  %v468_v3 = vshrl.u32 %v13570_v38, 16  ;;  %v13610_v5 = vpack.c.bf16 %v300_v52, %v299_v47  ;;  %v472_v8 = vrot.slane %v470_v51, 1  ;;  %v13616_v13 = vpack.c.bf16 %v303_v57, %v302_v54  ;;  %v12756_v54 = vld [vmem:[%s16523_s1 + $0x18] sm:$0xff]   ;;  %v310_v57 = vld [vmem:[%s13455_s12 + $0x130] sm:$0x3] }
  0x28   : > { %11007 = vmatprep.mubr.msk.bf16.mxu0 %vm226_vm0, %v13531_v4  ;;  %11036 = vmatpush3.bf16.msra.mxu0 %v12749_v10  ;;  %v13613_v7 = vsel %vm370_vm1, %v449_v48, %v453_v49  ;;  %v475_v10 = vshll.u32 %v13588_v50, 16  ;;  %v13626_v18 = vpack.c.bf16 %v301_v56, %v301_v56  ;;  %v461_v19 = vor.u32 %v460_v2, %v456_v60 }
  0x29   : > { %11037 = vmatprep.subr.bf16.mxu0 %v12750_v40  ;;  %v465_v20 = vrot.slane %v463_v61, 1  ;;  %v482_v21 = vshll.u32 %v13610_v5, 16  ;;  %v13633_v24 = vpack.c.bf16 %v304_v63, %v304_v63  ;;  %v473_v28 = vor.u32 %v472_v8, %v468_v3  ;;  %10914 = vmatpush3.bf16.msra.mxu1 %v12754_v14  ;;  %v312_v3 = vld [vmem:[%s13455_s12 + $0x140] sm:$0xff] }
  0x2a   : > { %v477_v29 = vrot.slane %v475_v10, 1  ;;  %v494_v30 = vshll.u32 %v13616_v13, 16  ;;  %v487_v41 = vshll.u32 %v13626_v18, 16  ;;  %v492_v43 = vshrl.u32 %v13616_v13, 16  ;;  %10915 = vmatprep.subr.bf16.mxu1 %v12755_v36 }
  0x2b   : > { %v13648_v45 = vsel %vm370_vm1, %v461_v19, %v465_v20  ;;  %v484_v46 = vrot.slane %v482_v21, 1  ;;  %v499_v47 = vshll.u32 %v13633_v24, 16  ;;  %v13651_v48 = vpack.c.bf16 %v306_v27, %v305_v26  ;;  %v313_v19 = vld [vmem:[%s13455_s12 + $0x148] sm:$0x3]  ;;  %v314_v26 = vld [vmem:[%s13455_s12 + $0x150] sm:$0xff]  ;;  %v315_v27 = vld [vmem:[%s13455_s12 + $0x158] sm:$0xff] }
  0x2c   : > { %11038 = vmatpush3.bf16.msra.mxu0 %v12750_v40  ;;  %v480_v40 = vshrl.u32 %v13610_v5, 16  ;;  %v13654_v49 = vsel %vm370_vm1, %v473_v28, %v477_v29  ;;  %v496_v51 = vrot.slane %v494_v30, 1  ;;  %v13656_v52 = vpack.c.bf16 %v309_v37, %v308_v34  ;;  %v12753_v29 = vld [vmem:[%s16523_s1 + $0xa8] sm:$0xff]   ;;  %v316_v30 = vld [vmem:[%s13455_s12 + $0x160] sm:$0x3] }
  0x2d   : > { %11071 = vmatprep.subr.bf16.mxu0 %v13595_v53  ;;  %v13661_v56 = vpack.c.bf16 %v307_v31, %v307_v31  ;;  %10916 = vmatpush3.bf16.msra.mxu1 %v12755_v36  ;;  %v489_v61 = vrot.slane %v487_v41, 1  ;;  %v501_v63 = vrot.slane %v499_v47, 1  ;;  %v506_v2 = vshll.u32 %v13651_v48, 16  ;;  %v317_v31 = vld [vmem:[%s13455_s12 + $0x168] sm:$0xff]  ;;  %v319_v41 = vld [vmem:[%s13455_s12 + $0x178] sm:$0x3] }
  0x2e   : > { %10888 = vmatmul.mubr.msk.bf16.gmra.mrb[8].mxu1 %vm226_vm0, %v13607_v0  ;;  %v485_v60 = vor.u32 %v484_v46, %v480_v40  ;;  %v497_v8 = vor.u32 %v496_v51, %v492_v43  ;;  %v13675_v10 = vpack.c.bf16 %v310_v57, %v310_v57  ;;  %v518_v14 = vshll.u32 %v13656_v52, 16  ;;  %10917 = vmatprep.subr.bf16.mxu1 %v12756_v54  ;;  %v318_v40 = vld [vmem:[%s13455_s12 + $0x170] sm:$0xff] }
  0x2f   : > { %11008 = vmatmul.mubr.msk.bf16.gmra.mrb[8].mxu0 %vm226_vm0, %v13548_v15  ;;  %10891 = vmatprep.mubr.msk.bf16.mxu1 %vm226_vm0, %v13613_v7  ;;  %v504_v20 = vshrl.u32 %v13651_v48, 16  ;;  %v511_v21 = vshll.u32 %v13661_v56, 16  ;;  %v516_v28 = vshrl.u32 %v13656_v52, 16  ;;  %v508_v36 = vrot.slane %v506_v2, 1 }
  0x30   : > { %11011 = vmatprep.mubr.msk.bf16.mxu0 %vm226_vm0, %v13563_v33  ;;  %v13696_v34 = vsel %vm370_vm1, %v485_v60, %v489_v61  ;;  %v13698_v37 = vpack.c.bf16 %v312_v3, %v311_v58  ;;  %v13703_v43 = vsel %vm370_vm1, %v497_v8, %v501_v63  ;;  %v520_v46 = vrot.slane %v518_v14, 1  ;;  %v12757_v3 = vld [vmem:[%s16523_s1 + $0xb0] sm:$0xff]  }
  0x31   : > { %10918 = vmatpush3.bf16.msra.mxu1 %v12756_v54  ;;  %v523_v47 = vshll.u32 %v13675_v10, 16  ;;  %v13706_v51 = vpack.c.bf16 %v315_v27, %v314_v26  ;;  %v13708_v54 = vpack.c.bf16 %v313_v19, %v313_v19  ;;  %v13710_v57 = vpack.c.bf16 %v316_v30, %v316_v30  ;;  %v321_v26 = vld [vmem:[%s13455_s12 + $0x188] sm:$0xff] }
  0x32   : > { %v13716_v58 = vpack.c.bf16 %v318_v40, %v317_v31  ;;  %v509_v60 = vor.u32 %v508_v36, %v504_v20  ;;  %v513_v61 = vrot.slane %v511_v21, 1  ;;  %v530_v63 = vshll.u32 %v13698_v37, 16  ;;  %v320_v21 = vld [vmem:[%s13455_s12 + $0x180] sm:$0xff] }
  0x33   : > { %v13722_v2 = vpack.c.bf16 %v319_v41, %v319_v41  ;;  %v521_v8 = vor.u32 %v520_v46, %v516_v28  ;;  %v525_v14 = vrot.slane %v523_v47, 1  ;;  %v535_v19 = vshll.u32 %v13708_v54, 16 }
  0x34   : > { %v547_v20 = vshll.u32 %v13710_v57, 16  ;;  %v554_v30 = vshll.u32 %v13716_v58, 16  ;;  %v13737_v31 = vsel %vm370_vm1, %v509_v60, %v513_v61  ;;  %v528_v36 = vshrl.u32 %v13698_v37, 16  ;;  %v12758_v60 = vld [vmem:[%s16523_s1 + $0xb8] sm:$0xff]  }
  0x35   : > { %v532_v28 = vrot.slane %v530_v63, 1  ;;  %v559_v40 = vshll.u32 %v13722_v2, 16  ;;  %v13742_v41 = vsel %vm370_vm1, %v521_v8, %v525_v14  ;;  %v540_v46 = vshrl.u32 %v13706_v51, 16 }
  0x36   : > { %10892 = vmatmul.mubr.msk.bf16.gmra.mrb[12].mxu1 %vm226_vm0, %v13648_v45  ;;  %v537_v27 = vrot.slane %v535_v19, 1  ;;  %v556_v61 = vrot.slane %v554_v30, 1  ;;  %v322_v30 = vld [vmem:[%s13455_s12 + $0x190] sm:$0x3] }
  0x37   : > { %11012 = vmatmul.mubr.msk.bf16.gmra.mrb[12].mxu0 %vm226_vm0, %v13570_v38  ;;  %10895 = vmatprep.mubr.msk.bf16.mxu1 %vm226_vm0, %v13654_v49  ;;  %v533_v8 = vor.u32 %v532_v28, %v528_v36  ;;  %v561_v14 = vrot.slane %v559_v40, 1  ;;  %v13794_v36 = vpack.c.bf16 %v322_v30, %v322_v30  ;;  %v12762_v28 = vld [vmem:[%s16523_s1 + $0x48] sm:$0xff]   ;;  %v1071_v30 = vrot.slane %v13540_v9, 1 }
  0x38   : > { %11039 = vmatprep.mubr.msk.bf16.mxu0 %vm226_vm0, %v13520_v59  ;;  %v13682_v59 = vld [vmem:[%s16523_s1 + $0x40] sm:$0xff]   ;;  %v1073_v9 = vrot.slane %v13548_v15, 1 }
  0x39   : > { %10951 = vmatprep.subr.bf16.mxu1 %v13682_v59 }
  0x3e   : > { %10896 = vmatmul.mubr.msk.bf16.gmra.mrb[16].mxu1 %vm226_vm0, %v13696_v34 }
  0x3f   : > { %11040 = vmatmul.mubr.msk.bf16.vlgmr.msra.gmra.mrb[0].mxu0 %vm226_vm0, %v13535_v6  ;;  %10899 = vmatprep.mubr.msk.bf16.mxu1 %vm226_vm0, %v13703_v43  ;;  %v549_v6 = vrot.slane %v547_v20, 1  ;;  %v13766_v20 = vsel %vm370_vm1, %v533_v8, %v537_v27  ;;  %v1064_v8 = vrot.slane %v13497_v39, 1 }
  0x40   : > { %11072 = vmatpush3.bf16.msra.mxu0 %v13595_v53  ;;  %11043 = vmatprep.mubr.msk.bf16.mxu0 %vm226_vm0, %v13557_v25  ;;  %v542_v53 = vshll.u32 %v13706_v51, 16  ;;  %v13745_v25 = vpack.c.bf16 %v321_v26, %v320_v21 }
  0x41   : > { %11073 = vmatprep.subr.bf16.mxu0 %v12753_v29 }
  0x42   : > { %v544_v47 = vrot.slane %v542_v53, 1  ;;  %v1606_v63 = vshrl.u32 %v13745_v25, 16  ;;  %v13763_v53 = vld [vmem:[%s16523_s1 + $0xc0] sm:$0xff]   ;;  %v1608_v26 = vshll.u32 %v13745_v25, 16 }
  0x44   : > { %11074 = vmatpush3.bf16.msra.mxu0 %v12753_v29  ;;  %v552_v29 = vshrl.u32 %v13716_v58, 16  ;;  %v545_v19 = vor.u32 %v544_v47, %v540_v46  ;;  %v1610_v40 = vrot.slane %v1608_v26, 1  ;;  %v1613_v46 = vshll.u32 %v13794_v36, 16  ;;  %v12763_v47 = vld [vmem:[%s16523_s1 + $0x50] sm:$0xff]  }
  0x45   : > { %11075 = vmatprep.subr.bf16.mxu0 %v12757_v3 }
  0x46   : > { %10900 = vmatmul.mubr.msk.bf16.gmra.mrb[20].mxu1 %vm226_vm0, %v13737_v31  ;;  %v13769_v21 = vsel %vm370_vm1, %v545_v19, %v549_v6  ;;  %v557_v6 = vor.u32 %v556_v61, %v552_v29  ;;  %v1611_v29 = vor.u32 %v1610_v40, %v1606_v63 }
  0x47   : > { %11044 = vmatmul.mubr.msk.bf16.gmra.mrb[4].mxu0 %vm226_vm0, %v13567_v35  ;;  %10903 = vmatprep.mubr.msk.bf16.mxu1 %vm226_vm0, %v13742_v41 }
  0x48   : > { %11047 = vmatprep.mubr.msk.bf16.mxu0 %vm226_vm0, %v13607_v0  ;;  %11076 = vmatpush3.bf16.msra.mxu0 %v12757_v3  ;;  %v1058_v3 = vrot.slane %v13470_v16, 1  ;;  %v13783_v27 = vsel %vm370_vm1, %v557_v6, %v561_v14  ;;  %v1065_v14 = vrot.slane %v13502_v44, 1  ;;  %v16532_v44 = vrot.slane %v13491_v32, 1 }
  0x49   : > { %11077 = vmatprep.subr.bf16.mxu0 %v12758_v60  ;;  %v1068_v32 = vrot.slane %v13522_v62, 1  ;;  %v1070_v6 = vrot.slane %v13531_v4, 1  ;;  %v12766_v62 = vld [vmem:[%s16523_s1 + $0xd8] sm:$0xff]  }
  0x4a   : > { %v13859_v26 = vsel %vm1054_vm2, %v1064_v8, %v1065_v14  ;;  %v1056_v8 = vrot.slane %v13465_v12, 1  ;;  %v1082_v14 = vrot.slane %v13610_v5, 1  ;;  %v1086_v12 = vrot.slane %v13633_v24, 1 }
  0x4b   : > { %v13881_v40 = vsel %vm1054_vm2, %v1070_v6, %v1071_v30  ;;  %v1091_v24 = vrot.slane %v13656_v52, 1 }
  0x4c   : > { %11078 = vmatpush3.bf16.msra.mxu0 %v12758_v60  ;;  %v1059_v60 = vrot.slane %v13472_v17, 1  ;;  %v12761_v17 = vld [vmem:[%s16523_s1 + $0xc8] sm:$0xff]  }
  0x4d   : > { %11111 = vmatprep.subr.bf16.mxu0 %v13763_v53 }
  0x4e   : > { %10904 = vmatmul.mubr.msk.bf16.gmra.mrb[24].mxu1 %vm226_vm0, %v13766_v20  ;;  %v13840_v19 = vsel %vm1054_vm2, %v1058_v3, %v1059_v60  ;;  %v1067_v3 = vrot.slane %v13513_v55, 1 }
  0x4f   : > { %11048 = vmatmul.mubr.msk.bf16.gmra.mrb[8].mxu0 %vm226_vm0, %v13613_v7  ;;  %10907 = vmatprep.mubr.msk.bf16.mxu1 %vm226_vm0, %v13769_v21 }
  0x50   : > { %11051 = vmatprep.mubr.msk.bf16.mxu0 %vm226_vm0, %v13648_v45 }
  0x56   : > { %10908 = vmatmul.mubr.msk.bf16.gmra.mrb[28].mxu1 %vm226_vm0, %v13783_v27 }
  0x57   : > { %11052 = vmatmul.mubr.msk.bf16.gmra.mrb[12].mxu0 %vm226_vm0, %v13654_v49  ;;  %10919 = vmatprep.mubr.msk.bf16.mxu1 %vm226_vm0, %v13463_v11 }
  0x58   : > { %11055 = vmatprep.mubr.msk.bf16.mxu0 %vm226_vm0, %v13696_v34 }
  0x5e   : > { %10920 = vmatmul.mubr.msk.bf16.vlgmr.msra.gmra.mrb[0].mxu1 %vm226_vm0, %v13470_v16  ;;  %v12764_v16 = vld [vmem:[%s16523_s1 + $0x58] sm:$0xff]  }
  0x5f   : > { %11056 = vmatmul.mubr.msk.bf16.gmra.mrb[16].mxu0 %vm226_vm0, %v13703_v43  ;;  %10923 = vmatprep.mubr.msk.bf16.mxu1 %vm226_vm0, %v13479_v23 }
  0x60   : > { %11059 = vmatprep.mubr.msk.bf16.mxu0 %vm226_vm0, %v13737_v31  ;;  %10952 = vmatpush3.bf16.msra.mxu1 %v13682_v59  ;;  %v1615_v59 = vrot.slane %v1613_v46, 1  ;;  %v1074_v46 = vrot.slane %v13553_v22, 1  ;;  %v1079_v22 = vrot.slane %v13570_v38, 1 }
  0x61   : > { %10953 = vmatprep.subr.bf16.mxu1 %v12762_v28 }
  0x62   : > { %v13834_v61 = vsel %vm370_vm1, %v1611_v29, %v1615_v59  ;;  %v13901_v59 = vld [vmem:[%s16523_s1 + $0xe0] sm:$0xff]   ;;  %v13904_v60 = vsel %vm1054_vm2, %v1073_v9, %v1074_v46  ;;  %v13372_v9 = vld [vmem:[%s16523_s1 + $0x68] sm:$0xff]  }
  0x64   : > { %10954 = vmatpush3.bf16.msra.mxu1 %v12762_v28  ;;  %v12765_v28 = vld [vmem:[%s16523_s1 + $0xd0] sm:$0xff]  }
  0x65   : > { %10955 = vmatprep.subr.bf16.mxu1 %v12763_v47 }
  0x66   : > { %10924 = vmatmul.mubr.msk.bf16.gmra.mrb[4].mxu1 %vm226_vm0, %v13497_v39 }
  0x67   : > { %11060 = vmatmul.mubr.msk.bf16.gmra.mrb[20].mxu0 %vm226_vm0, %v13742_v41  ;;  %10927 = vmatprep.mubr.msk.bf16.mxu1 %vm226_vm0, %v13513_v55 }
  0x68   : > { %11063 = vmatprep.mubr.msk.bf16.mxu0 %vm226_vm0, %v13766_v20  ;;  %10956 = vmatpush3.bf16.msra.mxu1 %v12763_v47  ;;  %v1076_v47 = vrot.slane %v13563_v33, 1 }
  0x69   : > { %10957 = vmatprep.subr.bf16.mxu1 %v12764_v16 }
  0x6c   : > { %10958 = vmatpush3.bf16.msra.mxu1 %v12764_v16  ;;  %v1077_v16 = vrot.slane %v13580_v42, 1  ;;  %v1080_v42 = vrot.slane %v13588_v50, 1  ;;  %v1088_v50 = vrot.slane %v13651_v48, 1 }
  0x6d   : > { %11951 = vmatprep.subr.bf16.mxu1 %v13430_v1  ;;  %v1061_v1 = vrot.slane %v13479_v23, 1 }
  0x6e   : > { %10928 = vmatmul.mubr.msk.bf16.gmra.mrb[8].mxu1 %vm226_vm0, %v13531_v4  ;;  %v13907_v29 = vsel %vm1054_vm2, %v1076_v47, %v1077_v16  ;;  %v1098_v16 = vrot.slane %v13710_v57, 1  ;;  %v1848_v57 = vrot.slane %v13745_v25, 1 }
  0x6f   : > { %11064 = vmatmul.mubr.msk.bf16.gmra.mrb[24].mxu0 %vm226_vm0, %v13769_v21  ;;  %10931 = vmatprep.mubr.msk.bf16.mxu1 %vm226_vm0, %v13548_v15  ;;  %v13856_v63 = vsel %vm1054_vm2, %v1061_v1, %v16532_v44  ;;  %v1055_v1 = vrot.slane %v13463_v11, 1  ;;  %v13925_v44 = vsel %vm1054_vm2, %v1079_v22, %v1080_v42  ;;  %v1085_v11 = vrot.slane %v13616_v13, 1 }
  0x70   : > { %11067 = vmatprep.mubr.msk.bf16.mxu0 %vm226_vm0, %v13783_v27  ;;  %v1100_v22 = vrot.slane %v13716_v58, 1  ;;  %v1101_v42 = vrot.slane %v13722_v2, 1  ;;  %v1849_v2 = vrot.slane %v13794_v36, 1  ;;  %v12770_v36 = vld [vmem:[%s16523_s1 + $0xf8] sm:$0xff]  }
  0x71   : > { %v13943_v6 = vsel %vm1054_vm2, %v1085_v11, %v1086_v12 }
  0x76   : > { %10932 = vmatmul.mubr.msk.bf16.gmra.mrb[12].mxu1 %vm226_vm0, %v13563_v33 }
  0x77   : > { %11068 = vmatmul.mubr.msk.bf16.gmra.mrb[28].mxu0 %vm226_vm0, %v13834_v61  ;;  %10935 = vmatprep.mubr.msk.bf16.mxu1 %vm226_vm0, %v13570_v38 }
  0x78   : > { %11079 = vmatprep.mubr.msk.bf16.mxu0 %vm226_vm0, %v13840_v19 }
  0x7e   : > { %10936 = vmatmul.mubr.msk.bf16.gmra.mrb[16].mxu1 %vm226_vm0, %v13610_v5 }
  0x7f   : > { %11080 = vmatmul.mubr.msk.bf16.vlgmr.msra.gmra.mrb[0].mxu0 %vm226_vm0, %v13856_v63  ;;  %10939 = vmatprep.mubr.msk.bf16.mxu1 %vm226_vm0, %v13616_v13 }
  0x80   : > { %11112 = vmatpush3.bf16.msra.mxu0 %v13763_v53  ;;  %11083 = vmatprep.mubr.msk.bf16.mxu0 %vm226_vm0, %v13859_v26  ;;  %v13878_v53 = vsel %vm1054_vm2, %v1067_v3, %v1068_v32  ;;  %v1057_v3 = vsel %vm1054_vm2, %v1055_v1, %v1056_v8  ;;  %v13374_v1 = vld [vmem:[%s16523_s1 + $0x78] sm:$0xff]  }
  0x81   : > { %11113 = vmatprep.subr.bf16.mxu0 %v12761_v17 }
  0x84   : > { %11114 = vmatpush3.bf16.msra.mxu0 %v12761_v17  ;;  %v1083_v17 = vrot.slane %v13626_v18, 1  ;;  %v1089_v18 = vrot.slane %v13661_v56, 1  ;;  %v1092_v56 = vrot.slane %v13675_v10, 1  ;;  %v13373_v10 = vld [vmem:[%s16523_s1 + $0x70] sm:$0xff]  }
  0x85   : > { %11115 = vmatprep.subr.bf16.mxu0 %v12765_v28 }
  0x86   : > { %10940 = vmatmul.mubr.msk.bf16.gmra.mrb[20].mxu1 %vm226_vm0, %v13651_v48  ;;  %v13929_v32 = vsel %vm1054_vm2, %v1082_v14, %v1083_v17  ;;  %v13946_v30 = vsel %vm1054_vm2, %v1088_v50, %v1089_v18  ;;  %v13967_v46 = vsel %vm1054_vm2, %v1091_v24, %v1092_v56  ;;  %v13994_v14 = vsel %vm1054_vm2, %v1100_v22, %v1101_v42  ;;  %v12775_v22 = vld [vmem:[%s16523_s1 + $0x140] sm:$0xff]  }
  0x87   : > { %11084 = vmatmul.mubr.msk.bf16.gmra.mrb[4].mxu0 %vm226_vm0, %v13878_v53  ;;  %10943 = vmatprep.mubr.msk.bf16.mxu1 %vm226_vm0, %v13656_v52  ;;  %v14007_v17 = vsel %vm1054_vm2, %v1848_v57, %v1849_v2 }
  0x88   : > { %11087 = vmatprep.mubr.msk.bf16.mxu0 %vm226_vm0, %v13881_v40  ;;  %11116 = vmatpush3.bf16.msra.mxu0 %v12765_v28  ;;  %v1094_v28 = vrot.slane %v13698_v37, 1 }
  0x89   : > { %11117 = vmatprep.subr.bf16.mxu0 %v12766_v62 }
  0x8c   : > { %11118 = vmatpush3.bf16.msra.mxu0 %v12766_v62  ;;  %v1095_v62 = vrot.slane %v13708_v54, 1  ;;  %v1097_v54 = vrot.slane %v13706_v51, 1 }
  0x8d   : > { %11151 = vmatprep.subr.bf16.mxu0 %v13901_v59 }
  0x8e   : > { %10944 = vmatmul.mubr.msk.bf16.gmra.mrb[24].mxu1 %vm226_vm0, %v13698_v37  ;;  %v13970_v47 = vsel %vm1054_vm2, %v1094_v28, %v1095_v62  ;;  %v13991_v8 = vsel %vm1054_vm2, %v1097_v54, %v1098_v16 }
  0x8f   : > { %11088 = vmatmul.mubr.msk.bf16.gmra.mrb[8].mxu0 %vm226_vm0, %v13904_v60  ;;  %10947 = vmatprep.mubr.msk.bf16.mxu1 %vm226_vm0, %v13706_v51 }
  0x90   : > { %11091 = vmatprep.mubr.msk.bf16.mxu0 %vm226_vm0, %v13907_v29 }
  0x96   : > { %10948 = vmatmul.mubr.msk.bf16.gmra.mrb[28].mxu1 %vm226_vm0, %v13716_v58 }
  0x97   : > { %11092 = vmatmul.mubr.msk.bf16.gmra.mrb[12].mxu0 %vm226_vm0, %v13925_v44  ;;  %10959 = vmatprep.mubr.msk.bf16.mxu1 %vm226_vm0, %v1057_v3  ;;  %v12768_v3 = vld [vmem:[%s16523_s1 + $0xe8] sm:$0xff]  }
  0x98   : > { %11095 = vmatprep.mubr.msk.bf16.mxu0 %vm226_vm0, %v13929_v32 }
  0x9e   : > { %10960 = vmatmul.mubr.msk.bf16.vlgmr.msra.gmra.mrb[0].mxu1 %vm226_vm0, %v13840_v19  ;;  %v13371_v19 = vld [vmem:[%s16523_s1 + $0x60] sm:$0xff]  }
  0x9f   : > { %11096 = vmatmul.mubr.msk.bf16.gmra.mrb[16].mxu0 %vm226_vm0, %v13943_v6  ;;  %10963 = vmatprep.mubr.msk.bf16.mxu1 %vm226_vm0, %v13856_v63 }
  0xa0   : > { %11099 = vmatprep.mubr.msk.bf16.mxu0 %vm226_vm0, %v13946_v30  ;;  %11955 = vmatpush3.bf16.msra.mxu1 %v13371_v19 }
  0xa1   : > { %11952 = vmatprep.subr.bf16.mxu1 %v13372_v9 }
  0xa4   : > { %11956 = vmatpush3.bf16.msra.mxu1 %v13372_v9 }
  0xa5   : > { %11953 = vmatprep.subr.bf16.mxu1 %v13373_v10 }
  0xa6   : > { %10964 = vmatmul.mubr.msk.bf16.gmra.mrb[4].mxu1 %vm226_vm0, %v13859_v26 }
  0xa7   : > { %11100 = vmatmul.mubr.msk.bf16.gmra.mrb[20].mxu0 %vm226_vm0, %v13967_v46  ;;  %10967 = vmatprep.mubr.msk.bf16.mxu1 %vm226_vm0, %v13878_v53 }
  0xa8   : > { %11103 = vmatprep.mubr.msk.bf16.mxu0 %vm226_vm0, %v13970_v47  ;;  %11957 = vmatpush3.bf16.msra.mxu1 %v13373_v10 }
  0xa9   : > { %11954 = vmatprep.subr.bf16.mxu1 %v13374_v1 }
  0xac   : > { %11958 = vmatpush3.bf16.msra.mxu1 %v13374_v1  ;;  %v14219_v1 = vld [vmem:[%s16524_s2] ss:$0 sm:$0xff] }
  0xad   : > { %11231 = vmatprep.subr.bf16.mxu1 %v12775_v22 }
  0xae   : > { %10968 = vmatmul.mubr.msk.bf16.gmra.mrb[8].mxu1 %vm226_vm0, %v13881_v40 }
  0xaf   : > { %11104 = vmatmul.mubr.msk.bf16.gmra.mrb[24].mxu0 %vm226_vm0, %v13991_v8  ;;  %10971 = vmatprep.mubr.msk.bf16.mxu1 %vm226_vm0, %v13904_v60 }
  0xb0   : > { %11107 = vmatprep.mubr.msk.bf16.mxu0 %vm226_vm0, %v13994_v14 }
  0xb6   : > { %10972 = vmatmul.mubr.msk.bf16.gmra.mrb[12].mxu1 %vm226_vm0, %v13907_v29 }
  0xb7   : > { %11108 = vmatmul.mubr.msk.bf16.gmra.mrb[28].mxu0 %vm226_vm0, %v14007_v17  ;;  %10975 = vmatprep.mubr.msk.bf16.mxu1 %vm226_vm0, %v13925_v44 }
  0xb8   : > { %11119 = vmatprep.mubr.msk.bf16.mxu0 %vm226_vm0, %v13479_v23  ;;  %v12769_v23 = vld [vmem:[%s16523_s1 + $0xf0] sm:$0xff]  }
  0xbe   : > { %10976 = vmatmul.mubr.msk.bf16.gmra.mrb[16].mxu1 %vm226_vm0, %v13929_v32 }
  0xbf   : > { %11120 = vmatmul.mubr.msk.bf16.vlgmr.msra.gmra.mrb[0].mxu0 %vm226_vm0, %v13497_v39  ;;  %10979 = vmatprep.mubr.msk.bf16.mxu1 %vm226_vm0, %v13943_v6  ;;  %v12771_v39 = vld [vmem:[%s16523_s1 + $0x100] sm:$0xff]  }
  0xc0   : > { %11152 = vmatpush3.bf16.msra.mxu0 %v13901_v59  ;;  %11123 = vmatprep.mubr.msk.bf16.mxu0 %vm226_vm0, %v13513_v55  ;;  %v323_v55 = vld [vmem:[%s13455_s12 + $0x198] sm:$0xff] }
  0xc1   : > { %11153 = vmatprep.subr.bf16.mxu0 %v12768_v3 }
  0xc4   : > { %11154 = vmatpush3.bf16.msra.mxu0 %v12768_v3 }
  0xc5   : > { %11155 = vmatprep.subr.bf16.mxu0 %v12769_v23 }
  0xc6   : > { %10980 = vmatmul.mubr.msk.bf16.gmra.mrb[20].mxu1 %vm226_vm0, %v13946_v30 }
  0xc7   : > { %11124 = vmatmul.mubr.msk.bf16.gmra.mrb[4].mxu0 %vm226_vm0, %v13531_v4  ;;  %10983 = vmatprep.mubr.msk.bf16.mxu1 %vm226_vm0, %v13967_v46  ;;  %v324_v4 = vld [vmem:[%s13455_s12 + $0x1a0] sm:$0xff] }
  0xc8   : > { %11127 = vmatprep.mubr.msk.bf16.mxu0 %vm226_vm0, %v13548_v15  ;;  %11156 = vmatpush3.bf16.msra.mxu0 %v12769_v23  ;;  %v360_v15 = vpack.c.bf16 %v324_v4, %v323_v55 }
  0xc9   : > { %11157 = vmatprep.subr.bf16.mxu0 %v12770_v36 }
  0xcc   : > { %11158 = vmatpush3.bf16.msra.mxu0 %v12770_v36 }
  0xcd   : > { %11191 = vmatprep.subr.bf16.mxu0 %v12771_v39 }
  0xce   : > { %10984 = vmatmul.mubr.msk.bf16.gmra.mrb[24].mxu1 %vm226_vm0, %v13970_v47 }
  0xcf   : > { %11128 = vmatmul.mubr.msk.bf16.gmra.mrb[8].mxu0 %vm226_vm0, %v13563_v33  ;;  %10987 = vmatprep.mubr.msk.bf16.mxu1 %vm226_vm0, %v13991_v8  ;;  %v16533_v33 = vld [vmem:[#allocation3_spill] sm:$0xff] }
  0xd0   : > { %11131 = vmatprep.mubr.msk.bf16.mxu0 %vm226_vm0, %v13570_v38  ;;  %v12772_v38 = vld [vmem:[%s16523_s1 + $0x108] sm:$0xff]  }
  0xd6   : > { %10988 = vmatmul.mubr.msk.bf16.gmra.mrb[28].mxu1 %vm226_vm0, %v13994_v14 }
  0xd7   : > { %11132 = vmatmul.mubr.msk.bf16.gmra.mrb[12].mxu0 %vm226_vm0, %v13610_v5  ;;  %11015 = vmatprep.mubr.msk.bf16.mxu1 %vm226_vm0, %v13610_v5  ;;  %v16534_v5 = vld [vmem:[#allocation4_spill] sm:$0xff] }
  0xd8   : > { %11135 = vmatprep.mubr.msk.bf16.mxu0 %vm226_vm0, %v13616_v13 }
  0xde   : > { %11016 = vmatmul.mubr.msk.bf16.vlgmr.msra.gmra.mrb[16].mxu1 %vm226_vm0, %v13616_v13  ;;  %v12774_v13 = vld [vmem:[%s16523_s1 + $0x118] sm:$0xff]  }
  0xdf   : > { %11136 = vmatmul.mubr.msk.bf16.gmra.mrb[16].mxu0 %vm226_vm0, %v13651_v48  ;;  %11019 = vmatprep.mubr.msk.bf16.mxu1 %vm226_vm0, %v13651_v48 }
  0xe0   : > { %11139 = vmatprep.mubr.msk.bf16.mxu0 %vm226_vm0, %v13656_v52  ;;  %11232 = vmatpush3.bf16.msra.mxu1 %v12775_v22 }
  0xe6   : > { %11020 = vmatmul.mubr.msk.bf16.gmra.mrb[20].mxu1 %vm226_vm0, %v13656_v52 }
  0xe7   : > { %11140 = vmatmul.mubr.msk.bf16.gmra.mrb[20].mxu0 %vm226_vm0, %v13698_v37  ;;  %11023 = vmatprep.mubr.msk.bf16.mxu1 %vm226_vm0, %v13698_v37 }
  0xe8   : > { %11143 = vmatprep.mubr.msk.bf16.mxu0 %vm226_vm0, %v13706_v51 }
  0xee   : > { %11024 = vmatmul.mubr.msk.bf16.gmra.mrb[24].mxu1 %vm226_vm0, %v13706_v51 }
  0xef   : > { %11144 = vmatmul.mubr.msk.bf16.gmra.mrb[24].mxu0 %vm226_vm0, %v13716_v58  ;;  %11027 = vmatprep.mubr.msk.bf16.mxu1 %vm226_vm0, %v13716_v58 }
  0xf0   : > { %11147 = vmatprep.mubr.msk.bf16.mxu0 %vm226_vm0, %v13745_v25 }
  0xf6   : > { %11028 = vmatmul.mubr.msk.bf16.gmra.mrb[28].mxu1 %vm226_vm0, %v13745_v25  ;;  %v12773_v25 = vld [vmem:[%s16523_s1 + $0x110] sm:$0xff]  }
  0xf7   : > { %11148 = vmatmul.mubr.msk.bf16.gmra.mrb[28].mxu0 %vm226_vm0, %v360_v15 }
  0xf8   : > { %11159 = vmatprep.mubr.msk.bf16.mxu0 %vm226_vm0, %v16533_v33 }
  0xff   : > { %11160 = vmatmul.mubr.msk.bf16.vlgmr.msra.gmra.mrb[0].mxu0 %vm226_vm0, %v16534_v5 }
 0x100   : > { %11192 = vmatpush3.bf16.msra.mxu0 %v12771_v39  ;;  %11163 = vmatprep.mubr.msk.bf16.mxu0 %vm226_vm0, %v13567_v35  ;;  %v325_v35 = vld [vmem:[%s13455_s12 + $0x1a8] sm:$0x3] }
 0x101   : > { %11193 = vmatprep.subr.bf16.mxu0 %v12772_v38 }
 0x104   : > { %11194 = vmatpush3.bf16.msra.mxu0 %v12772_v38 }
 0x105   : > { %11195 = vmatprep.subr.bf16.mxu0 %v12773_v25 }
 0x107   : > { %11164 = vmatmul.mubr.msk.bf16.gmra.mrb[4].mxu0 %vm226_vm0, %v13607_v0  ;;  %v361_v0 = vpack.c.bf16 %v325_v35, %v325_v35 }
 0x108   : > { %11167 = vmatprep.mubr.msk.bf16.mxu0 %vm226_vm0, %v13613_v7  ;;  %11196 = vmatpush3.bf16.msra.mxu0 %v12773_v25  ;;  %v2311_v7 = vshll.u32 %v360_v15, 16 }
 0x109   : > { %11197 = vmatprep.subr.bf16.mxu0 %v12774_v13  ;;  %v2552_v51 = vrot.slane %v361_v0, 1 }
 0x10a   : > { %v2313_v48 = vrot.slane %v2311_v7, 1 }
 0x10c   : > { %11198 = vmatpush3.bf16.msra.mxu0 %v12774_v13 }
 0x10f   : > { %11168 = vmatmul.mubr.msk.bf16.gmra.mrb[8].mxu0 %vm226_vm0, %v13648_v45  ;;  %v2309_v45 = vshrl.u32 %v360_v15, 16 }
 0x110   : > { %11171 = vmatprep.mubr.msk.bf16.mxu0 %vm226_vm0, %v13654_v49  ;;  %v2316_v49 = vshll.u32 %v361_v0, 16 }
 0x111   : > { %v2314_v52 = vor.u32 %v2313_v48, %v2309_v45 }
 0x117   : > { %11172 = vmatmul.mubr.msk.bf16.gmra.mrb[12].mxu0 %vm226_vm0, %v13696_v34  ;;  %v2318_v34 = vrot.slane %v2316_v49, 1 }
 0x118   : > { %11175 = vmatprep.mubr.msk.bf16.mxu0 %vm226_vm0, %v13703_v43  ;;  %v2551_v43 = vrot.slane %v360_v15, 1 }
 0x119   : > { %v2319_v37 = vsel %vm370_vm1, %v2314_v52, %v2318_v34 }
 0x11f   : > { %11176 = vmatmul.mubr.msk.bf16.gmra.mrb[16].mxu0 %vm226_vm0, %v13737_v31 }
 0x120   : > { %11179 = vmatprep.mubr.msk.bf16.mxu0 %vm226_vm0, %v13742_v41 }
 0x127   : > { %11180 = vmatmul.mubr.msk.bf16.gmra.mrb[20].mxu0 %vm226_vm0, %v13766_v20  ;;  %v2553_v20 = vsel %vm1054_vm2, %v2551_v43, %v2552_v51 }
 0x128   : > { %11183 = vmatprep.mubr.msk.bf16.mxu0 %vm226_vm0, %v13769_v21 }
 0x12f   : > { %11184 = vmatmul.mubr.msk.bf16.gmra.mrb[24].mxu0 %vm226_vm0, %v13783_v27 }
 0x130   : > { %11187 = vmatprep.mubr.msk.bf16.mxu0 %vm226_vm0, %v13834_v61 }
 0x137   : > { %11188 = vmatmul.mubr.msk.bf16.gmra.mrb[28].mxu0 %vm226_vm0, %v2319_v37 }
 0x138   : > { %11199 = vmatprep.mubr.msk.bf16.mxu0 %vm226_vm0, %v13856_v63 }
 0x13f   : > { %11200 = vmatmul.mubr.msk.bf16.vlgmr.msra.gmra.mrb[0].mxu0 %vm226_vm0, %v13859_v26 }
 0x140   : > { %11203 = vmatprep.mubr.msk.bf16.mxu0 %vm226_vm0, %v13878_v53 }
 0x147   : > { %11204 = vmatmul.mubr.msk.bf16.gmra.mrb[4].mxu0 %vm226_vm0, %v13881_v40 }
 0x148   : > { %11207 = vmatprep.mubr.msk.bf16.mxu0 %vm226_vm0, %v13904_v60 }
 0x14f   : > { %11208 = vmatmul.mubr.msk.bf16.gmra.mrb[8].mxu0 %vm226_vm0, %v13907_v29 }
 0x150   : > { %11211 = vmatprep.mubr.msk.bf16.mxu0 %vm226_vm0, %v13925_v44 }
 0x157   : > { %11212 = vmatmul.mubr.msk.bf16.gmra.mrb[12].mxu0 %vm226_vm0, %v13929_v32 }
 0x158   : > { %11215 = vmatprep.mubr.msk.bf16.mxu0 %vm226_vm0, %v13943_v6 }
 0x15f   : > { %11216 = vmatmul.mubr.msk.bf16.gmra.mrb[16].mxu0 %vm226_vm0, %v13946_v30 }
 0x160   : > { %11219 = vmatprep.mubr.msk.bf16.mxu0 %vm226_vm0, %v13967_v46 }
 0x167   : > { %11220 = vmatmul.mubr.msk.bf16.gmra.mrb[20].mxu0 %vm226_vm0, %v13970_v47 }
 0x168   : > { %11223 = vmatprep.mubr.msk.bf16.mxu0 %vm226_vm0, %v13991_v8 }
 0x16f   : > { %11224 = vmatmul.mubr.msk.bf16.gmra.mrb[24].mxu0 %vm226_vm0, %v13994_v14 }
 0x170   : > { %11227 = vmatprep.mubr.msk.bf16.mxu0 %vm226_vm0, %v14007_v17 }
 0x171   : > { %v10961_v58 = vpop.f32.mrb[0].mxu1 }
 0x172   : > { %v1218_v31 = vpop.f32.mrb[1].mxu1 }
 0x173   : > { %v10962_v41 = vpop.f32.mrb[2].mxu1 }
 0x174   : > { %v1221_v21 = vpop.f32.mrb[3].mxu1 }
 0x177   : > { %11228 = vmatmul.mubr.msk.bf16.gmra.mrb[28].mxu0 %vm226_vm0, %v2553_v20 }
 0x179   : > { %v10965_v27 = vpop.f32.mrb[4].mxu1 }
 0x17a   : > { %v1234_v61 = vpop.f32.mrb[5].mxu1 }
 0x17b   : > { %v10966_v63 = vpop.f32.mrb[6].mxu1 }
 0x17c   : > { %v1237_v26 = vpop.f32.mrb[7].mxu1 }
 0x181   : > { %v14165_v53 = vpop.f32.mrb[8].mxu1 }
 0x182   : > { %v14167_v40 = vpop.f32.mrb[9].mxu1 }
 0x183   : > { %v14169_v59 = vpop.f32.mrb[10].mxu1 }
 0x184   : > { %v14171_v60 = vpop.f32.mrb[11].mxu1 }
 0x189   : > { %v14173_v29 = vpop.f32.mrb[12].mxu1 }
 0x18a   : > { %v14175_v44 = vpop.f32.mrb[13].mxu1 }
 0x18b   : > { %v14177_v32 = vpop.f32.mrb[14].mxu1 }
 0x18c   : > { %v14179_v11 = vpop.f32.mrb[15].mxu1 }
 0x1b1   : > { %v14181_v12 = vpop.f32.mrb[16].mxu1 }
 0x1b2   : > { %v14183_v50 = vpop.f32.mrb[17].mxu1 }
 0x1b3   : > { %v14185_v18 = vpop.f32.mrb[18].mxu1 }
 0x1b4   : > { %v14187_v6 = vpop.f32.mrb[19].mxu1 }
 0x1b9   : > { %v14189_v30 = vpop.f32.mrb[20].mxu1 }
 0x1ba   : > { %v14191_v24 = vpop.f32.mrb[21].mxu1 }
 0x1bb   : > { %v14193_v56 = vpop.f32.mrb[22].mxu1 }
 0x1bc   : > { %v14195_v28 = vpop.f32.mrb[23].mxu1 }
 0x1c1   : > { %v14197_v62 = vpop.f32.mrb[24].mxu1 }
 0x1c2   : > { %v14199_v19 = vpop.f32.mrb[25].mxu1 }
 0x1c3   : > { %v14201_v9 = vpop.f32.mrb[26].mxu1 }
 0x1c4   : > { %v14203_v46 = vpop.f32.mrb[27].mxu1 }
 0x1c9   : > { %v14205_v47 = vpop.f32.mrb[28].mxu1 }
 0x1ca   : > { %v14207_v10 = vpop.f32.mrb[29].mxu1 }
 0x1cb   : > { %v14209_v54 = vpop.f32.mrb[30].mxu1 }
 0x1cc   : > { %v14211_v16 = vpop.f32.mrb[31].mxu1 }
 0x212   : > { %v11201_v42 = vpop.f32.mrb[0].mxu0 }
 0x213   : > { %v11959_v8 = vadd.f32 %v11201_v42, %v10961_v58  ;;  %v2624_v14 = vpop.f32.mrb[1].mxu0 }
 0x214   : > { %v11960_v57 = vadd.f32 %v2624_v14, %v1218_v31  ;;  %v11202_v2 = vpop.f32.mrb[2].mxu0 }
 0x215   : > { %v14222_v17 = vadd.f32 %v11959_v8, %v14219_v1  ;;  %v11961_v3 = vadd.f32 %v11202_v2, %v10962_v41  ;;  %v2627_v23 = vpop.f32.mrb[3].mxu0 }
 0x216   : > { %v14225_v36 = vadd.f32 %v11960_v57, %v14219_v1  ;;  %v11962_v39 = vadd.f32 %v2627_v23, %v1221_v21 }
 0x217   : > { %v2824_v55 = vsub.f32 0.0, %v14222_v17  ;;  %v14229_v4 = vadd.f32 %v11961_v3, %v14219_v1 }
 0x218   : > { %v2822_v15 = vsub.f32 0.0, %v14225_v36  ;;  %v14233_v33 = vadd.f32 %v11962_v39, %v14219_v1 }
 0x219   : > { %v2858_v38 = vmul.f32 1.442695, %v2824_v55  ;;  %v2825_v5 = vsub.f32 0.0, %v14229_v4 }
 0x21a   : > { %v2854_v25 = vmul.f32 1.442695, %v2822_v15  ;;  %v2823_v13 = vsub.f32 0.0, %v14233_v33  ;;  %v11205_v35 = vpop.f32.mrb[4].mxu0 }
 0x21b   : > { %12859 = vpow2.f32 %v2858_v38  ;;  %v2860_v0 = vmul.f32 1.442695, %v2825_v5  ;;  %v11963_v7 = vadd.f32 %v11205_v35, %v10965_v27  ;;  %v2640_v45 = vpop.f32.mrb[5].mxu0 }
 0x21c   : > { %12861 = vpow2.f32 %v2854_v25  ;;  %v2856_v48 = vmul.f32 1.442695, %v2823_v13  ;;  %v11964_v49 = vadd.f32 %v2640_v45, %v1234_v61  ;;  %v11206_v52 = vpop.f32.mrb[6].mxu0 }
 0x21d   : > { %12863 = vpow2.f32 %v2860_v0  ;;  %v14238_v34 = vadd.f32 %v11963_v7, %v14219_v1  ;;  %v11965_v37 = vadd.f32 %v11206_v52, %v10966_v63  ;;  %v2643_v43 = vpop.f32.mrb[7].mxu0 }
 0x21e   : > { %12865 = vpow2.f32 %v2856_v48  ;;  %v14241_v51 = vadd.f32 %v11964_v49, %v14219_v1  ;;  %v11966_v58 = vadd.f32 %v2643_v43, %v1237_v26  ;;  %v12776_v49 = vld [vmem:[%s16523_s1 + $0x148] sm:$0xff]  }
 0x21f   : > { %v2828_v31 = vsub.f32 0.0, %v14238_v34  ;;  %v14245_v41 = vadd.f32 %v11965_v37, %v14219_v1  ;;  %11233 = vmatprep.subr.bf16.mxu1 %v12776_v49 }
 0x220   : > { %v2826_v20 = vsub.f32 0.0, %v14241_v51  ;;  %v14249_v21 = vadd.f32 %v11966_v58, %v14219_v1  ;;  %11234 = vmatpush3.bf16.msra.mxu1 %v12776_v49 }
 0x221   : > { %v2866_v27 = vmul.f32 1.442695, %v2828_v31  ;;  %v2829_v61 = vsub.f32 0.0, %v14245_v41 }
 0x222   : > { %v2862_v63 = vmul.f32 1.442695, %v2826_v20  ;;  %v2827_v22 = vsub.f32 0.0, %v14249_v21  ;;  %v11209_v42 = vpop.f32.mrb[8].mxu0 }
 0x223   : > { %12867 = vpow2.f32 %v2866_v27  ;;  %v2868_v8 = vmul.f32 1.442695, %v2829_v61  ;;  %v11967_v26 = vadd.f32 %v11209_v42, %v14165_v53  ;;  %v2656_v14 = vpop.f32.mrb[9].mxu0 }
 0x224   : > { %12869 = vpow2.f32 %v2862_v63  ;;  %v2864_v57 = vmul.f32 1.442695, %v2827_v22  ;;  %v11968_v2 = vadd.f32 %v2656_v14, %v14167_v40  ;;  %v11210_v3 = vpop.f32.mrb[10].mxu0  ;;  %v13383_v63 = vmov 0.0  }
 0x225   : > { %v12860_v23 = vpop.eup %12859  ;;  %12871 = vpow2.f32 %v2868_v8  ;;  %v14256_v39 = vadd.f32 %v11967_v26, %v14219_v1  ;;  %v11969_v55 = vadd.f32 %v11210_v3, %v14169_v59  ;;  %v2659_v15 = vpop.f32.mrb[11].mxu0  ;;  %227 = vst.msk [vmem:[#allocation2] sm:$0xff] %vm226_vm0, %v13383_v63  ;;  %228 = vst.msk [vmem:[#allocation2 + $0x8] sm:$0xff] %vm226_vm0, %v13383_v63 }
 0x226   : > { %v12862_v38 = vpop.eup %12861  ;;  %v2920_v5 = vadd.f32 1.0, %v12860_v23  ;;  %12873 = vpow2.f32 %v2864_v57  ;;  %v14260_v25 = vadd.f32 %v11968_v2, %v14219_v1  ;;  %v11970_v53 = vadd.f32 %v2659_v15, %v14171_v60  ;;  %232 = vst.msk [vmem:[#allocation2 + $0x198] sm:$0xff] %vm226_vm0, %v13383_v63  ;;  %233 = vst.msk [vmem:[#allocation2 + $0x1a0] sm:$0xff] %vm226_vm0, %v13383_v63  ;;  %v12777_v57 = vld [vmem:[%s16523_s1 + $0x150] sm:$0xff]  }
 0x227   : > { %v12864_v13 = vpop.eup %12863  ;;  %v2918_v35 = vadd.f32 1.0, %v12862_v38  ;;  %v2832_v40 = vsub.f32 0.0, %v14256_v39  ;;  %v14265_v0 = vadd.f32 %v11969_v55, %v14219_v1  ;;  %236 = vst.msk [vmem:[#allocation2] sm:$0x1] %vm235_vm3, %v13383_v63  ;;  %237 = vst.msk [vmem:[#allocation2 + $0x18] sm:$0x1] %vm235_vm3, %v13383_v63  ;;  %11235 = vmatprep.subr.bf16.mxu1 %v12777_v57 }
 0x228   : > { %v12866_v7 = vpop.eup %12865  ;;  %12875 = vrcp.f32 %v2920_v5  ;;  %v2921_v45 = vadd.f32 1.0, %v12864_v13  ;;  %v2830_v59 = vsub.f32 0.0, %v14260_v25  ;;  %v14269_v48 = vadd.f32 %v11970_v53, %v14219_v1  ;;  %238 = vst.msk [vmem:[#allocation2 + $0x30] sm:$0x1] %vm235_vm3, %v13383_v63  ;;  %239 = vst.msk [vmem:[#allocation2 + $0x48] sm:$0x1] %vm235_vm3, %v13383_v63  ;;  %11236 = vmatpush3.bf16.msra.mxu1 %v12777_v57 }
 0x229   : > { %12877 = vrcp.f32 %v2918_v35  ;;  %v2919_v60 = vadd.f32 1.0, %v12866_v7  ;;  %v2874_v52 = vmul.f32 1.442695, %v2832_v40  ;;  %v2833_v37 = vsub.f32 0.0, %v14265_v0  ;;  %240 = vst.msk [vmem:[#allocation2 + $0x60] sm:$0x1] %vm235_vm3, %v13383_v63 }
 0x22a   : > { %12879 = vrcp.f32 %v2921_v45  ;;  %v2870_v43 = vmul.f32 1.442695, %v2830_v59  ;;  %v2831_v58 = vsub.f32 0.0, %v14269_v48  ;;  %v11213_v31 = vpop.f32.mrb[12].mxu0  ;;  %241 = vst.msk [vmem:[#allocation2 + $0x78] sm:$0x1] %vm235_vm3, %v13383_v63 }
 0x22b   : > { %12881 = vrcp.f32 %v2919_v60  ;;  %v2876_v20 = vmul.f32 1.442695, %v2833_v37  ;;  %v11971_v27 = vadd.f32 %v11213_v31, %v14173_v29  ;;  %v2672_v61 = vpop.f32.mrb[13].mxu0  ;;  %242 = vst.msk [vmem:[#allocation2 + $0x90] sm:$0x1] %vm235_vm3, %v13383_v63 }
 0x22c   : > { %12883 = vpow2.f32 %v2874_v52  ;;  %v2872_v22 = vmul.f32 1.442695, %v2831_v58  ;;  %v11972_v29 = vadd.f32 %v2672_v61, %v14175_v44  ;;  %v11214_v42 = vpop.f32.mrb[14].mxu0  ;;  %243 = vst.msk [vmem:[#allocation2 + $0xa8] sm:$0x1] %vm235_vm3, %v13383_v63 }
 0x22d   : > { %244 = vst.msk [vmem:[#allocation2 + $0xc0] sm:$0x1] %vm235_vm3, %v13383_v63  ;;  %245 = vst.msk [vmem:[#allocation2 + $0xd8] sm:$0x1] %vm235_vm3, %v13383_v63  ;;  %v12868_v44 = vpop.eup %12867  ;;  %12885 = vpow2.f32 %v2870_v43  ;;  %v14355_v8 = vadd.f32 %v11971_v27, %v14219_v1  ;;  %v11973_v26 = vadd.f32 %v11214_v42, %v14177_v32  ;;  %v2675_v14 = vpop.f32.mrb[15].mxu0 }
 0x22e   : > { %246 = vst.msk [vmem:[#allocation2 + $0xf0] sm:$0x1] %vm235_vm3, %v13383_v63  ;;  %247 = vst.msk [vmem:[#allocation2 + $0x108] sm:$0x1] %vm235_vm3, %v13383_v63  ;;  %v12870_v2 = vpop.eup %12869  ;;  %v2924_v3 = vadd.f32 1.0, %v12868_v44  ;;  %12887 = vpow2.f32 %v2876_v20  ;;  %v14362_v23 = vadd.f32 %v11972_v29, %v14219_v1  ;;  %v11974_v55 = vadd.f32 %v2675_v14, %v14179_v11  ;;  %v3175_v57 = vld [vmem:[#allocation2] sm:$0xff] }
 0x22f   : > { %248 = vst.msk [vmem:[#allocation2 + $0x120] sm:$0x1] %vm235_vm3, %v13383_v63  ;;  %249 = vst.msk [vmem:[#allocation2 + $0x138] sm:$0x1] %vm235_vm3, %v13383_v63  ;;  %v12872_v15 = vpop.eup %12871  ;;  %v2922_v38 = vadd.f32 1.0, %v12870_v2  ;;  %12889 = vpow2.f32 %v2872_v22  ;;  %v2836_v5 = vsub.f32 0.0, %v14355_v8  ;;  %v14367_v32 = vadd.f32 %v11973_v26, %v14219_v1 }
 0x230   : > { %250 = vst.msk [vmem:[#allocation2 + $0x150] sm:$0x1] %vm235_vm3, %v13383_v63  ;;  %251 = vst.msk [vmem:[#allocation2 + $0x168] sm:$0x1] %vm235_vm3, %v13383_v63  ;;  %v12874_v53 = vpop.eup %12873  ;;  %12891 = vrcp.f32 %v2924_v3  ;;  %v2925_v13 = vadd.f32 1.0, %v12872_v15  ;;  %v2834_v35 = vsub.f32 0.0, %v14362_v23  ;;  %v14371_v40 = vadd.f32 %v11974_v55, %v14219_v1 }
 0x231   : > { %252 = vst.msk [vmem:[#allocation2 + $0x180] sm:$0x1] %vm235_vm3, %v13383_v63  ;;  %255 = vst.msk [vmem:[#allocation2 + $0x29] sm:$0x1] %vm235_vm3, %v13383_v63  ;;  %12893 = vrcp.f32 %v2922_v38  ;;  %v2923_v11 = vadd.f32 1.0, %v12874_v53  ;;  %v2837_v45 = vsub.f32 0.0, %v14367_v32 }
 0x232   : > { %256 = vst.msk [vmem:[#allocation2 + $0x41] sm:$0x1] %vm235_vm3, %v13383_v63  ;;  %257 = vst.msk [vmem:[#allocation2 + $0x59] sm:$0x1] %vm235_vm3, %v13383_v63  ;;  %v2882_v7 = vmul.f32 1.442695, %v2836_v5  ;;  %v12876_v59 = vpop.eup %12875  ;;  %12895 = vrcp.f32 %v2925_v13 }
 0x233   : > { %258 = vst.msk [vmem:[#allocation2 + $0x71] sm:$0x1] %vm235_vm3, %v13383_v63  ;;  %259 = vst.msk [vmem:[#allocation2 + $0x89] sm:$0x1] %vm235_vm3, %v13383_v63  ;;  %v2878_v49 = vmul.f32 1.442695, %v2834_v35  ;;  %v12878_v37 = vpop.eup %12877  ;;  %12897 = vrcp.f32 %v2923_v11  ;;  %3018 = vrot.lane.b32.xlu1 %v12876_v59, %s13384_s22 }
 0x234   : > { %260 = vst.msk [vmem:[#allocation2 + $0xa1] sm:$0x1] %vm235_vm3, %v13383_v63  ;;  %261 = vst.msk [vmem:[#allocation2 + $0xb9] sm:$0x1] %vm235_vm3, %v13383_v63  ;;  %v2835_v60 = vsub.f32 0.0, %v14371_v40  ;;  %v11217_v52 = vpop.f32.mrb[16].mxu0  ;;  %v12880_v20 = vpop.eup %12879  ;;  %12899 = vpow2.f32 %v2882_v7  ;;  %3014 = vrot.lane.b32.xlu0 %v12878_v37, %s13384_s22 }
 0x235   : > { %262 = vst.msk [vmem:[#allocation2 + $0xd1] sm:$0x1] %vm235_vm3, %v13383_v63  ;;  %263 = vst.msk [vmem:[#allocation2 + $0xe9] sm:$0x1] %vm235_vm3, %v13383_v63  ;;  %v2884_v43 = vmul.f32 1.442695, %v2837_v45  ;;  %v11975_v58 = vadd.f32 %v11217_v52, %v14181_v12  ;;  %v12882_v12 = vpop.eup %12881  ;;  %12901 = vpow2.f32 %v2878_v49 }
 0x236   : > { %264 = vst.msk [vmem:[#allocation2 + $0x101] sm:$0x1] %vm235_vm3, %v13383_v63  ;;  %265 = vst.msk [vmem:[#allocation2 + $0x119] sm:$0x1] %vm235_vm3, %v13383_v63  ;;  %v2688_v31 = vpop.f32.mrb[17].mxu0  ;;  %v12884_v26 = vpop.eup %12883  ;;  %v3176_v2 = vld [vmem:[#allocation2 + $0x8] sm:$0xff] }
 0x237   : > { %266 = vst.msk [vmem:[#allocation2 + $0x131] sm:$0x1] %vm235_vm3, %v13383_v63  ;;  %267 = vst.msk [vmem:[#allocation2 + $0x149] sm:$0x1] %vm235_vm3, %v13383_v63  ;;  %v2880_v27 = vmul.f32 1.442695, %v2835_v60  ;;  %v11976_v61 = vadd.f32 %v2688_v31, %v14183_v50  ;;  %v14386_v29 = vadd.f32 %v11975_v58, %v14219_v1  ;;  %12903 = vpow2.f32 %v2884_v43  ;;  %v12886_v3 = vpop.eup %12885  ;;  %3020 = vrot.lane.b32.xlu1 %v12880_v20, %s13384_s22 }
 0x238   : > { %268 = vst.msk [vmem:[#allocation2 + $0x161] sm:$0x1] %vm235_vm3, %v13383_v63  ;;  %269 = vst.msk [vmem:[#allocation2 + $0x179] sm:$0x1] %vm235_vm3, %v13383_v63  ;;  %v11218_v22 = vpop.f32.mrb[18].mxu0  ;;  %v2928_v55 = vadd.f32 1.0, %v12884_v26  ;;  %v12888_v38 = vpop.eup %12887  ;;  %3016 = vrot.lane.b32.xlu0 %v12882_v12, %s13384_s22  ;;  %v14406_v13 = vpack.c.bf16 %v3176_v2, %v3175_v57 }
 0x239   : > { %270 = vst.msk [vmem:[#allocation2 + $0x191] sm:$0x1] %vm235_vm3, %v13383_v63  ;;  %253 = vst.msk [vmem:[#allocation2 + $0x198] sm:$0x1] %vm235_vm3, %v13383_v63  ;;  %v11977_v42 = vadd.f32 %v11218_v22, %v14185_v18  ;;  %v2691_v44 = vpop.f32.mrb[19].mxu0  ;;  %v14390_v50 = vadd.f32 %v11976_v61, %v14219_v1  ;;  %12905 = vpow2.f32 %v2880_v27  ;;  %v12778_v18 = vld [vmem:[%s16523_s1 + $0x158] sm:$0xff]   ;;  %v12890_v35 = vpop.eup %12889 }
 0x23a   : > { %230 = vst.msk [vmem:[#allocation2 + $0x10] sm:$0x3] %vm229_vm4, %v13383_v63  ;;  %234 = vst.msk [vmem:[#allocation2 + $0x1a8] sm:$0x3] %vm229_vm4, %v13383_v63  ;;  %v11978_v14 = vadd.f32 %v2691_v44, %v14187_v6  ;;  %v2926_v5 = vadd.f32 1.0, %v12886_v3  ;;  %12907 = vrcp.f32 %v2928_v55  ;;  %v2929_v11 = vadd.f32 1.0, %v12888_v38  ;;  %11237 = vmatprep.subr.bf16.mxu1 %v12778_v18  ;;  %v12892_v59 = vpop.eup %12891 }
 0x23b   : > { %254 = vst.msk [vmem:[#allocation2 + $0x11] sm:$0x1] %vm235_vm3, %v13383_v63  ;;  %271 = vst.msk [vmem:[#allocation2 + $0x1a9] sm:$0x1] %vm235_vm3, %v13383_v63  ;;  %v2840_v63 = vsub.f32 0.0, %v14386_v29  ;;  %v14395_v15 = vadd.f32 %v11977_v42, %v14219_v1  ;;  %v2838_v6 = vsub.f32 0.0, %v14390_v50  ;;  %11238 = vmatpush3.bf16.msra.mxu1 %v12778_v18  ;;  %v12894_v43 = vpop.eup %12893 }
 0x23c   : > { %v14403_v53 = vadd.f32 %v11978_v14, %v14219_v1  ;;  %12909 = vrcp.f32 %v2926_v5  ;;  %v2927_v49 = vadd.f32 1.0, %v12890_v35  ;;  %v11221_v37 = vpop.f32.mrb[20].mxu0  ;;  %v3275_v61 = vshrl.u32 %v14406_v13, 16  ;;  %v12896_v22 = vpop.eup %12895  ;;  %3022 = vrot.lane.b32.xlu0 %v12894_v43, %s13384_s22 }
 0x23d   : > { %v2890_v7 = vmul.f32 1.442695, %v2840_v63  ;;  %v2841_v45 = vsub.f32 0.0, %v14395_v15  ;;  %v2886_v60 = vmul.f32 1.442695, %v2838_v6  ;;  %12911 = vrcp.f32 %v2929_v11  ;;  %v2704_v20 = vpop.f32.mrb[21].mxu0  ;;  %v12898_v14 = vpop.eup %12897 }
 0x23e   : > { %v2839_v52 = vsub.f32 0.0, %v14403_v53  ;;  %v11979_v31 = vadd.f32 %v11221_v37, %v14189_v30  ;;  %12913 = vrcp.f32 %v2927_v49  ;;  %v11980_v42 = vadd.f32 %v2704_v20, %v14191_v24  ;;  %v11222_v44 = vpop.f32.mrb[22].mxu0  ;;  %v12900_v55 = vpop.eup %12899  ;;  %3024 = vrot.lane.b32.xlu1 %v12898_v14, %s13384_s22 }
 0x23f   : > { %v2892_v58 = vmul.f32 1.442695, %v2841_v45  ;;  %12915 = vpow2.f32 %v2890_v7  ;;  %v11981_v30 = vadd.f32 %v11222_v44, %v14193_v56  ;;  %v2707_v2 = vpop.f32.mrb[23].mxu0  ;;  %v3277_v3 = vshll.u32 %v14406_v13, 16  ;;  %v12902_v38 = vpop.eup %12901 }
 0x240   : > { %v2888_v12 = vmul.f32 1.442695, %v2839_v52  ;;  %v14417_v57 = vadd.f32 %v11979_v31, %v14219_v1  ;;  %12917 = vpow2.f32 %v2886_v60  ;;  %v14422_v63 = vadd.f32 %v11980_v42, %v14219_v1  ;;  %3026 = vrot.lane.b32.xlu0 %v12892_v59, %s13384_s22 }
 0x241   : > { %v11982_v24 = vadd.f32 %v2707_v2, %v14195_v28  ;;  %v2932_v5 = vadd.f32 1.0, %v12900_v55  ;;  %12919 = vpow2.f32 %v2892_v58  ;;  %v14429_v56 = vadd.f32 %v11981_v30, %v14219_v1  ;;  %v12904_v35 = vpop.eup %12903  ;;  %v14439_v28 = vld [vmem:[%s16523_s1 + $0x120] sm:$0xff]  }
 0x242   : > { %v3177_v27 = vld [vmem:[#allocation2 + $0x10] sm:$0x3]  ;;  %v2844_v6 = vsub.f32 0.0, %v14417_v57  ;;  %v2930_v11 = vadd.f32 1.0, %v12902_v38  ;;  %12921 = vpow2.f32 %v2888_v12  ;;  %v2842_v7 = vsub.f32 0.0, %v14422_v63  ;;  %v11225_v20 = vpop.f32.mrb[24].mxu0  ;;  %3028 = vrot.lane.b32.xlu1 %v12896_v22, %s13384_s22  ;;  %11271 = vmatprep.subr.bf16.mxu1 %v14439_v28 }
 0x243   : > { %v14414_v26 = vpack.c.bf16 %v3177_v27, %v3177_v27  ;;  %v14433_v45 = vadd.f32 %v11982_v24, %v14219_v1  ;;  %v12906_v49 = vpop.eup %12905  ;;  %12923 = vrcp.f32 %v2932_v5  ;;  %v2933_v60 = vadd.f32 1.0, %v12904_v35  ;;  %v2720_v42 = vpop.f32.mrb[25].mxu0 }
 0x244   : > { %v2898_v52 = vmul.f32 1.442695, %v2844_v6  ;;  %v2845_v37 = vsub.f32 0.0, %v14429_v56  ;;  %12925 = vrcp.f32 %v2930_v11  ;;  %v2931_v43 = vadd.f32 1.0, %v12906_v49  ;;  %v12908_v59 = vpop.eup %12907  ;;  %v11226_v55 = vpop.f32.mrb[26].mxu0 }
 0x245   : > { %v3282_v18 = vshll.u32 %v14414_v26, 16  ;;  %v2894_v58 = vmul.f32 1.442695, %v2842_v7  ;;  %v2843_v31 = vsub.f32 0.0, %v14433_v45  ;;  %12927 = vrcp.f32 %v2933_v60  ;;  %v2723_v6 = vpop.f32.mrb[27].mxu0 }
 0x246   : > { %v2900_v27 = vmul.f32 1.442695, %v2845_v37  ;;  %v11983_v12 = vadd.f32 %v11225_v20, %v14197_v62  ;;  %v3279_v44 = vrot.slane %v3277_v3, 1  ;;  %v12910_v14 = vpop.eup %12909  ;;  %12929 = vrcp.f32 %v2931_v43 }
 0x247   : > { %v2896_v30 = vmul.f32 1.442695, %v2843_v31  ;;  %v11984_v2 = vadd.f32 %v2720_v42, %v14199_v19  ;;  %v3284_v24 = vrot.slane %v3282_v18, 1  ;;  %v12912_v38 = vpop.eup %12911  ;;  %12931 = vpow2.f32 %v2898_v52  ;;  %3030 = vrot.lane.b32.xlu0 %v12910_v14, %s13384_s22 }
 0x248   : > { %v14448_v22 = vadd.f32 %v11983_v12, %v14219_v1  ;;  %v11985_v5 = vadd.f32 %v11226_v55, %v14201_v9  ;;  %v3280_v62 = vor.u32 %v3279_v44, %v3275_v61  ;;  %v12914_v35 = vpop.eup %12913  ;;  %12933 = vpow2.f32 %v2894_v58 }
 0x249   : > { %v14453_v3 = vadd.f32 %v11984_v2, %v14219_v1  ;;  %v11986_v19 = vadd.f32 %v2723_v6, %v14203_v46  ;;  %v12916_v11 = vpop.eup %12915  ;;  %12935 = vpow2.f32 %v2900_v27  ;;  %3032 = vrot.lane.b32.xlu1 %v12914_v35, %s13384_s22 }
 0x24a   : > { %v2848_v18 = vsub.f32 0.0, %v14448_v22  ;;  %v14458_v7 = vadd.f32 %v11985_v5, %v14219_v1  ;;  %v3285_v9 = vsel %vm370_vm1, %v3280_v62, %v3284_v24  ;;  %v12918_v49 = vpop.eup %12917  ;;  %v2936_v61 = vadd.f32 1.0, %v12916_v11  ;;  %v11229_v12 = vpop.f32.mrb[28].mxu0 }
 0x24b   : > { %12937 = vpow2.f32 %v2896_v30  ;;  %v2846_v60 = vsub.f32 0.0, %v14453_v3  ;;  %v14464_v52 = vadd.f32 %v11986_v19, %v14219_v1  ;;  %11239 = vmatprep.mubr.msk.bf16.mxu1 %vm226_vm0, %v3285_v9  ;;  %v12920_v46 = vpop.eup %12919  ;;  %v2934_v37 = vadd.f32 1.0, %v12918_v49  ;;  %3034 = vrot.lane.b32.xlu0 %v12908_v59, %s13384_s22  ;;  %v2736_v2 = vpop.f32.mrb[29].mxu0 }
 0x24c   : > { %v2849_v43 = vsub.f32 0.0, %v14458_v7  ;;  %v12922_v58 = vpop.eup %12921  ;;  %12939 = vrcp.f32 %v2936_v61  ;;  %v2937_v31 = vadd.f32 1.0, %v12920_v46  ;;  %v2906_v20 = vmul.f32 1.442695, %v2848_v18  ;;  %v11230_v5 = vpop.f32.mrb[30].mxu0 }
 0x24d   : > { %v2847_v27 = vsub.f32 0.0, %v14464_v52  ;;  %v12924_v42 = vpop.eup %12923  ;;  %12941 = vrcp.f32 %v2934_v37  ;;  %v2935_v44 = vadd.f32 1.0, %v12922_v58  ;;  %v2902_v14 = vmul.f32 1.442695, %v2846_v60  ;;  %3036 = vrot.lane.b32.xlu1 %v12912_v38, %s13384_s22 }
 0x24e   : > { %v11987_v30 = vadd.f32 %v11229_v12, %v14205_v47  ;;  %v12926_v55 = vpop.eup %12925  ;;  %12943 = vrcp.f32 %v2937_v31  ;;  %v2908_v24 = vmul.f32 1.442695, %v2849_v43  ;;  %v11988_v59 = vadd.f32 %v2736_v2, %v14207_v10  ;;  %v2739_v47 = vpop.f32.mrb[31].mxu0 }
 0x24f   : > { %v12928_v6 = vpop.eup %12927  ;;  %12945 = vrcp.f32 %v2935_v44  ;;  %v2904_v62 = vmul.f32 1.442695, %v2847_v27  ;;  %v11989_v19 = vadd.f32 %v11230_v5, %v14209_v54  ;;  %3038 = vrot.lane.b32.xlu0 %v12926_v55, %s13384_s22  ;;  %v11990_v18 = vadd.f32 %v2739_v47, %v14211_v16 }
 0x250   : > { %v14474_v35 = vadd.f32 %v11987_v30, %v14219_v1  ;;  %v12930_v11 = vpop.eup %12929  ;;  %12947 = vpow2.f32 %v2906_v20  ;;  %v14479_v38 = vadd.f32 %v11988_v59, %v14219_v1 }
 0x251   : > { %v12932_v10 = vpop.eup %12931  ;;  %12949 = vpow2.f32 %v2902_v14  ;;  %v14484_v49 = vadd.f32 %v11989_v19, %v14219_v1  ;;  %3040 = vrot.lane.b32.xlu1 %v12930_v11, %s13384_s22  ;;  %v14489_v46 = vadd.f32 %v11990_v18, %v14219_v1 }
 0x252   : > { %v2852_v9 = vsub.f32 0.0, %v14474_v35  ;;  %v12934_v54 = vpop.eup %12933  ;;  %v2940_v61 = vadd.f32 1.0, %v12932_v10  ;;  %12951 = vpow2.f32 %v2908_v24  ;;  %v2850_v60 = vsub.f32 0.0, %v14479_v38 }
 0x253   : > { %v12936_v37 = vpop.eup %12935  ;;  %v2938_v43 = vadd.f32 1.0, %v12934_v54  ;;  %12953 = vpow2.f32 %v2904_v62  ;;  %v2853_v16 = vsub.f32 0.0, %v14484_v49  ;;  %3042 = vrot.lane.b32.xlu0 %v12924_v42, %s13384_s22  ;;  %v2851_v27 = vsub.f32 0.0, %v14489_v46 }
 0x254   : > { %12955 = vrcp.f32 %v2940_v61  ;;  %v2941_v31 = vadd.f32 1.0, %v12936_v37  ;;  %v2914_v20 = vmul.f32 1.442695, %v2852_v9  ;;  %v2910_v44 = vmul.f32 1.442695, %v2850_v60 }
 0x255   : > { %v12938_v58 = vpop.eup %12937  ;;  %12957 = vrcp.f32 %v2938_v43  ;;  %3044 = vrot.lane.b32.xlu1 %v12928_v6, %s13384_s22  ;;  %v2916_v14 = vmul.f32 1.442695, %v2853_v16  ;;  %v2912_v2 = vmul.f32 1.442695, %v2851_v27 }
 0x256   : > { %v2939_v12 = vadd.f32 1.0, %v12938_v58  ;;  %v12940_v1 = vpop.eup %12939  ;;  %12959 = vrcp.f32 %v2941_v31 }
 0x257   : > { %v12942_v30 = vpop.eup %12941 }
 0x258   : > { %12961 = vrcp.f32 %v2939_v12  ;;  %v12944_v55 = vpop.eup %12943  ;;  %3046 = vrot.lane.b32.xlu0 %v12942_v30, %s13384_s22 }
 0x259   : > { %12963 = vpow2.f32 %v2914_v20  ;;  %v12946_v42 = vpop.eup %12945 }
 0x25a   : > { %12965 = vpow2.f32 %v2910_v44  ;;  %v12948_v24 = vpop.eup %12947  ;;  %3048 = vrot.lane.b32.xlu1 %v12946_v42, %s13384_s22 }
 0x25b   : > { %12967 = vpow2.f32 %v2916_v14  ;;  %v12950_v59 = vpop.eup %12949  ;;  %v2944_v47 = vadd.f32 1.0, %v12948_v24 }
 0x25c   : > { %12969 = vpow2.f32 %v2912_v2  ;;  %v12952_v5 = vpop.eup %12951  ;;  %v2942_v6 = vadd.f32 1.0, %v12950_v59  ;;  %3050 = vrot.lane.b32.xlu0 %v12940_v1, %s13384_s22 }
 0x25d   : > { %v12954_v62 = vpop.eup %12953  ;;  %v2945_v9 = vadd.f32 1.0, %v12952_v5 }
 0x25e   : > { %v12956_v19 = vpop.eup %12955  ;;  %12971 = vrcp.f32 %v2942_v6  ;;  %v2943_v11 = vadd.f32 1.0, %v12954_v62  ;;  %3052 = vrot.lane.b32.xlu1 %v12944_v55, %s13384_s22 }
 0x25f   : > { %v12958_v18 = vpop.eup %12957 }
 0x260   : > { %v12960_v10 = vpop.eup %12959  ;;  %12973 = vrcp.f32 %v2943_v11  ;;  %3054 = vrot.lane.b32.xlu0 %v12958_v18, %s13384_s22 }
 0x261   : > { %12975 = vrcp.f32 %v2944_v47 }
 0x262   : > { %v12962_v54 = vpop.eup %12961  ;;  %12977 = vrcp.f32 %v2945_v9 }
 0x263   : > { %v12964_v61 = vpop.eup %12963  ;;  %3056 = vrot.lane.b32.xlu1 %v12962_v54, %s13384_s22 }
 0x264   : > { %v12966_v60 = vpop.eup %12965  ;;  %3058 = vrot.lane.b32.xlu0 %v12956_v19, %s13384_s22  ;;  %v2948_v58 = vadd.f32 1.0, %v12964_v61 }
 0x265   : > { %v12968_v37 = vpop.eup %12967  ;;  %v2946_v43 = vadd.f32 1.0, %v12966_v60 }
 0x266   : > { %v12970_v16 = vpop.eup %12969  ;;  %v2949_v27 = vadd.f32 1.0, %v12968_v37 }
 0x267   : > { %12979 = vrcp.f32 %v2946_v43  ;;  %v2947_v31 = vadd.f32 1.0, %v12970_v16  ;;  %3060 = vrot.lane.b32.xlu1 %v12960_v10, %s13384_s22 }
 0x268   : > { %v12972_v20 = vpop.eup %12971 }
 0x269   : > { %12981 = vrcp.f32 %v2947_v31  ;;  %3062 = vrot.lane.b32.xlu0 %v12972_v20, %s13384_s22 }
 0x26a   : > { %v12974_v12 = vpop.eup %12973  ;;  %12983 = vrcp.f32 %v2948_v58 }
 0x26b   : > { %3064 = vrot.lane.b32.xlu1 %v12974_v12, %s13384_s22  ;;  %v12976_v44 = vpop.eup %12975  ;;  %12985 = vrcp.f32 %v2949_v27 }
 0x26c   : > { %v12978_v1 = vpop.eup %12977 }
 0x26d   : > { %3066 = vrot.lane.b32.xlu0 %v12976_v44, %s13384_s22 }
 0x26f   : > { %3068 = vrot.lane.b32.xlu1 %v12978_v1, %s13384_s22 }
 0x271   : > { %v12980_v14 = vpop.eup %12979 }
 0x272   : > { %3070 = vrot.lane.b32.xlu0 %v12980_v14, %s13384_s22 }
 0x273   : > { %v12982_v30 = vpop.eup %12981 }
 0x274   : > { %3072 = vrot.lane.b32.xlu1 %v12982_v30, %s13384_s22  ;;  %v12984_v2 = vpop.eup %12983 }
 0x275   : > { %v12986_v55 = vpop.eup %12985 }
 0x276   : > { %3074 = vrot.lane.b32.xlu0 %v12984_v2, %s13384_s22 }
 0x278   : > { %3076 = vrot.lane.b32.xlu1 %v12986_v55, %s13384_s22 }
 0x2a5   : > { %v3019_v42 = vpop.permute.xlu1 %3018 }
 0x2a6   : > { %v3112_v24 = vmul.f32 %v3019_v42, %v14222_v17  ;;  %v3015_v59 = vpop.permute.xlu0 %3014 }
 0x2a7   : > { %v3110_v5 = vmul.f32 %v3015_v59, %v14225_v36 }
 0x2a8   : > { %3145 = vst.msk [vmem:[#allocation2 + $0x31] sm:$0xff] %vm226_vm0, %v3112_v24 }
 0x2a9   : > { %3143 = vst.msk [vmem:[#allocation2 + $0x19] sm:$0xff] %vm226_vm0, %v3110_v5  ;;  %v3021_v6 = vpop.permute.xlu1 %3020 }
 0x2aa   : > { %v3113_v62 = vmul.f32 %v3021_v6, %v14229_v4  ;;  %v3017_v19 = vpop.permute.xlu0 %3016 }
 0x2ab   : > { %v3111_v47 = vmul.f32 %v3017_v19, %v14233_v33 }
 0x2ac   : > { %3146 = vst.msk [vmem:[#allocation2 + $0x39] sm:$0xff] %vm226_vm0, %v3113_v62 }
 0x2ad   : > { %3144 = vst.msk [vmem:[#allocation2 + $0x21] sm:$0xff] %vm226_vm0, %v3111_v47 }
 0x2ae   : > { %v3023_v11 = vpop.permute.xlu0 %3022 }
 0x2af   : > { %v3114_v17 = vmul.f32 %v3023_v11, %v14241_v51  ;;  %v3181_v9 = vld [vmem:[#allocation2 + $0x30] sm:$0xff] }
 0x2b0   : > { %v3025_v18 = vpop.permute.xlu1 %3024  ;;  %v3178_v60 = vld [vmem:[#allocation2 + $0x18] sm:$0xff] }
 0x2b1   : > { %3147 = vst.msk [vmem:[#allocation2 + $0x49] sm:$0xff] %vm226_vm0, %v3114_v17  ;;  %v3115_v36 = vmul.f32 %v3025_v18, %v14249_v21 }
 0x2b2   : > { %v3027_v10 = vpop.permute.xlu0 %3026 }
 0x2b3   : > { %3148 = vst.msk [vmem:[#allocation2 + $0x51] sm:$0xff] %vm226_vm0, %v3115_v36  ;;  %v3116_v4 = vmul.f32 %v3027_v10, %v14238_v34  ;;  %v3182_v54 = vld [vmem:[#allocation2 + $0x38] sm:$0xff]  ;;  %v3183_v33 = vld [vmem:[#allocation2 + $0x40] sm:$0x3] }
 0x2b4   : > { %v3029_v61 = vpop.permute.xlu1 %3028  ;;  %v3179_v37 = vld [vmem:[#allocation2 + $0x20] sm:$0xff]  ;;  %v3180_v43 = vld [vmem:[#allocation2 + $0x28] sm:$0x3]  ;;  %v14524_v16 = vpack.c.bf16 %v3182_v54, %v3181_v9  ;;  %v14526_v51 = vpack.c.bf16 %v3183_v33, %v3183_v33 }
 0x2b5   : > { %3149 = vst.msk [vmem:[#allocation2 + $0x61] sm:$0xff] %vm226_vm0, %v3116_v4  ;;  %v3117_v21 = vmul.f32 %v3029_v61, %v14245_v41  ;;  %v14530_v58 = vpack.c.bf16 %v3179_v37, %v3178_v60  ;;  %v14532_v31 = vpack.c.bf16 %v3180_v43, %v3180_v43 }
 0x2b6   : > { %v3301_v34 = vshll.u32 %v14524_v16, 16  ;;  %v3299_v1 = vshrl.u32 %v14524_v16, 16  ;;  %v3306_v41 = vshll.u32 %v14526_v51, 16 }
 0x2b7   : > { %3150 = vst.msk [vmem:[#allocation2 + $0x69] sm:$0xff] %vm226_vm0, %v3117_v21  ;;  %v3289_v27 = vshll.u32 %v14530_v58, 16  ;;  %v3294_v12 = vshll.u32 %v14532_v31, 16  ;;  %v3287_v2 = vshrl.u32 %v14530_v58, 16 }
 0x2b8   : > { %v3303_v14 = vrot.slane %v3301_v34, 1  ;;  %v3184_v59 = vld [vmem:[#allocation2 + $0x48] sm:$0xff]  ;;  %v3308_v18 = vrot.slane %v3306_v41, 1 }
 0x2b9   : > { %v3031_v20 = vpop.permute.xlu0 %3030  ;;  %v3291_v55 = vrot.slane %v3289_v27, 1  ;;  %v12781_v27 = vld [vmem:[%s16523_s1 + $0x130] sm:$0xff]  }
 0x2ba   : > { %v3118_v44 = vmul.f32 %v3031_v20, %v14260_v25  ;;  %v3304_v24 = vor.u32 %v3303_v14, %v3299_v1  ;;  %v3185_v5 = vld [vmem:[#allocation2 + $0x50] sm:$0xff]  ;;  %v3186_v6 = vld [vmem:[#allocation2 + $0x58] sm:$0x3]  ;;  %v3296_v25 = vrot.slane %v3294_v12, 1 }
 0x2bb   : > { %v3033_v30 = vpop.permute.xlu1 %3032  ;;  %v3292_v19 = vor.u32 %v3291_v55, %v3287_v2  ;;  %v14544_v47 = vpack.c.bf16 %v3185_v5, %v3184_v59  ;;  %v14546_v11 = vpack.c.bf16 %v3186_v6, %v3186_v6 }
 0x2bc   : > { %3151 = vst.msk [vmem:[#allocation2 + $0x79] sm:$0xff] %vm226_vm0, %v3118_v44  ;;  %v3119_v42 = vmul.f32 %v3033_v30, %v14269_v48  ;;  %v12780_v48 = vld [vmem:[%s16523_s1 + $0x128] sm:$0xff]   ;;  %v3187_v33 = vld [vmem:[#allocation2 + $0x60] sm:$0xff] }
 0x2bd   : > { %v3035_v62 = vpop.permute.xlu0 %3034  ;;  %v14554_v10 = vsel %vm370_vm1, %v3292_v19, %v3296_v25  ;;  %v3313_v4 = vshll.u32 %v14544_v47, 16  ;;  %v3318_v54 = vshll.u32 %v14546_v11, 16  ;;  %v3311_v43 = vshrl.u32 %v14544_v47, 16 }
 0x2be   : > { %3152 = vst.msk [vmem:[#allocation2 + $0x81] sm:$0xff] %vm226_vm0, %v3119_v42  ;;  %v3120_v17 = vmul.f32 %v3035_v62, %v14256_v39  ;;  %11240 = vmatmul.mubr.msk.bf16.vlgmr.msra.gmra.mrb[32].mxu1 %vm226_vm0, %v14554_v10  ;;  %v14562_v39 = vsel %vm370_vm1, %v3304_v24, %v3308_v18  ;;  %v3188_v61 = vld [vmem:[#allocation2 + $0x68] sm:$0xff]  ;;  %v3189_v60 = vld [vmem:[#allocation2 + $0x70] sm:$0x3] }
 0x2bf   : > { %v3037_v36 = vpop.permute.xlu1 %3036  ;;  %11243 = vmatprep.mubr.msk.bf16.mxu1 %vm226_vm0, %v14562_v39  ;;  %11272 = vmatpush3.bf16.msra.mxu1 %v14439_v28  ;;  %v14569_v21 = vpack.c.bf16 %v3188_v61, %v3187_v33  ;;  %v14571_v34 = vpack.c.bf16 %v3189_v60, %v3189_v60  ;;  %v3320_v41 = vrot.slane %v3318_v54, 1 }
 0x2c0   : > { %3153 = vst.msk [vmem:[#allocation2 + $0x91] sm:$0xff] %vm226_vm0, %v3120_v17  ;;  %v3121_v9 = vmul.f32 %v3037_v36, %v14265_v0  ;;  %v3315_v0 = vrot.slane %v3313_v4, 1  ;;  %11273 = vmatprep.subr.bf16.mxu1 %v12780_v48 }
 0x2c1   : > { %v3039_v37 = vpop.permute.xlu0 %3038  ;;  %v3325_v28 = vshll.u32 %v14569_v21, 16  ;;  %v3330_v1 = vshll.u32 %v14571_v34, 16  ;;  %v3323_v2 = vshrl.u32 %v14569_v21, 16 }
 0x2c2   : > { %3154 = vst.msk [vmem:[#allocation2 + $0x99] sm:$0xff] %vm226_vm0, %v3121_v9  ;;  %v3122_v20 = vmul.f32 %v3039_v37, %v14362_v23  ;;  %v3316_v44 = vor.u32 %v3315_v0, %v3311_v43  ;;  %v14615_v43 = vld [vmem:[%s16523_s1 + $0x160] sm:$0xff]  }
 0x2c3   : > { %v3041_v12 = vpop.permute.xlu1 %3040  ;;  %v3327_v23 = vrot.slane %v3325_v28, 1  ;;  %v3190_v55 = vld [vmem:[#allocation2 + $0x78] sm:$0xff]  ;;  %11274 = vmatpush3.bf16.msra.mxu1 %v12780_v48  ;;  %v3332_v17 = vrot.slane %v3330_v1, 1 }
 0x2c4   : > { %3155 = vst.msk [vmem:[#allocation2 + $0xa9] sm:$0xff] %vm226_vm0, %v3122_v20  ;;  %v3123_v14 = vmul.f32 %v3041_v12, %v14371_v40  ;;  %11275 = vmatprep.subr.bf16.mxu1 %v12781_v27  ;;  %v12782_v40 = vld [vmem:[%s16523_s1 + $0x138] sm:$0xff]   ;;  %v14593_v19 = vsel %vm370_vm1, %v3316_v44, %v3320_v41 }
 0x2c5   : > { %v3043_v30 = vpop.permute.xlu0 %3042  ;;  %v3191_v42 = vld [vmem:[#allocation2 + $0x80] sm:$0xff]  ;;  %v3192_v24 = vld [vmem:[#allocation2 + $0x88] sm:$0x3]  ;;  %v3328_v25 = vor.u32 %v3327_v23, %v3323_v2 }
 0x2c6   : > { %3156 = vst.msk [vmem:[#allocation2 + $0xb1] sm:$0xff] %vm226_vm0, %v3123_v14  ;;  %v3124_v59 = vmul.f32 %v3043_v30, %v14355_v8  ;;  %v14585_v5 = vpack.c.bf16 %v3191_v42, %v3190_v55  ;;  %v14587_v6 = vpack.c.bf16 %v3192_v24, %v3192_v24  ;;  %11244 = vmatmul.mubr.msk.bf16.gmra.mrb[36].mxu1 %vm226_vm0, %v14593_v19 }
 0x2c7   : > { %v3045_v62 = vpop.permute.xlu1 %3044  ;;  %v14601_v48 = vsel %vm370_vm1, %v3328_v25, %v3332_v17  ;;  %v3193_v4 = vld [vmem:[#allocation2 + $0x90] sm:$0xff]  ;;  %11276 = vmatpush3.bf16.msra.mxu1 %v12781_v27 }
 0x2c8   : > { %3157 = vst.msk [vmem:[#allocation2 + $0xc1] sm:$0xff] %vm226_vm0, %v3124_v59  ;;  %v3125_v18 = vmul.f32 %v3045_v62, %v14367_v32  ;;  %v3337_v8 = vshll.u32 %v14585_v5, 16  ;;  %v3342_v36 = vshll.u32 %v14587_v6, 16  ;;  %11247 = vmatprep.mubr.msk.bf16.mxu1 %vm226_vm0, %v14601_v48  ;;  %v3335_v32 = vshrl.u32 %v14585_v5, 16  ;;  %11277 = vmatprep.subr.bf16.mxu1 %v12782_v40 }
 0x2c9   : > { %v3194_v9 = vld [vmem:[#allocation2 + $0x98] sm:$0xff]  ;;  %v3195_v54 = vld [vmem:[#allocation2 + $0xa0] sm:$0x3] }
 0x2ca   : > { %3158 = vst.msk [vmem:[#allocation2 + $0xc9] sm:$0xff] %vm226_vm0, %v3125_v18  ;;  %v3047_v33 = vpop.permute.xlu0 %3046  ;;  %v3339_v61 = vrot.slane %v3337_v8, 1  ;;  %v14608_v60 = vpack.c.bf16 %v3194_v9, %v3193_v4  ;;  %v14610_v37 = vpack.c.bf16 %v3195_v54, %v3195_v54  ;;  %v3344_v1 = vrot.slane %v3342_v36, 1 }
 0x2cb   : > { %v3126_v0 = vmul.f32 %v3047_v33, %v14390_v50  ;;  %v3196_v14 = vld [vmem:[#allocation2 + $0xa8] sm:$0xff]  ;;  %11278 = vmatpush3.bf16.msra.mxu1 %v12782_v40 }
 0x2cc   : > { %v3049_v20 = vpop.permute.xlu1 %3048  ;;  %v3340_v27 = vor.u32 %v3339_v61, %v3335_v32  ;;  %v3349_v12 = vshll.u32 %v14608_v60, 16  ;;  %v3354_v44 = vshll.u32 %v14610_v37, 16  ;;  %v3347_v23 = vshrl.u32 %v14608_v60, 16  ;;  %11311 = vmatprep.subr.bf16.mxu1 %v14615_v43 }
 0x2cd   : > { %3159 = vst.msk [vmem:[#allocation2 + $0xd9] sm:$0xff] %vm226_vm0, %v3126_v0  ;;  %v3127_v28 = vmul.f32 %v3049_v20, %v14403_v53  ;;  %v3197_v41 = vld [vmem:[#allocation2 + $0xb0] sm:$0xff]  ;;  %v3198_v30 = vld [vmem:[#allocation2 + $0xb8] sm:$0x3] }
 0x2ce   : > { %v3051_v2 = vpop.permute.xlu0 %3050  ;;  %v3351_v55 = vrot.slane %v3349_v12, 1  ;;  %v14623_v50 = vpack.c.bf16 %v3197_v41, %v3196_v14  ;;  %v14629_v24 = vsel %vm370_vm1, %v3340_v27, %v3344_v1  ;;  %v14631_v53 = vpack.c.bf16 %v3198_v30, %v3198_v30 }
 0x2cf   : > { %3160 = vst.msk [vmem:[#allocation2 + $0xe1] sm:$0xff] %vm226_vm0, %v3127_v28  ;;  %v3128_v42 = vmul.f32 %v3051_v2, %v14386_v29  ;;  %11248 = vmatmul.mubr.msk.bf16.gmra.mrb[40].mxu1 %vm226_vm0, %v14629_v24  ;;  %v3356_v62 = vrot.slane %v3354_v44, 1  ;;  %v3199_v8 = vld [vmem:[#allocation2 + $0xc0] sm:$0xff] }
 0x2d0   : > { %v3053_v59 = vpop.permute.xlu1 %3052  ;;  %v3352_v40 = vor.u32 %v3351_v55, %v3347_v23  ;;  %v3361_v25 = vshll.u32 %v14623_v50, 16  ;;  %v3359_v18 = vshrl.u32 %v14623_v50, 16  ;;  %v3366_v29 = vshll.u32 %v14631_v53, 16 }
 0x2d1   : > { %3161 = vst.msk [vmem:[#allocation2 + $0xf1] sm:$0xff] %vm226_vm0, %v3128_v42  ;;  %v3129_v17 = vmul.f32 %v3053_v59, %v14395_v15  ;;  %v3200_v36 = vld [vmem:[#allocation2 + $0xc8] sm:$0xff]  ;;  %v3201_v4 = vld [vmem:[#allocation2 + $0xd0] sm:$0x3] }
 0x2d2   : > { %v3055_v9 = vpop.permute.xlu0 %3054  ;;  %v14641_v54 = vsel %vm370_vm1, %v3352_v40, %v3356_v62  ;;  %v3363_v33 = vrot.slane %v3361_v25, 1  ;;  %v14643_v32 = vpack.c.bf16 %v3200_v36, %v3199_v8  ;;  %v14645_v61 = vpack.c.bf16 %v3201_v4, %v3201_v4 }
 0x2d3   : > { %3162 = vst.msk [vmem:[#allocation2 + $0xf9] sm:$0xff] %vm226_vm0, %v3129_v17  ;;  %v3130_v15 = vmul.f32 %v3055_v9, %v14422_v63  ;;  %11251 = vmatprep.mubr.msk.bf16.mxu1 %vm226_vm0, %v14641_v54  ;;  %v3368_v28 = vrot.slane %v3366_v29, 1 }
 0x2d4   : > { %v3364_v20 = vor.u32 %v3363_v33, %v3359_v18  ;;  %v3373_v27 = vshll.u32 %v14643_v32, 16  ;;  %v3378_v12 = vshll.u32 %v14645_v61, 16  ;;  %v3371_v14 = vshrl.u32 %v14643_v32, 16  ;;  %v3202_v30 = vld [vmem:[#allocation2 + $0xd8] sm:$0xff] }
 0x2d5   : > { %v3057_v0 = vpop.permute.xlu1 %3056  ;;  %3163 = vst.msk [vmem:[#allocation2 + $0x109] sm:$0xff] %vm226_vm0, %v3130_v15 }
 0x2d6   : > { %v3131_v44 = vmul.f32 %v3057_v0, %v14433_v45  ;;  %v3059_v1 = vpop.permute.xlu0 %3058  ;;  %v3375_v41 = vrot.slane %v3373_v27, 1  ;;  %v3203_v63 = vld [vmem:[#allocation2 + $0xe0] sm:$0xff]  ;;  %v3204_v2 = vld [vmem:[#allocation2 + $0xe8] sm:$0x3]  ;;  %v14659_v55 = vsel %vm370_vm1, %v3364_v20, %v3368_v28  ;;  %v3380_v62 = vrot.slane %v3378_v12, 1 }
 0x2d7   : > { %v3132_v23 = vmul.f32 %v3059_v1, %v14417_v57  ;;  %v14661_v42 = vpack.c.bf16 %v3203_v63, %v3202_v30  ;;  %v14663_v59 = vpack.c.bf16 %v3204_v2, %v3204_v2  ;;  %11252 = vmatmul.mubr.msk.bf16.gmra.mrb[44].mxu1 %vm226_vm0, %v14659_v55 }
 0x2d8   : > { %3164 = vst.msk [vmem:[#allocation2 + $0x111] sm:$0xff] %vm226_vm0, %v3131_v44  ;;  %v3376_v40 = vor.u32 %v3375_v41, %v3371_v14  ;;  %v3205_v29 = vld [vmem:[#allocation2 + $0xf0] sm:$0xff] }
 0x2d9   : > { %v3061_v45 = vpop.permute.xlu1 %3060  ;;  %3165 = vst.msk [vmem:[#allocation2 + $0x121] sm:$0xff] %vm226_vm0, %v3132_v23  ;;  %v3385_v17 = vshll.u32 %v14661_v42, 16  ;;  %v3390_v57 = vshll.u32 %v14663_v59, 16  ;;  %v3383_v9 = vshrl.u32 %v14661_v42, 16 }
 0x2da   : > { %v3133_v25 = vmul.f32 %v3061_v45, %v14429_v56  ;;  %v14672_v18 = vsel %vm370_vm1, %v3376_v40, %v3380_v62  ;;  %v3206_v8 = vld [vmem:[#allocation2 + $0xf8] sm:$0xff]  ;;  %v3207_v36 = vld [vmem:[#allocation2 + $0x100] sm:$0x3] }
 0x2db   : > { %v3063_v4 = vpop.permute.xlu0 %3062  ;;  %11255 = vmatprep.mubr.msk.bf16.mxu1 %vm226_vm0, %v14672_v18  ;;  %v3387_v33 = vrot.slane %v3385_v17, 1  ;;  %v14678_v56 = vpack.c.bf16 %v3206_v8, %v3205_v29  ;;  %v14680_v15 = vpack.c.bf16 %v3207_v36, %v3207_v36  ;;  %v3392_v12 = vrot.slane %v3390_v57, 1 }
 0x2dc   : > { %3166 = vst.msk [vmem:[#allocation2 + $0x129] sm:$0xff] %vm226_vm0, %v3133_v25  ;;  %v3134_v0 = vmul.f32 %v3063_v4, %v14453_v3  ;;  %v3208_v14 = vld [vmem:[#allocation2 + $0x108] sm:$0xff] }
 0x2dd   : > { %v3065_v20 = vpop.permute.xlu1 %3064  ;;  %v3388_v27 = vor.u32 %v3387_v33, %v3383_v9  ;;  %v3397_v44 = vshll.u32 %v14678_v56, 16  ;;  %v3402_v28 = vshll.u32 %v14680_v15, 16  ;;  %v3395_v3 = vshrl.u32 %v14678_v56, 16 }
 0x2de   : > { %3167 = vst.msk [vmem:[#allocation2 + $0x139] sm:$0xff] %vm226_vm0, %v3134_v0  ;;  %v3135_v1 = vmul.f32 %v3065_v20, %v14464_v52 }
 0x2df   : > { %v3209_v41 = vld [vmem:[#allocation2 + $0x110] sm:$0xff]  ;;  %v3210_v30 = vld [vmem:[#allocation2 + $0x118] sm:$0x3]  ;;  %v3067_v63 = vpop.permute.xlu0 %3066  ;;  %v14688_v2 = vsel %vm370_vm1, %v3388_v27, %v3392_v12  ;;  %v3399_v23 = vrot.slane %v3397_v44, 1  ;;  %v3404_v17 = vrot.slane %v3402_v28, 1 }
 0x2e0   : > { %v14691_v45 = vpack.c.bf16 %v3209_v41, %v3208_v14  ;;  %3168 = vst.msk [vmem:[#allocation2 + $0x141] sm:$0xff] %vm226_vm0, %v3135_v1  ;;  %v3136_v40 = vmul.f32 %v3067_v63, %v14448_v22  ;;  %11256 = vmatmul.mubr.msk.bf16.gmra.mrb[48].mxu1 %vm226_vm0, %v14688_v2  ;;  %v14697_v52 = vpack.c.bf16 %v3210_v30, %v3210_v30  ;;  %v3211_v4 = vld [vmem:[#allocation2 + $0x120] sm:$0xff] }
 0x2e1   : > { %v3069_v62 = vpop.permute.xlu1 %3068  ;;  %v3400_v25 = vor.u32 %v3399_v23, %v3395_v3 }
 0x2e2   : > { %v3409_v57 = vshll.u32 %v14691_v45, 16  ;;  %3169 = vst.msk [vmem:[#allocation2 + $0x151] sm:$0xff] %vm226_vm0, %v3136_v40  ;;  %v3137_v29 = vmul.f32 %v3069_v62, %v14458_v7  ;;  %v3407_v8 = vshrl.u32 %v14691_v45, 16  ;;  %v3414_v36 = vshll.u32 %v14697_v52, 16 }
 0x2e3   : > { %v3212_v22 = vld [vmem:[#allocation2 + $0x128] sm:$0xff]  ;;  %v3213_v9 = vld [vmem:[#allocation2 + $0x130] sm:$0x3]  ;;  %v14705_v0 = vsel %vm370_vm1, %v3400_v25, %v3404_v17 }
 0x2e4   : > { %v3071_v33 = vpop.permute.xlu0 %3070  ;;  %v3411_v20 = vrot.slane %v3409_v57, 1  ;;  %v14707_v27 = vpack.c.bf16 %v3212_v22, %v3211_v4  ;;  %v14709_v12 = vpack.c.bf16 %v3213_v9, %v3213_v9  ;;  %3170 = vst.msk [vmem:[#allocation2 + $0x159] sm:$0xff] %vm226_vm0, %v3137_v29  ;;  %11259 = vmatprep.mubr.msk.bf16.mxu1 %vm226_vm0, %v14705_v0  ;;  %v3416_v1 = vrot.slane %v3414_v36, 1 }
 0x2e5   : > { %v3138_v7 = vmul.f32 %v3071_v33, %v14479_v38  ;;  %v3214_v40 = vld [vmem:[#allocation2 + $0x138] sm:$0xff] }
 0x2e6   : > { %v3073_v44 = vpop.permute.xlu1 %3072  ;;  %v3412_v28 = vor.u32 %v3411_v20, %v3407_v8  ;;  %v3421_v14 = vshll.u32 %v14707_v27, 16  ;;  %v3426_v41 = vshll.u32 %v14709_v12, 16  ;;  %v3419_v38 = vshrl.u32 %v14707_v27, 16 }
 0x2e7   : > { %3171 = vst.msk [vmem:[#allocation2 + $0x169] sm:$0xff] %vm226_vm0, %v3138_v7  ;;  %v3139_v30 = vmul.f32 %v3073_v44, %v14489_v46  ;;  %v3215_v62 = vld [vmem:[#allocation2 + $0x140] sm:$0xff]  ;;  %v3216_v25 = vld [vmem:[#allocation2 + $0x148] sm:$0x3] }
 0x2e8   : > { %v3075_v63 = vpop.permute.xlu0 %3074  ;;  %v14720_v3 = vsel %vm370_vm1, %v3412_v28, %v3416_v1  ;;  %v3423_v23 = vrot.slane %v3421_v14, 1  ;;  %v14727_v57 = vpack.c.bf16 %v3215_v62, %v3214_v40  ;;  %v14729_v46 = vpack.c.bf16 %v3216_v25, %v3216_v25 }
 0x2e9   : > { %3172 = vst.msk [vmem:[#allocation2 + $0x171] sm:$0xff] %vm226_vm0, %v3139_v30  ;;  %v3140_v17 = vmul.f32 %v3075_v63, %v14474_v35  ;;  %11260 = vmatmul.mubr.msk.bf16.gmra.mrb[52].mxu1 %vm226_vm0, %v14720_v3  ;;  %v3428_v36 = vrot.slane %v3426_v41, 1  ;;  %v3217_v33 = vld [vmem:[#allocation2 + $0x150] sm:$0xff] }
 0x2ea   : > { %v3077_v29 = vpop.permute.xlu1 %3076  ;;  %v3424_v8 = vor.u32 %v3423_v23, %v3419_v38  ;;  %v3433_v22 = vshll.u32 %v14727_v57, 16  ;;  %v3438_v9 = vshll.u32 %v14729_v46, 16  ;;  %v3431_v44 = vshrl.u32 %v14727_v57, 16 }
 0x2eb   : > { %3173 = vst.msk [vmem:[#allocation2 + $0x181] sm:$0xff] %vm226_vm0, %v3140_v17  ;;  %v3141_v4 = vmul.f32 %v3077_v29, %v14484_v49  ;;  %v3218_v20 = vld [vmem:[#allocation2 + $0x158] sm:$0xff]  ;;  %v3219_v7 = vld [vmem:[#allocation2 + $0x160] sm:$0x3] }
 0x2ec   : > { %v14736_v35 = vsel %vm370_vm1, %v3424_v8, %v3428_v36  ;;  %v3435_v28 = vrot.slane %v3433_v22, 1  ;;  %v14742_v1 = vpack.c.bf16 %v3218_v20, %v3217_v33  ;;  %v14744_v49 = vpack.c.bf16 %v3219_v7, %v3219_v7 }
 0x2ed   : > { %3174 = vst.msk [vmem:[#allocation2 + $0x189] sm:$0xff] %vm226_vm0, %v3141_v4  ;;  %11263 = vmatprep.mubr.msk.bf16.mxu1 %vm226_vm0, %v14736_v35  ;;  %v3440_v41 = vrot.slane %v3438_v9, 1 }
 0x2ee   : > { %v3436_v14 = vor.u32 %v3435_v28, %v3431_v44  ;;  %v3445_v30 = vshll.u32 %v14742_v1, 16  ;;  %v3450_v63 = vshll.u32 %v14744_v49, 16  ;;  %v3220_v38 = vld [vmem:[#allocation2 + $0x168] sm:$0xff]  ;;  %v3443_v25 = vshrl.u32 %v14742_v1, 16 }
 0x2f0   : > { %v3221_v23 = vld [vmem:[#allocation2 + $0x170] sm:$0xff]  ;;  %v3222_v40 = vld [vmem:[#allocation2 + $0x178] sm:$0x3]  ;;  %v14749_v62 = vsel %vm370_vm1, %v3436_v14, %v3440_v41  ;;  %v3447_v17 = vrot.slane %v3445_v30, 1  ;;  %v3452_v4 = vrot.slane %v3450_v63, 1  ;;  %v12784_v41 = vld [vmem:[%s16523_s1 + $0x168] sm:$0xff]  }
 0x2f1   : > { %v14752_v29 = vpack.c.bf16 %v3221_v23, %v3220_v38  ;;  %11264 = vmatmul.mubr.msk.bf16.gmra.mrb[56].mxu1 %vm226_vm0, %v14749_v62  ;;  %v14756_v8 = vpack.c.bf16 %v3222_v40, %v3222_v40  ;;  %v12785_v30 = vld [vmem:[%s16523_s1 + $0x170] sm:$0xff]   ;;  %v12786_v63 = vld [vmem:[%s16523_s1 + $0x178] sm:$0xff]   ;;  %v3957_v38 = vrot.slane %v14406_v13, 1  ;;  %v3958_v23 = vrot.slane %v14414_v26, 1 }
 0x2f2   : > { %v3448_v36 = vor.u32 %v3447_v17, %v3443_v25  ;;  %v3960_v25 = vrot.slane %v14530_v58, 1  ;;  %v3961_v17 = vrot.slane %v14532_v31, 1  ;;  %v3966_v31 = vrot.slane %v14544_v47, 1 }
 0x2f3   : > { %v3457_v22 = vshll.u32 %v14752_v29, 16  ;;  %v3462_v9 = vshll.u32 %v14756_v8, 16  ;;  %v3455_v20 = vshrl.u32 %v14752_v29, 16  ;;  %v3959_v40 = vsel %vm1054_vm2, %v3957_v38, %v3958_v23 }
 0x2f4   : > { %v14761_v33 = vsel %vm370_vm1, %v3448_v36, %v3452_v4  ;;  %v3963_v36 = vrot.slane %v14524_v16, 1  ;;  %v3964_v4 = vrot.slane %v14526_v51, 1  ;;  %v14828_v26 = vsel %vm1054_vm2, %v3960_v25, %v3961_v17  ;;  %v12789_v51 = vld [vmem:[%s16523_s1 + $0x190] sm:$0xff]  }
 0x2f5   : > { %v3459_v7 = vrot.slane %v3457_v22, 1  ;;  %11267 = vmatprep.mubr.msk.bf16.mxu1 %vm226_vm0, %v14761_v33  ;;  %v3464_v28 = vrot.slane %v3462_v9, 1  ;;  %v3967_v9 = vrot.slane %v14546_v11, 1  ;;  %v12791_v11 = vld [vmem:[%s16523_s1 + $0x1a0] sm:$0xff]   ;;  %v3982_v25 = vrot.slane %v14645_v61, 1 }
 0x2f6   : > { %v14833_v22 = vsel %vm1054_vm2, %v3963_v36, %v3964_v4  ;;  %v3984_v4 = vrot.slane %v14661_v42, 1  ;;  %v3988_v61 = vrot.slane %v14680_v15, 1  ;;  %v3994_v15 = vrot.slane %v14709_v12, 1 }
 0x2f7   : > { %v3460_v44 = vor.u32 %v3459_v7, %v3455_v20  ;;  %v3969_v20 = vrot.slane %v14569_v21, 1  ;;  %v3970_v7 = vrot.slane %v14571_v34, 1  ;;  %v3972_v34 = vrot.slane %v14585_v5, 1 }
 0x2f8   : > { %v4000_v12 = vrot.slane %v14744_v49, 1  ;;  %v12792_v49 = vld [vmem:[%s16523_s1 + $0x1a8] sm:$0xff]  }
 0x2f9   : > { %v14767_v14 = vsel %vm370_vm1, %v3460_v44, %v3464_v28  ;;  %v12790_v44 = vld [vmem:[%s16523_s1 + $0x198] sm:$0xff]   ;;  %v14848_v28 = vsel %vm1054_vm2, %v3966_v31, %v3967_v9  ;;  %v3990_v9 = vrot.slane %v14691_v45, 1 }
 0x2fa   : > { %11268 = vmatmul.mubr.msk.bf16.gmra.mrb[60].mxu1 %vm226_vm0, %v14767_v14 }
 0x2fb   : > { %11279 = vmatprep.mubr.msk.bf16.mxu1 %vm226_vm0, %v14406_v13  ;;  %v12788_v13 = vld [vmem:[%s16523_s1 + $0x188] sm:$0xff]  }
 0x302   : > { %11280 = vmatmul.mubr.msk.bf16.vlgmr.msra.gmra.mrb[32].mxu1 %vm226_vm0, %v14530_v58 }
 0x303   : > { %11283 = vmatprep.mubr.msk.bf16.mxu1 %vm226_vm0, %v14524_v16  ;;  %11312 = vmatpush3.bf16.msra.mxu1 %v14615_v43  ;;  %v12787_v43 = vld [vmem:[%s16523_s1 + $0x180] sm:$0xff]  }
 0x304   : > { %11313 = vmatprep.subr.bf16.mxu1 %v12784_v41 }
 0x307   : > { %11314 = vmatpush3.bf16.msra.mxu1 %v12784_v41  ;;  %v14853_v41 = vsel %vm1054_vm2, %v3969_v20, %v3970_v7  ;;  %v3993_v20 = vrot.slane %v14707_v27, 1 }
 0x308   : > { %11315 = vmatprep.subr.bf16.mxu1 %v12785_v30 }
 0x30a   : > { %11284 = vmatmul.mubr.msk.bf16.gmra.mrb[36].mxu1 %vm226_vm0, %v14544_v47 }
 0x30b   : > { %11287 = vmatprep.mubr.msk.bf16.mxu1 %vm226_vm0, %v14569_v21  ;;  %11316 = vmatpush3.bf16.msra.mxu1 %v12785_v30  ;;  %v3973_v30 = vrot.slane %v14587_v6, 1  ;;  %v3978_v6 = vrot.slane %v14623_v50, 1 }
 0x30c   : > { %11317 = vmatprep.subr.bf16.mxu1 %v12786_v63 }
 0x30d   : > { %v14865_v38 = vsel %vm1054_vm2, %v3972_v34, %v3973_v30  ;;  %v3996_v34 = vrot.slane %v14727_v57, 1  ;;  %v3999_v30 = vrot.slane %v14742_v1, 1 }
 0x30f   : > { %11318 = vmatpush3.bf16.msra.mxu1 %v12786_v63  ;;  %v3975_v63 = vrot.slane %v14608_v60, 1 }
 0x310   : > { %11351 = vmatprep.subr.bf16.mxu1 %v12787_v43 }
 0x312   : > { %11288 = vmatmul.mubr.msk.bf16.gmra.mrb[40].mxu1 %vm226_vm0, %v14585_v5 }
 0x313   : > { %11291 = vmatprep.mubr.msk.bf16.mxu1 %vm226_vm0, %v14608_v60 }
 0x31a   : > { %11292 = vmatmul.mubr.msk.bf16.gmra.mrb[44].mxu1 %vm226_vm0, %v14623_v50 }
 0x31b   : > { %11295 = vmatprep.mubr.msk.bf16.mxu1 %vm226_vm0, %v14643_v32 }
 0x322   : > { %11296 = vmatmul.mubr.msk.bf16.gmra.mrb[48].mxu1 %vm226_vm0, %v14661_v42 }
 0x323   : > { %11299 = vmatprep.mubr.msk.bf16.mxu1 %vm226_vm0, %v14678_v56 }
 0x32a   : > { %11300 = vmatmul.mubr.msk.bf16.gmra.mrb[52].mxu1 %vm226_vm0, %v14691_v45 }
 0x32b   : > { %11303 = vmatprep.mubr.msk.bf16.mxu1 %vm226_vm0, %v14707_v27 }
 0x332   : > { %11304 = vmatmul.mubr.msk.bf16.gmra.mrb[56].mxu1 %vm226_vm0, %v14727_v57 }
 0x333   : > { %11307 = vmatprep.mubr.msk.bf16.mxu1 %vm226_vm0, %v14742_v1 }
 0x33a   : > { %11308 = vmatmul.mubr.msk.bf16.gmra.mrb[60].mxu1 %vm226_vm0, %v14752_v29 }
 0x33b   : > { %11319 = vmatprep.mubr.msk.bf16.mxu1 %vm226_vm0, %v3959_v40  ;;  %v3979_v40 = vrot.slane %v14631_v53, 1  ;;  %v3985_v53 = vrot.slane %v14663_v59, 1  ;;  %v3991_v59 = vrot.slane %v14697_v52, 1  ;;  %v3997_v52 = vrot.slane %v14729_v46, 1 }
 0x33c   : > { %v4003_v46 = vrot.slane %v14756_v8, 1  ;;  %v12793_v8 = vld [vmem:[%s16523_s1 + $0x1b0] sm:$0xff]  }
 0x33d   : > { %v14879_v17 = vsel %vm1054_vm2, %v3978_v6, %v3979_v40  ;;  %v14907_v7 = vsel %vm1054_vm2, %v3990_v9, %v3991_v59  ;;  %v4002_v6 = vrot.slane %v14752_v29, 1  ;;  %v3225_v9 = vld [vmem:[#allocation2 + $0x190] sm:$0x3] }
 0x33f   : > { %v14933_v40 = vsel %vm1054_vm2, %v4002_v6, %v4003_v46  ;;  %v12800_v46 = vld [vmem:[%s16523_s1 + $0x1e8] sm:$0xff]  }
 0x342   : > { %11320 = vmatmul.mubr.msk.bf16.vlgmr.msra.gmra.mrb[32].mxu1 %vm226_vm0, %v14828_v26 }
 0x343   : > { %11323 = vmatprep.mubr.msk.bf16.mxu1 %vm226_vm0, %v14833_v22  ;;  %11352 = vmatpush3.bf16.msra.mxu1 %v12787_v43  ;;  %v3976_v43 = vrot.slane %v14610_v37, 1  ;;  %v3981_v37 = vrot.slane %v14643_v32, 1 }
 0x344   : > { %11353 = vmatprep.subr.bf16.mxu1 %v12788_v13 }
 0x345   : > { %v14870_v23 = vsel %vm1054_vm2, %v3975_v63, %v3976_v43  ;;  %v14884_v36 = vsel %vm1054_vm2, %v3981_v37, %v3982_v25  ;;  %v14921_v63 = vsel %vm1054_vm2, %v3996_v34, %v3997_v52  ;;  %v14926_v43 = vsel %vm1054_vm2, %v3999_v30, %v4000_v12  ;;  %v3224_v37 = vld [vmem:[#allocation2 + $0x188] sm:$0xff]  ;;  %v3223_v25 = vld [vmem:[#allocation2 + $0x180] sm:$0xff] }
 0x347   : > { %11354 = vmatpush3.bf16.msra.mxu1 %v12788_v13  ;;  %v3987_v13 = vrot.slane %v14678_v56, 1 }
 0x348   : > { %11355 = vmatprep.subr.bf16.mxu1 %v12789_v51 }
 0x349   : > { %v14898_v31 = vsel %vm1054_vm2, %v3987_v13, %v3988_v61  ;;  %v12797_v13 = vld [vmem:[%s16523_s1 + $0x1d0] sm:$0xff]   ;;  %v12799_v61 = vld [vmem:[%s16523_s1 + $0x1e0] sm:$0xff]  }
 0x34a   : > { %11324 = vmatmul.mubr.msk.bf16.gmra.mrb[36].mxu1 %vm226_vm0, %v14848_v28 }
 0x34b   : > { %11327 = vmatprep.mubr.msk.bf16.mxu1 %vm226_vm0, %v14853_v41  ;;  %11356 = vmatpush3.bf16.msra.mxu1 %v12789_v51  ;;  %v14893_v51 = vsel %vm1054_vm2, %v3984_v4, %v3985_v53  ;;  %v14979_v4 = vpack.c.bf16 %v3224_v37, %v3223_v25  ;;  %v12796_v53 = vld [vmem:[%s16523_s1 + $0x1c8] sm:$0xff]  }
 0x34c   : > { %11357 = vmatprep.subr.bf16.mxu1 %v12790_v44  ;;  %v12804_v25 = vld [vmem:[%s16523_s1 + $0x208] sm:$0xff]  }
 0x34d   : > { %v4510_v59 = vshll.u32 %v14979_v4, 16  ;;  %v4508_v34 = vshrl.u32 %v14979_v4, 16 }
 0x34f   : > { %11358 = vmatpush3.bf16.msra.mxu1 %v12790_v44  ;;  %v14912_v44 = vsel %vm1054_vm2, %v3993_v20, %v3994_v15  ;;  %v3262_v20 = vpack.c.bf16 %v3225_v9, %v3225_v9  ;;  %v4512_v15 = vrot.slane %v4510_v59, 1 }
 0x350   : > { %11391 = vmatprep.subr.bf16.mxu1 %v12791_v11 }
 0x351   : > { %v4515_v52 = vshll.u32 %v3262_v20, 16  ;;  %v4513_v30 = vor.u32 %v4512_v15, %v4508_v34 }
 0x352   : > { %11328 = vmatmul.mubr.msk.bf16.gmra.mrb[40].mxu1 %vm226_vm0, %v14865_v38 }
 0x353   : > { %11331 = vmatprep.mubr.msk.bf16.mxu1 %vm226_vm0, %v14870_v23  ;;  %v4517_v12 = vrot.slane %v4515_v52, 1 }
 0x355   : > { %v15028_v6 = vsel %vm370_vm1, %v4513_v30, %v4517_v12 }
 0x35a   : > { %11332 = vmatmul.mubr.msk.bf16.gmra.mrb[44].mxu1 %vm226_vm0, %v14879_v17 }
 0x35b   : > { %11335 = vmatprep.mubr.msk.bf16.mxu1 %vm226_vm0, %v14884_v36 }
 0x362   : > { %11336 = vmatmul.mubr.msk.bf16.gmra.mrb[48].mxu1 %vm226_vm0, %v14893_v51 }
 0x363   : > { %11339 = vmatprep.mubr.msk.bf16.mxu1 %vm226_vm0, %v14898_v31 }
 0x36a   : > { %11340 = vmatmul.mubr.msk.bf16.gmra.mrb[52].mxu1 %vm226_vm0, %v14907_v7 }
 0x36b   : > { %11343 = vmatprep.mubr.msk.bf16.mxu1 %vm226_vm0, %v14912_v44 }
 0x372   : > { %11344 = vmatmul.mubr.msk.bf16.gmra.mrb[56].mxu1 %vm226_vm0, %v14921_v63 }
 0x373   : > { %11347 = vmatprep.mubr.msk.bf16.mxu1 %vm226_vm0, %v14926_v43 }
 0x37a   : > { %11348 = vmatmul.mubr.msk.bf16.gmra.mrb[60].mxu1 %vm226_vm0, %v14933_v40 }
 0x37b   : > { %11359 = vmatprep.mubr.msk.bf16.mxu1 %vm226_vm0, %v14530_v58  ;;  %v12794_v58 = vld [vmem:[%s16523_s1 + $0x1b8] sm:$0xff]  }
 0x382   : > { %11360 = vmatmul.mubr.msk.bf16.vlgmr.msra.gmra.mrb[32].mxu1 %vm226_vm0, %v14524_v16 }
 0x383   : > { %11363 = vmatprep.mubr.msk.bf16.mxu1 %vm226_vm0, %v14544_v47  ;;  %11392 = vmatpush3.bf16.msra.mxu1 %v12791_v11  ;;  %v12795_v11 = vld [vmem:[%s16523_s1 + $0x1c0] sm:$0xff]  }
 0x384   : > { %11393 = vmatprep.subr.bf16.mxu1 %v12792_v49 }
 0x387   : > { %11394 = vmatpush3.bf16.msra.mxu1 %v12792_v49  ;;  %v12801_v49 = vld [vmem:[%s16523_s1 + $0x1f0] sm:$0xff]  }
 0x388   : > { %11395 = vmatprep.subr.bf16.mxu1 %v12793_v8 }
 0x38a   : > { %11364 = vmatmul.mubr.msk.bf16.gmra.mrb[36].mxu1 %vm226_vm0, %v14569_v21 }
 0x38b   : > { %11367 = vmatprep.mubr.msk.bf16.mxu1 %vm226_vm0, %v14585_v5  ;;  %11396 = vmatpush3.bf16.msra.mxu1 %v12793_v8  ;;  %v12803_v8 = vld [vmem:[%s16523_s1 + $0x200] sm:$0xff]  }
 0x38c   : > { %11397 = vmatprep.subr.bf16.mxu1 %v12794_v58 }
 0x38f   : > { %11398 = vmatpush3.bf16.msra.mxu1 %v12794_v58  ;;  %v4750_v58 = vrot.slane %v14979_v4, 1 }
 0x390   : > { %11431 = vmatprep.subr.bf16.mxu1 %v12795_v11 }
 0x392   : > { %11368 = vmatmul.mubr.msk.bf16.gmra.mrb[40].mxu1 %vm226_vm0, %v14608_v60 }
 0x393   : > { %11371 = vmatprep.mubr.msk.bf16.mxu1 %vm226_vm0, %v14623_v50 }
 0x39a   : > { %11372 = vmatmul.mubr.msk.bf16.gmra.mrb[44].mxu1 %vm226_vm0, %v14643_v32 }
 0x39b   : > { %11375 = vmatprep.mubr.msk.bf16.mxu1 %vm226_vm0, %v14661_v42 }
 0x3a2   : > { %11376 = vmatmul.mubr.msk.bf16.gmra.mrb[48].mxu1 %vm226_vm0, %v14678_v56 }
 0x3a3   : > { %11379 = vmatprep.mubr.msk.bf16.mxu1 %vm226_vm0, %v14691_v45 }
 0x3aa   : > { %11380 = vmatmul.mubr.msk.bf16.gmra.mrb[52].mxu1 %vm226_vm0, %v14707_v27 }
 0x3ab   : > { %11383 = vmatprep.mubr.msk.bf16.mxu1 %vm226_vm0, %v14727_v57 }
 0x3b2   : > { %11384 = vmatmul.mubr.msk.bf16.gmra.mrb[56].mxu1 %vm226_vm0, %v14742_v1 }
 0x3b3   : > { %11387 = vmatprep.mubr.msk.bf16.mxu1 %vm226_vm0, %v14752_v29 }
 0x3ba   : > { %11388 = vmatmul.mubr.msk.bf16.gmra.mrb[60].mxu1 %vm226_vm0, %v14979_v4 }
 0x3bb   : > { %11399 = vmatprep.mubr.msk.bf16.mxu1 %vm226_vm0, %v14554_v10  ;;  %v12798_v10 = vld [vmem:[%s16523_s1 + $0x1d8] sm:$0xff]  }
 0x3c2   : > { %11400 = vmatmul.mubr.msk.bf16.vlgmr.msra.gmra.mrb[32].mxu1 %vm226_vm0, %v14562_v39 }
 0x3c3   : > { %11403 = vmatprep.mubr.msk.bf16.mxu1 %vm226_vm0, %v14593_v19  ;;  %11432 = vmatpush3.bf16.msra.mxu1 %v12795_v11  ;;  %v4751_v11 = vrot.slane %v3262_v20, 1 }
 0x3c4   : > { %11433 = vmatprep.subr.bf16.mxu1 %v12796_v53 }
 0x3c5   : > { %v15076_v37 = vsel %vm1054_vm2, %v4750_v58, %v4751_v11 }
 0x3c7   : > { %11434 = vmatpush3.bf16.msra.mxu1 %v12796_v53  ;;  %v12805_v53 = vld [vmem:[%s16523_s1 + $0x210] sm:$0xff]  }
 0x3c8   : > { %11435 = vmatprep.subr.bf16.mxu1 %v12797_v13 }
 0x3ca   : > { %11404 = vmatmul.mubr.msk.bf16.gmra.mrb[36].mxu1 %vm226_vm0, %v14601_v48 }
 0x3cb   : > { %11407 = vmatprep.mubr.msk.bf16.mxu1 %vm226_vm0, %v14629_v24  ;;  %11436 = vmatpush3.bf16.msra.mxu1 %v12797_v13 }
 0x3cc   : > { %11437 = vmatprep.subr.bf16.mxu1 %v12798_v10 }
 0x3cf   : > { %11438 = vmatpush3.bf16.msra.mxu1 %v12798_v10 }
 0x3d0   : > { %11471 = vmatprep.subr.bf16.mxu1 %v12799_v61 }
 0x3d2   : > { %11408 = vmatmul.mubr.msk.bf16.gmra.mrb[40].mxu1 %vm226_vm0, %v14641_v54 }
 0x3d3   : > { %11411 = vmatprep.mubr.msk.bf16.mxu1 %vm226_vm0, %v14659_v55 }
 0x3da   : > { %11412 = vmatmul.mubr.msk.bf16.gmra.mrb[44].mxu1 %vm226_vm0, %v14672_v18 }
 0x3db   : > { %11415 = vmatprep.mubr.msk.bf16.mxu1 %vm226_vm0, %v14688_v2 }
 0x3e2   : > { %11416 = vmatmul.mubr.msk.bf16.gmra.mrb[48].mxu1 %vm226_vm0, %v14705_v0 }
 0x3e3   : > { %11419 = vmatprep.mubr.msk.bf16.mxu1 %vm226_vm0, %v14720_v3 }
 0x3ea   : > { %11420 = vmatmul.mubr.msk.bf16.gmra.mrb[52].mxu1 %vm226_vm0, %v14736_v35 }
 0x3eb   : > { %11423 = vmatprep.mubr.msk.bf16.mxu1 %vm226_vm0, %v14749_v62 }
 0x3f2   : > { %11424 = vmatmul.mubr.msk.bf16.gmra.mrb[56].mxu1 %vm226_vm0, %v14761_v33 }
 0x3f3   : > { %11427 = vmatprep.mubr.msk.bf16.mxu1 %vm226_vm0, %v14767_v14 }
 0x3fa   : > { %11428 = vmatmul.mubr.msk.bf16.gmra.mrb[60].mxu1 %vm226_vm0, %v15028_v6 }
 0x3fb   : > { %11439 = vmatprep.mubr.msk.bf16.mxu1 %vm226_vm0, %v14828_v26  ;;  %v12802_v26 = vld [vmem:[%s16523_s1 + $0x1f8] sm:$0xff]  }
 0x402   : > { %11440 = vmatmul.mubr.msk.bf16.vlgmr.msra.gmra.mrb[32].mxu1 %vm226_vm0, %v14833_v22 }
 0x403   : > { %11443 = vmatprep.mubr.msk.bf16.mxu1 %vm226_vm0, %v14848_v28  ;;  %11472 = vmatpush3.bf16.msra.mxu1 %v12799_v61 }
 0x404   : > { %11473 = vmatprep.subr.bf16.mxu1 %v12800_v46 }
 0x407   : > { %11474 = vmatpush3.bf16.msra.mxu1 %v12800_v46 }
 0x408   : > { %11475 = vmatprep.subr.bf16.mxu1 %v12801_v49 }
 0x40a   : > { %11444 = vmatmul.mubr.msk.bf16.gmra.mrb[36].mxu1 %vm226_vm0, %v14853_v41 }
 0x40b   : > { %11447 = vmatprep.mubr.msk.bf16.mxu1 %vm226_vm0, %v14865_v38  ;;  %11476 = vmatpush3.bf16.msra.mxu1 %v12801_v49 }
 0x40c   : > { %11477 = vmatprep.subr.bf16.mxu1 %v12802_v26 }
 0x40f   : > { %11478 = vmatpush3.bf16.msra.mxu1 %v12802_v26 }
 0x410   : > { %11511 = vmatprep.subr.bf16.mxu1 %v12803_v8 }
 0x412   : > { %11448 = vmatmul.mubr.msk.bf16.gmra.mrb[40].mxu1 %vm226_vm0, %v14870_v23 }
 0x413   : > { %11451 = vmatprep.mubr.msk.bf16.mxu1 %vm226_vm0, %v14879_v17 }
 0x41a   : > { %11452 = vmatmul.mubr.msk.bf16.gmra.mrb[44].mxu1 %vm226_vm0, %v14884_v36 }
 0x41b   : > { %11455 = vmatprep.mubr.msk.bf16.mxu1 %vm226_vm0, %v14893_v51 }
 0x422   : > { %11456 = vmatmul.mubr.msk.bf16.gmra.mrb[48].mxu1 %vm226_vm0, %v14898_v31 }
 0x423   : > { %11459 = vmatprep.mubr.msk.bf16.mxu1 %vm226_vm0, %v14907_v7 }
 0x42a   : > { %11460 = vmatmul.mubr.msk.bf16.gmra.mrb[52].mxu1 %vm226_vm0, %v14912_v44 }
 0x42b   : > { %11463 = vmatprep.mubr.msk.bf16.mxu1 %vm226_vm0, %v14921_v63 }
 0x432   : > { %11464 = vmatmul.mubr.msk.bf16.gmra.mrb[56].mxu1 %vm226_vm0, %v14926_v43 }
 0x433   : > { %11467 = vmatprep.mubr.msk.bf16.mxu1 %vm226_vm0, %v14933_v40 }
 0x43a   : > { %11468 = vmatmul.mubr.msk.bf16.gmra.mrb[60].mxu1 %vm226_vm0, %v15076_v37 }
 0x43b   : > { %11479 = vmatprep.mubr.msk.bf16.mxu1 %vm226_vm0, %v14524_v16  ;;  %v12806_v16 = vld [vmem:[%s16523_s1 + $0x218] sm:$0xff]  }
 0x442   : > { %11480 = vmatmul.mubr.msk.bf16.vlgmr.msra.gmra.mrb[32].mxu1 %vm226_vm0, %v14544_v47  ;;  %v12807_v47 = vld [vmem:[%s16523_s1 + $0x220] sm:$0xff]  }
 0x443   : > { %11483 = vmatprep.mubr.msk.bf16.mxu1 %vm226_vm0, %v14569_v21  ;;  %11512 = vmatpush3.bf16.msra.mxu1 %v12803_v8  ;;  %v3226_v21 = vld [vmem:[#allocation2 + $0x198] sm:$0xff] }
 0x444   : > { %11513 = vmatprep.subr.bf16.mxu1 %v12804_v25 }
 0x447   : > { %11514 = vmatpush3.bf16.msra.mxu1 %v12804_v25 }
 0x448   : > { %11515 = vmatprep.subr.bf16.mxu1 %v12805_v53 }
 0x44a   : > { %11484 = vmatmul.mubr.msk.bf16.gmra.mrb[36].mxu1 %vm226_vm0, %v14585_v5  ;;  %v3227_v5 = vld [vmem:[#allocation2 + $0x1a0] sm:$0xff] }
 0x44b   : > { %11487 = vmatprep.mubr.msk.bf16.mxu1 %vm226_vm0, %v14608_v60  ;;  %11516 = vmatpush3.bf16.msra.mxu1 %v12805_v53  ;;  %v3263_v60 = vpack.c.bf16 %v3227_v5, %v3226_v21 }
 0x44c   : > { %11517 = vmatprep.subr.bf16.mxu1 %v12806_v16 }
 0x44f   : > { %11518 = vmatpush3.bf16.msra.mxu1 %v12806_v16 }
 0x450   : > { %11551 = vmatprep.subr.bf16.mxu1 %v12807_v47 }
 0x452   : > { %11488 = vmatmul.mubr.msk.bf16.gmra.mrb[40].mxu1 %vm226_vm0, %v14623_v50  ;;  %v12808_v50 = vld [vmem:[%s16523_s1 + $0x228] sm:$0xff]  }
 0x453   : > { %11491 = vmatprep.mubr.msk.bf16.mxu1 %vm226_vm0, %v14643_v32  ;;  %v12809_v32 = vld [vmem:[%s16523_s1 + $0x230] sm:$0xff]  }
 0x45a   : > { %11492 = vmatmul.mubr.msk.bf16.gmra.mrb[44].mxu1 %vm226_vm0, %v14661_v42 }
 0x45b   : > { %11495 = vmatprep.mubr.msk.bf16.mxu1 %vm226_vm0, %v14678_v56 }
 0x462   : > { %11496 = vmatmul.mubr.msk.bf16.gmra.mrb[48].mxu1 %vm226_vm0, %v14691_v45  ;;  %v5453_v45 = vrot.slane %v3263_v60, 1 }
 0x463   : > { %11499 = vmatprep.mubr.msk.bf16.mxu1 %vm226_vm0, %v14707_v27 }
 0x46a   : > { %11500 = vmatmul.mubr.msk.bf16.gmra.mrb[52].mxu1 %vm226_vm0, %v14727_v57  ;;  %v12812_v57 = vld [vmem:[%s16523_s1 + $0x268] sm:$0xff]  }
 0x46b   : > { %11503 = vmatprep.mubr.msk.bf16.mxu1 %vm226_vm0, %v14742_v1  ;;  %v15208_v1 = vld [vmem:[%s16524_s2 + $0x1] ss:$0 sm:$0xff] }
 0x472   : > { %11504 = vmatmul.mubr.msk.bf16.gmra.mrb[56].mxu1 %vm226_vm0, %v14752_v29 }
 0x473   : > { %11507 = vmatprep.mubr.msk.bf16.mxu1 %vm226_vm0, %v14979_v4 }
 0x47a   : > { %11508 = vmatmul.mubr.msk.bf16.gmra.mrb[60].mxu1 %vm226_vm0, %v3263_v60 }
 0x47b   : > { %11519 = vmatprep.mubr.msk.bf16.mxu1 %vm226_vm0, %v14562_v39  ;;  %v12810_v39 = vld [vmem:[%s16523_s1 + $0x238] sm:$0xff]  }
 0x482   : > { %11520 = vmatmul.mubr.msk.bf16.vlgmr.msra.gmra.mrb[32].mxu1 %vm226_vm0, %v14593_v19  ;;  %v3228_v19 = vld [vmem:[#allocation2 + $0x1a8] sm:$0x3] }
 0x483   : > { %11523 = vmatprep.mubr.msk.bf16.mxu1 %vm226_vm0, %v14601_v48  ;;  %11552 = vmatpush3.bf16.msra.mxu1 %v12807_v47  ;;  %v3264_v48 = vpack.c.bf16 %v3228_v19, %v3228_v19 }
 0x484   : > { %11553 = vmatprep.subr.bf16.mxu1 %v12808_v50 }
 0x485   : > { %v5218_v42 = vshll.u32 %v3264_v48, 16 }
 0x487   : > { %11554 = vmatpush3.bf16.msra.mxu1 %v12808_v50  ;;  %v5220_v56 = vrot.slane %v5218_v42, 1 }
 0x488   : > { %11555 = vmatprep.subr.bf16.mxu1 %v12809_v32 }
 0x48a   : > { %11524 = vmatmul.mubr.msk.bf16.gmra.mrb[36].mxu1 %vm226_vm0, %v14629_v24  ;;  %v5213_v24 = vshll.u32 %v3263_v60, 16 }
 0x48b   : > { %11527 = vmatprep.mubr.msk.bf16.mxu1 %vm226_vm0, %v14641_v54  ;;  %11556 = vmatpush3.bf16.msra.mxu1 %v12809_v32  ;;  %v5211_v54 = vshrl.u32 %v3263_v60, 16 }
 0x48c   : > { %11557 = vmatprep.subr.bf16.mxu1 %v12810_v39 }
 0x48f   : > { %11558 = vmatpush3.bf16.msra.mxu1 %v12810_v39 }
 0x492   : > { %11528 = vmatmul.mubr.msk.bf16.gmra.mrb[40].mxu1 %vm226_vm0, %v14659_v55  ;;  %v5215_v55 = vrot.slane %v5213_v24, 1 }
 0x493   : > { %11531 = vmatprep.mubr.msk.bf16.mxu1 %vm226_vm0, %v14672_v18 }
 0x494   : > { %v5216_v18 = vor.u32 %v5215_v55, %v5211_v54 }
 0x49a   : > { %11532 = vmatmul.mubr.msk.bf16.gmra.mrb[44].mxu1 %vm226_vm0, %v14688_v2  ;;  %v5221_v2 = vsel %vm370_vm1, %v5216_v18, %v5220_v56 }
 0x49b   : > { %11535 = vmatprep.mubr.msk.bf16.mxu1 %vm226_vm0, %v14705_v0  ;;  %v5454_v0 = vrot.slane %v3264_v48, 1 }
 0x49d   : > { %v5455_v27 = vsel %vm1054_vm2, %v5453_v45, %v5454_v0 }
 0x4a2   : > { %11536 = vmatmul.mubr.msk.bf16.gmra.mrb[48].mxu1 %vm226_vm0, %v14720_v3  ;;  %v12811_v3 = vld [vmem:[%s16523_s1 + $0x260] sm:$0xff]  }
 0x4a3   : > { %11539 = vmatprep.mubr.msk.bf16.mxu1 %vm226_vm0, %v14736_v35  ;;  %11591 = vmatprep.subr.bf16.mxu0 %v12811_v3  ;;  %v12813_v35 = vld [vmem:[%s16523_s1 + $0x270] sm:$0xff]  }
 0x4a4   : > { %11592 = vmatpush3.bf16.msra.mxu0 %v12811_v3  ;;  %v12814_v3 = vld [vmem:[%s16523_s1 + $0x278] sm:$0xff]  }
 0x4a5   : > { %11593 = vmatprep.subr.bf16.mxu0 %v12812_v57 }
 0x4a8   : > { %11594 = vmatpush3.bf16.msra.mxu0 %v12812_v57 }
 0x4a9   : > { %11595 = vmatprep.subr.bf16.mxu0 %v12813_v35 }
 0x4aa   : > { %11540 = vmatmul.mubr.msk.bf16.gmra.mrb[52].mxu1 %vm226_vm0, %v14749_v62 }
 0x4ab   : > { %11543 = vmatprep.mubr.msk.bf16.mxu1 %vm226_vm0, %v14761_v33 }
 0x4ac   : > { %11596 = vmatpush3.bf16.msra.mxu0 %v12813_v35 }
 0x4ad   : > { %11597 = vmatprep.subr.bf16.mxu0 %v12814_v3 }
 0x4b0   : > { %11598 = vmatpush3.bf16.msra.mxu0 %v12814_v3 }
 0x4b2   : > { %11544 = vmatmul.mubr.msk.bf16.gmra.mrb[56].mxu1 %vm226_vm0, %v14767_v14 }
 0x4b3   : > { %11547 = vmatprep.mubr.msk.bf16.mxu1 %vm226_vm0, %v15028_v6 }
 0x4ba   : > { %11548 = vmatmul.mubr.msk.bf16.gmra.mrb[60].mxu1 %vm226_vm0, %v5221_v2 }
 0x4bb   : > { %11559 = vmatprep.mubr.msk.bf16.mxu1 %vm226_vm0, %v14833_v22 }
 0x4c2   : > { %11560 = vmatmul.mubr.msk.bf16.vlgmr.msra.gmra.mrb[32].mxu1 %vm226_vm0, %v14848_v28 }
 0x4c3   : > { %11563 = vmatprep.mubr.msk.bf16.mxu1 %vm226_vm0, %v14853_v41 }
 0x4ca   : > { %11564 = vmatmul.mubr.msk.bf16.gmra.mrb[36].mxu1 %vm226_vm0, %v14865_v38 }
 0x4cb   : > { %11567 = vmatprep.mubr.msk.bf16.mxu1 %vm226_vm0, %v14870_v23 }
 0x4d2   : > { %11568 = vmatmul.mubr.msk.bf16.gmra.mrb[40].mxu1 %vm226_vm0, %v14879_v17 }
 0x4d3   : > { %11571 = vmatprep.mubr.msk.bf16.mxu1 %vm226_vm0, %v14884_v36 }
 0x4da   : > { %11572 = vmatmul.mubr.msk.bf16.gmra.mrb[44].mxu1 %vm226_vm0, %v14893_v51 }
 0x4db   : > { %11575 = vmatprep.mubr.msk.bf16.mxu1 %vm226_vm0, %v14898_v31 }
 0x4e2   : > { %11576 = vmatmul.mubr.msk.bf16.gmra.mrb[48].mxu1 %vm226_vm0, %v14907_v7 }
 0x4e3   : > { %11579 = vmatprep.mubr.msk.bf16.mxu1 %vm226_vm0, %v14912_v44 }
 0x4ea   : > { %11580 = vmatmul.mubr.msk.bf16.gmra.mrb[52].mxu1 %vm226_vm0, %v14921_v63 }
 0x4eb   : > { %11583 = vmatprep.mubr.msk.bf16.mxu1 %vm226_vm0, %v14926_v43 }
 0x4f2   : > { %11584 = vmatmul.mubr.msk.bf16.gmra.mrb[56].mxu1 %vm226_vm0, %v14933_v40 }
 0x4f3   : > { %11587 = vmatprep.mubr.msk.bf16.mxu1 %vm226_vm0, %v15076_v37 }
 0x4fa   : > { %11588 = vmatmul.mubr.msk.bf16.gmra.mrb[60].mxu1 %vm226_vm0, %v5455_v27 }
 0x595   : > { %v11561_v62 = vpop.f32.mrb[32].mxu1 }
 0x596   : > { %v15211_v29 = vadd.f32 %v11561_v62, %v15208_v1  ;;  %v5526_v33 = vpop.f32.mrb[33].mxu1 }
 0x597   : > { %v15214_v14 = vadd.f32 %v15208_v1, %v5526_v33  ;;  %v11562_v22 = vpop.f32.mrb[34].mxu1 }
 0x598   : > { %v5727_v28 = vsub.f32 0.0, %v15211_v29  ;;  %v15218_v41 = vadd.f32 %v11562_v22, %v15208_v1  ;;  %v5529_v38 = vpop.f32.mrb[35].mxu1 }
 0x599   : > { %v5725_v23 = vsub.f32 0.0, %v15214_v14  ;;  %v15222_v17 = vadd.f32 %v15208_v1, %v5529_v38 }
 0x59a   : > { %v5761_v36 = vmul.f32 1.442695, %v5727_v28  ;;  %v5728_v51 = vsub.f32 0.0, %v15218_v41 }
 0x59b   : > { %v5757_v31 = vmul.f32 1.442695, %v5725_v23  ;;  %v5726_v7 = vsub.f32 0.0, %v15222_v17 }
 0x59c   : > { %12987 = vpow2.f32 %v5761_v36  ;;  %v5763_v44 = vmul.f32 1.442695, %v5728_v51 }
 0x59d   : > { %12989 = vpow2.f32 %v5757_v31  ;;  %v5759_v63 = vmul.f32 1.442695, %v5726_v7  ;;  %v11565_v43 = vpop.f32.mrb[36].mxu1 }
 0x59e   : > { %12991 = vpow2.f32 %v5763_v44  ;;  %v15227_v40 = vadd.f32 %v11565_v43, %v15208_v1  ;;  %v5542_v4 = vpop.f32.mrb[37].mxu1 }
 0x59f   : > { %12993 = vpow2.f32 %v5759_v63  ;;  %v15230_v13 = vadd.f32 %v15208_v1, %v5542_v4  ;;  %v11566_v10 = vpop.f32.mrb[38].mxu1 }
 0x5a0   : > { %v5731_v61 = vsub.f32 0.0, %v15227_v40  ;;  %v15234_v9 = vadd.f32 %v11566_v10, %v15208_v1  ;;  %v5545_v59 = vpop.f32.mrb[39].mxu1 }
 0x5a1   : > { %v5729_v20 = vsub.f32 0.0, %v15230_v13  ;;  %v15238_v15 = vadd.f32 %v15208_v1, %v5545_v59 }
 0x5a2   : > { %v5769_v34 = vmul.f32 1.442695, %v5731_v61  ;;  %v5732_v52 = vsub.f32 0.0, %v15234_v9 }
 0x5a3   : > { %v5765_v30 = vmul.f32 1.442695, %v5729_v20  ;;  %v5730_v12 = vsub.f32 0.0, %v15238_v15 }
 0x5a4   : > { %12995 = vpow2.f32 %v5769_v34  ;;  %v5771_v6 = vmul.f32 1.442695, %v5732_v52 }
 0x5a5   : > { %12997 = vpow2.f32 %v5765_v30  ;;  %v5767_v46 = vmul.f32 1.442695, %v5730_v12  ;;  %v11569_v49 = vpop.f32.mrb[40].mxu1 }
 0x5a6   : > { %v12988_v26 = vpop.eup %12987  ;;  %12999 = vpow2.f32 %v5771_v6  ;;  %v15243_v8 = vadd.f32 %v11569_v49, %v15208_v1  ;;  %v5558_v58 = vpop.f32.mrb[41].mxu1  ;;  %v6077_v6 = vld [vmem:[#allocation2] sm:$0xff] }
 0x5a7   : > { %v12990_v11 = vpop.eup %12989  ;;  %v5823_v37 = vadd.f32 1.0, %v12988_v26  ;;  %13001 = vpow2.f32 %v5767_v46  ;;  %v15246_v25 = vadd.f32 %v15208_v1, %v5558_v58  ;;  %v11570_v53 = vpop.f32.mrb[42].mxu1  ;;  %v6078_v46 = vld [vmem:[#allocation2 + $0x8] sm:$0xff] }
 0x5a8   : > { %v12992_v16 = vpop.eup %12991  ;;  %v5821_v47 = vadd.f32 1.0, %v12990_v11  ;;  %v5735_v21 = vsub.f32 0.0, %v15243_v8  ;;  %v15250_v5 = vadd.f32 %v11570_v53, %v15208_v1  ;;  %v5561_v60 = vpop.f32.mrb[43].mxu1 }
 0x5a9   : > { %v12994_v50 = vpop.eup %12993  ;;  %13003 = vrcp.f32 %v5823_v37  ;;  %v5824_v32 = vadd.f32 1.0, %v12992_v16  ;;  %v5733_v39 = vsub.f32 0.0, %v15246_v25  ;;  %v15254_v19 = vadd.f32 %v15208_v1, %v5561_v60  ;;  %v6079_v16 = vld [vmem:[#allocation2 + $0x10] sm:$0x3] }
 0x5aa   : > { %13005 = vrcp.f32 %v5821_v47  ;;  %v5822_v48 = vadd.f32 1.0, %v12994_v50  ;;  %v5777_v24 = vmul.f32 1.442695, %v5735_v21  ;;  %v5736_v54 = vsub.f32 0.0, %v15250_v5 }
 0x5ab   : > { %13007 = vrcp.f32 %v5824_v32  ;;  %v5773_v55 = vmul.f32 1.442695, %v5733_v39  ;;  %v5734_v42 = vsub.f32 0.0, %v15254_v19  ;;  %v15285_v47 = vpack.c.bf16 %v6078_v46, %v6077_v6 }
 0x5ac   : > { %13009 = vrcp.f32 %v5822_v48  ;;  %v5779_v18 = vmul.f32 1.442695, %v5736_v54 }
 0x5ad   : > { %13011 = vpow2.f32 %v5777_v24  ;;  %v5775_v56 = vmul.f32 1.442695, %v5734_v42  ;;  %v11573_v2 = vpop.f32.mrb[44].mxu1  ;;  %v15296_v42 = vpack.c.bf16 %v6079_v16, %v6079_v16 }
 0x5ae   : > { %v12996_v45 = vpop.eup %12995  ;;  %13013 = vpow2.f32 %v5773_v55  ;;  %v15259_v0 = vadd.f32 %v11573_v2, %v15208_v1  ;;  %v5574_v27 = vpop.f32.mrb[45].mxu1 }
 0x5af   : > { %v12998_v57 = vpop.eup %12997  ;;  %v5827_v35 = vadd.f32 1.0, %v12996_v45  ;;  %13015 = vpow2.f32 %v5779_v18  ;;  %v15265_v62 = vadd.f32 %v15208_v1, %v5574_v27  ;;  %v11574_v33 = vpop.f32.mrb[46].mxu1 }
 0x5b0   : > { %v13000_v22 = vpop.eup %12999  ;;  %v5825_v28 = vadd.f32 1.0, %v12998_v57  ;;  %13017 = vpow2.f32 %v5775_v56  ;;  %v5739_v38 = vsub.f32 0.0, %v15259_v0  ;;  %v15269_v23 = vadd.f32 %v11574_v33, %v15208_v1  ;;  %v5577_v36 = vpop.f32.mrb[47].mxu1 }
 0x5b1   : > { %v13002_v51 = vpop.eup %13001  ;;  %13019 = vrcp.f32 %v5827_v35  ;;  %v5828_v31 = vadd.f32 1.0, %v13000_v22  ;;  %v5737_v7 = vsub.f32 0.0, %v15265_v62  ;;  %v15273_v44 = vadd.f32 %v15208_v1, %v5577_v36 }
 0x5b2   : > { %13021 = vrcp.f32 %v5825_v28  ;;  %v5826_v63 = vadd.f32 1.0, %v13002_v51  ;;  %v5785_v43 = vmul.f32 1.442695, %v5739_v38  ;;  %v5740_v4 = vsub.f32 0.0, %v15269_v23 }
 0x5b3   : > { %v13004_v10 = vpop.eup %13003  ;;  %13023 = vrcp.f32 %v5828_v31  ;;  %v5781_v61 = vmul.f32 1.442695, %v5737_v7  ;;  %v5738_v59 = vsub.f32 0.0, %v15273_v44  ;;  %v6179_v28 = vshll.u32 %v15285_v47, 16 }
 0x5b4   : > { %v13006_v20 = vpop.eup %13005  ;;  %13025 = vrcp.f32 %v5826_v63  ;;  %v5787_v34 = vmul.f32 1.442695, %v5740_v4  ;;  %v6184_v31 = vshll.u32 %v15296_v42, 16  ;;  %v6177_v4 = vshrl.u32 %v15285_v47, 16 }
 0x5b5   : > { %v13008_v52 = vpop.eup %13007  ;;  %13027 = vpow2.f32 %v5785_v43  ;;  %v5783_v30 = vmul.f32 1.442695, %v5738_v59  ;;  %5917 = vrot.lane.b32.xlu0 %v13006_v20, %s13384_s22  ;;  %v11577_v12 = vpop.f32.mrb[48].mxu1  ;;  %v6181_v20 = vrot.slane %v6179_v28, 1 }
 0x5b6   : > { %v13010_v49 = vpop.eup %13009  ;;  %13029 = vpow2.f32 %v5781_v61  ;;  %v15279_v26 = vadd.f32 %v11577_v12, %v15208_v1  ;;  %v5590_v58 = vpop.f32.mrb[49].mxu1 }
 0x5b7   : > { %v13012_v11 = vpop.eup %13011  ;;  %13031 = vpow2.f32 %v5787_v34  ;;  %v15282_v37 = vadd.f32 %v15208_v1, %v5590_v58  ;;  %5919 = vrot.lane.b32.xlu1 %v13010_v49, %s13384_s22  ;;  %v11578_v53 = vpop.f32.mrb[50].mxu1  ;;  %v6186_v34 = vrot.slane %v6184_v31, 1 }
 0x5b8   : > { %v13014_v21 = vpop.eup %13013  ;;  %v5831_v60 = vadd.f32 1.0, %v13012_v11  ;;  %13033 = vpow2.f32 %v5783_v30  ;;  %v5743_v50 = vsub.f32 0.0, %v15279_v26  ;;  %v15289_v32 = vadd.f32 %v11578_v53, %v15208_v1  ;;  %v5593_v39 = vpop.f32.mrb[51].mxu1 }
 0x5b9   : > { %v13016_v48 = vpop.eup %13015  ;;  %v5829_v24 = vadd.f32 1.0, %v13014_v21  ;;  %v5741_v54 = vsub.f32 0.0, %v15282_v37  ;;  %v15293_v55 = vadd.f32 %v15208_v1, %v5593_v39  ;;  %5921 = vrot.lane.b32.xlu0 %v13004_v10, %s13384_s22 }
 0x5ba   : > { %v13018_v18 = vpop.eup %13017  ;;  %13035 = vrcp.f32 %v5831_v60  ;;  %v5832_v56 = vadd.f32 1.0, %v13016_v48  ;;  %v5793_v2 = vmul.f32 1.442695, %v5743_v50  ;;  %v5744_v45 = vsub.f32 0.0, %v15289_v32 }
 0x5bb   : > { %v13020_v27 = vpop.eup %13019  ;;  %13037 = vrcp.f32 %v5829_v24  ;;  %v5830_v3 = vadd.f32 1.0, %v13018_v18  ;;  %v5789_v57 = vmul.f32 1.442695, %v5741_v54  ;;  %v5742_v35 = vsub.f32 0.0, %v15293_v55  ;;  %5923 = vrot.lane.b32.xlu1 %v13008_v52, %s13384_s22  ;;  %v15315_v52 = vld [vmem:[%s16523_s1 + $0x240] sm:$0xff]  }
 0x5bc   : > { %v13022_v33 = vpop.eup %13021  ;;  %13039 = vrcp.f32 %v5832_v56  ;;  %v5795_v22 = vmul.f32 1.442695, %v5744_v45  ;;  %11631 = vmatprep.subr.bf16.mxu0 %v15315_v52 }
 0x5bd   : > { %v13024_v38 = vpop.eup %13023  ;;  %13041 = vrcp.f32 %v5830_v3  ;;  %v5791_v36 = vmul.f32 1.442695, %v5742_v35  ;;  %5925 = vrot.lane.b32.xlu0 %v13022_v33, %s13384_s22  ;;  %v11581_v51 = vpop.f32.mrb[52].mxu1 }
 0x5be   : > { %v13026_v7 = vpop.eup %13025  ;;  %13043 = vpow2.f32 %v5793_v2  ;;  %v15305_v63 = vadd.f32 %v11581_v51, %v15208_v1  ;;  %v5606_v43 = vpop.f32.mrb[53].mxu1  ;;  %v6182_v2 = vor.u32 %v6181_v20, %v6177_v4 }
 0x5bf   : > { %v13028_v10 = vpop.eup %13027  ;;  %13045 = vpow2.f32 %v5789_v57  ;;  %v15309_v61 = vadd.f32 %v15208_v1, %v5606_v43  ;;  %5927 = vrot.lane.b32.xlu1 %v13026_v7, %s13384_s22  ;;  %v11582_v59 = vpop.f32.mrb[54].mxu1 }
 0x5c0   : > { %v13030_v30 = vpop.eup %13029  ;;  %v5835_v12 = vadd.f32 1.0, %v13028_v10  ;;  %13047 = vpow2.f32 %v5795_v22  ;;  %v5747_v6 = vsub.f32 0.0, %v15305_v63  ;;  %v15319_v46 = vadd.f32 %v11582_v59, %v15208_v1  ;;  %v5609_v49 = vpop.f32.mrb[55].mxu1 }
 0x5c1   : > { %v13032_v58 = vpop.eup %13031  ;;  %v5833_v11 = vadd.f32 1.0, %v13030_v30  ;;  %13049 = vpow2.f32 %v5791_v36  ;;  %v5745_v53 = vsub.f32 0.0, %v15309_v61  ;;  %v15323_v16 = vadd.f32 %v15208_v1, %v5609_v49  ;;  %5929 = vrot.lane.b32.xlu0 %v13020_v27, %s13384_s22 }
 0x5c2   : > { %v13034_v21 = vpop.eup %13033  ;;  %13051 = vrcp.f32 %v5835_v12  ;;  %v5836_v60 = vadd.f32 1.0, %v13032_v58  ;;  %v5801_v50 = vmul.f32 1.442695, %v5747_v6  ;;  %v5748_v39 = vsub.f32 0.0, %v15319_v46 }
 0x5c3   : > { %13053 = vrcp.f32 %v5833_v11  ;;  %v5834_v48 = vadd.f32 1.0, %v13034_v21  ;;  %v5797_v24 = vmul.f32 1.442695, %v5745_v53  ;;  %v5746_v54 = vsub.f32 0.0, %v15323_v16  ;;  %5931 = vrot.lane.b32.xlu1 %v13024_v38, %s13384_s22 }
 0x5c4   : > { %v13036_v18 = vpop.eup %13035  ;;  %13055 = vrcp.f32 %v5836_v60  ;;  %v5803_v56 = vmul.f32 1.442695, %v5748_v39  ;;  %v6187_v22 = vsel %vm370_vm1, %v6182_v2, %v6186_v34 }
 0x5c5   : > { %v13038_v45 = vpop.eup %13037  ;;  %13057 = vrcp.f32 %v5834_v48  ;;  %v5799_v27 = vmul.f32 1.442695, %v5746_v54  ;;  %v11585_v3 = vpop.f32.mrb[56].mxu1  ;;  %11599 = vmatprep.mubr.msk.bf16.mxu0 %vm226_vm0, %v6187_v22 }
 0x5c6   : > { %v13040_v57 = vpop.eup %13039  ;;  %13059 = vpow2.f32 %v5801_v50  ;;  %5933 = vrot.lane.b32.xlu0 %v13038_v45, %s13384_s22  ;;  %v15332_v35 = vadd.f32 %v11585_v3, %v15208_v1  ;;  %v5622_v33 = vpop.f32.mrb[57].mxu1 }
 0x5c7   : > { %v13042_v28 = vpop.eup %13041  ;;  %13061 = vpow2.f32 %v5797_v24  ;;  %v15336_v38 = vadd.f32 %v15208_v1, %v5622_v33  ;;  %v11586_v36 = vpop.f32.mrb[58].mxu1 }
 0x5c8   : > { %v13044_v51 = vpop.eup %13043  ;;  %13063 = vpow2.f32 %v5803_v56  ;;  %v5751_v31 = vsub.f32 0.0, %v15332_v35  ;;  %5935 = vrot.lane.b32.xlu1 %v13042_v28, %s13384_s22  ;;  %v15342_v7 = vadd.f32 %v11586_v36, %v15208_v1  ;;  %v5625_v43 = vpop.f32.mrb[59].mxu1 }
 0x5c9   : > { %v13046_v4 = vpop.eup %13045  ;;  %v5839_v10 = vadd.f32 1.0, %v13044_v51  ;;  %13065 = vpow2.f32 %v5799_v27  ;;  %v5749_v59 = vsub.f32 0.0, %v15336_v38  ;;  %v15346_v20 = vadd.f32 %v15208_v1, %v5625_v43 }
 0x5ca   : > { %v13048_v34 = vpop.eup %13047  ;;  %v5837_v30 = vadd.f32 1.0, %v13046_v4  ;;  %v5752_v12 = vsub.f32 0.0, %v15342_v7  ;;  %5937 = vrot.lane.b32.xlu0 %v13036_v18, %s13384_s22  ;;  %v5809_v58 = vmul.f32 1.442695, %v5751_v31 }
 0x5cb   : > { %v13050_v6 = vpop.eup %13049  ;;  %13067 = vrcp.f32 %v5839_v10  ;;  %v5840_v49 = vadd.f32 1.0, %v13048_v34  ;;  %v5750_v11 = vsub.f32 0.0, %v15346_v20  ;;  %v5805_v60 = vmul.f32 1.442695, %v5749_v59 }
 0x5cc   : > { %v13052_v53 = vpop.eup %13051  ;;  %13069 = vrcp.f32 %v5837_v30  ;;  %v5838_v21 = vadd.f32 1.0, %v13050_v6  ;;  %5939 = vrot.lane.b32.xlu1 %v13040_v57, %s13384_s22  ;;  %v5811_v39 = vmul.f32 1.442695, %v5752_v12 }
 0x5cd   : > { %v13054_v50 = vpop.eup %13053  ;;  %13071 = vrcp.f32 %v5840_v49  ;;  %v11589_v48 = vpop.f32.mrb[60].mxu1  ;;  %v5807_v54 = vmul.f32 1.442695, %v5750_v11 }
 0x5ce   : > { %v13056_v24 = vpop.eup %13055  ;;  %13073 = vrcp.f32 %v5838_v21  ;;  %5941 = vrot.lane.b32.xlu0 %v13054_v50, %s13384_s22  ;;  %v15354_v18 = vadd.f32 %v11589_v48, %v15208_v1  ;;  %v5638_v56 = vpop.f32.mrb[61].mxu1 }
 0x5cf   : > { %v13058_v2 = vpop.eup %13057  ;;  %13075 = vpow2.f32 %v5809_v58  ;;  %v15357_v45 = vadd.f32 %v15208_v1, %v5638_v56  ;;  %v11590_v27 = vpop.f32.mrb[62].mxu1 }
 0x5d0   : > { %v13060_v3 = vpop.eup %13059  ;;  %13077 = vpow2.f32 %v5805_v60  ;;  %v5755_v57 = vsub.f32 0.0, %v15354_v18  ;;  %5943 = vrot.lane.b32.xlu1 %v13058_v2, %s13384_s22  ;;  %v15362_v33 = vadd.f32 %v11590_v27, %v15208_v1  ;;  %v5641_v22 = vpop.f32.mrb[63].mxu1 }
 0x5d1   : > { %v13062_v28 = vpop.eup %13061  ;;  %v5843_v36 = vadd.f32 1.0, %v13060_v3  ;;  %13079 = vpow2.f32 %v5811_v39  ;;  %v5753_v51 = vsub.f32 0.0, %v15357_v45  ;;  %v15366_v31 = vadd.f32 %v15208_v1, %v5641_v22 }
 0x5d2   : > { %v13064_v43 = vpop.eup %13063  ;;  %v5841_v4 = vadd.f32 1.0, %v13062_v28  ;;  %13081 = vpow2.f32 %v5807_v54  ;;  %v5756_v10 = vsub.f32 0.0, %v15362_v33  ;;  %5945 = vrot.lane.b32.xlu0 %v13052_v53, %s13384_s22  ;;  %v5817_v30 = vmul.f32 1.442695, %v5755_v57 }
 0x5d3   : > { %v13066_v59 = vpop.eup %13065  ;;  %13083 = vrcp.f32 %v5843_v36  ;;  %v5844_v34 = vadd.f32 1.0, %v13064_v43  ;;  %v5754_v12 = vsub.f32 0.0, %v15366_v31  ;;  %v5813_v49 = vmul.f32 1.442695, %v5753_v51 }
 0x5d4   : > { %13085 = vrcp.f32 %v5841_v4  ;;  %v5842_v6 = vadd.f32 1.0, %v13066_v59  ;;  %5947 = vrot.lane.b32.xlu1 %v13056_v24, %s13384_s22  ;;  %v5819_v58 = vmul.f32 1.442695, %v5756_v10 }
 0x5d5   : > { %v13068_v1 = vpop.eup %13067  ;;  %13087 = vrcp.f32 %v5844_v34  ;;  %v5815_v21 = vmul.f32 1.442695, %v5754_v12 }
 0x5d6   : > { %v13070_v11 = vpop.eup %13069  ;;  %13089 = vrcp.f32 %v5842_v6 }
 0x5d7   : > { %v13072_v60 = vpop.eup %13071  ;;  %13091 = vpow2.f32 %v5817_v30  ;;  %5949 = vrot.lane.b32.xlu0 %v13070_v11, %s13384_s22 }
 0x5d8   : > { %v13074_v53 = vpop.eup %13073  ;;  %13093 = vpow2.f32 %v5813_v49 }
 0x5d9   : > { %v13076_v50 = vpop.eup %13075  ;;  %13095 = vpow2.f32 %v5819_v58  ;;  %5951 = vrot.lane.b32.xlu1 %v13074_v53, %s13384_s22 }
 0x5da   : > { %v13078_v39 = vpop.eup %13077  ;;  %13097 = vpow2.f32 %v5815_v21  ;;  %v5847_v2 = vadd.f32 1.0, %v13076_v50 }
 0x5db   : > { %v13080_v48 = vpop.eup %13079  ;;  %v5845_v24 = vadd.f32 1.0, %v13078_v39  ;;  %5953 = vrot.lane.b32.xlu0 %v13068_v1, %s13384_s22 }
 0x5dc   : > { %v13082_v54 = vpop.eup %13081  ;;  %v5848_v22 = vadd.f32 1.0, %v13080_v48 }
 0x5dd   : > { %v13084_v56 = vpop.eup %13083  ;;  %13099 = vrcp.f32 %v5845_v24  ;;  %v5846_v27 = vadd.f32 1.0, %v13082_v54  ;;  %5955 = vrot.lane.b32.xlu1 %v13072_v60, %s13384_s22 }
 0x5de   : > { %v13086_v3 = vpop.eup %13085 }
 0x5df   : > { %v13088_v57 = vpop.eup %13087  ;;  %13101 = vrcp.f32 %v5846_v27  ;;  %5957 = vrot.lane.b32.xlu0 %v13086_v3, %s13384_s22 }
 0x5e0   : > { %v13090_v28 = vpop.eup %13089  ;;  %13103 = vrcp.f32 %v5847_v2 }
 0x5e1   : > { %v13092_v36 = vpop.eup %13091  ;;  %5959 = vrot.lane.b32.xlu1 %v13090_v28, %s13384_s22  ;;  %13105 = vrcp.f32 %v5848_v22 }
 0x5e2   : > { %v13094_v51 = vpop.eup %13093  ;;  %v5851_v59 = vadd.f32 1.0, %v13092_v36 }
 0x5e3   : > { %v13096_v43 = vpop.eup %13095  ;;  %v5849_v4 = vadd.f32 1.0, %v13094_v51  ;;  %5961 = vrot.lane.b32.xlu0 %v13084_v56, %s13384_s22 }
 0x5e4   : > { %v13098_v10 = vpop.eup %13097  ;;  %v5852_v12 = vadd.f32 1.0, %v13096_v43 }
 0x5e5   : > { %13107 = vrcp.f32 %v5849_v4  ;;  %v5850_v34 = vadd.f32 1.0, %v13098_v10  ;;  %5963 = vrot.lane.b32.xlu1 %v13088_v57, %s13384_s22 }
 0x5e7   : > { %v13100_v30 = vpop.eup %13099  ;;  %13109 = vrcp.f32 %v5850_v34 }
 0x5e8   : > { %5965 = vrot.lane.b32.xlu0 %v13100_v30, %s13384_s22  ;;  %13111 = vrcp.f32 %v5851_v59 }
 0x5e9   : > { %v13102_v6 = vpop.eup %13101  ;;  %13113 = vrcp.f32 %v5852_v12 }
 0x5ea   : > { %5967 = vrot.lane.b32.xlu1 %v13102_v6, %s13384_s22  ;;  %v13104_v49 = vpop.eup %13103 }
 0x5eb   : > { %v13106_v1 = vpop.eup %13105 }
 0x5ec   : > { %5969 = vrot.lane.b32.xlu0 %v13104_v49, %s13384_s22 }
 0x5ee   : > { %5971 = vrot.lane.b32.xlu1 %v13106_v1, %s13384_s22 }
 0x5ef   : > { %v13108_v58 = vpop.eup %13107 }
 0x5f0   : > { %5973 = vrot.lane.b32.xlu0 %v13108_v58, %s13384_s22 }
 0x5f1   : > { %v13110_v11 = vpop.eup %13109 }
 0x5f2   : > { %5975 = vrot.lane.b32.xlu1 %v13110_v11, %s13384_s22  ;;  %v13112_v21 = vpop.eup %13111 }
 0x5f3   : > { %v13114_v60 = vpop.eup %13113 }
 0x5f4   : > { %5977 = vrot.lane.b32.xlu0 %v13112_v21, %s13384_s22 }
 0x5f6   : > { %5979 = vrot.lane.b32.xlu1 %v13114_v60, %s13384_s22 }
 0x627   : > { %v5918_v53 = vpop.permute.xlu0 %5917 }
 0x628   : > { %v6013_v50 = vmul.f32 %v5918_v53, %v15214_v14  ;;  %v12816_v53 = vld [vmem:[%s16523_s1 + $0x248] sm:$0xff]  }
 0x629   : > { %v5920_v39 = vpop.permute.xlu1 %5919 }
 0x62a   : > { %6045 = vst.msk [vmem:[#allocation2 + $0x19] sm:$0xff] %vm226_vm0, %v6013_v50  ;;  %v6014_v48 = vmul.f32 %v5920_v39, %v15222_v17 }
 0x62b   : > { %v5922_v24 = vpop.permute.xlu0 %5921 }
 0x62c   : > { %6046 = vst.msk [vmem:[#allocation2 + $0x21] sm:$0xff] %vm226_vm0, %v6014_v48  ;;  %v6015_v54 = vmul.f32 %v5922_v24, %v15211_v29 }
 0x62d   : > { %v5924_v56 = vpop.permute.xlu1 %5923 }
 0x62e   : > { %6047 = vst.msk [vmem:[#allocation2 + $0x31] sm:$0xff] %vm226_vm0, %v6015_v54  ;;  %v6016_v2 = vmul.f32 %v5924_v56, %v15218_v41 }
 0x62f   : > { %v5926_v27 = vpop.permute.xlu0 %5925 }
 0x630   : > { %6048 = vst.msk [vmem:[#allocation2 + $0x39] sm:$0xff] %vm226_vm0, %v6016_v2  ;;  %v6017_v14 = vmul.f32 %v5926_v27, %v15230_v13 }
 0x631   : > { %v5928_v3 = vpop.permute.xlu1 %5927  ;;  %v6080_v22 = vld [vmem:[#allocation2 + $0x18] sm:$0xff] }
 0x632   : > { %6049 = vst.msk [vmem:[#allocation2 + $0x49] sm:$0xff] %vm226_vm0, %v6017_v14  ;;  %v6018_v17 = vmul.f32 %v5928_v3, %v15238_v15 }
 0x633   : > { %v5930_v57 = vpop.permute.xlu0 %5929  ;;  %v6081_v28 = vld [vmem:[#allocation2 + $0x20] sm:$0xff]  ;;  %v6082_v36 = vld [vmem:[#allocation2 + $0x28] sm:$0x3] }
 0x634   : > { %6050 = vst.msk [vmem:[#allocation2 + $0x51] sm:$0xff] %vm226_vm0, %v6018_v17  ;;  %v6019_v29 = vmul.f32 %v5930_v57, %v15227_v40  ;;  %v15401_v51 = vpack.c.bf16 %v6081_v28, %v6080_v22  ;;  %v15403_v41 = vpack.c.bf16 %v6082_v36, %v6082_v36  ;;  %v12817_v28 = vld [vmem:[%s16523_s1 + $0x250] sm:$0xff]  }
 0x635   : > { %v5932_v43 = vpop.permute.xlu1 %5931  ;;  %v6083_v10 = vld [vmem:[#allocation2 + $0x30] sm:$0xff] }
 0x636   : > { %6051 = vst.msk [vmem:[#allocation2 + $0x61] sm:$0xff] %vm226_vm0, %v6019_v29  ;;  %v6020_v13 = vmul.f32 %v5932_v43, %v15234_v9  ;;  %v6191_v4 = vshll.u32 %v15401_v51, 16  ;;  %v6196_v15 = vshll.u32 %v15403_v41, 16  ;;  %v6189_v40 = vshrl.u32 %v15401_v51, 16 }
 0x637   : > { %v6084_v59 = vld [vmem:[#allocation2 + $0x38] sm:$0xff]  ;;  %v6085_v34 = vld [vmem:[#allocation2 + $0x40] sm:$0x3] }
 0x638   : > { %6052 = vst.msk [vmem:[#allocation2 + $0x69] sm:$0xff] %vm226_vm0, %v6020_v13  ;;  %v5934_v30 = vpop.permute.xlu0 %5933  ;;  %v6193_v12 = vrot.slane %v6191_v4, 1  ;;  %v15411_v6 = vpack.c.bf16 %v6084_v59, %v6083_v10  ;;  %v15413_v49 = vpack.c.bf16 %v6085_v34, %v6085_v34  ;;  %v6198_v11 = vrot.slane %v6196_v15, 1 }
 0x639   : > { %v6021_v1 = vmul.f32 %v5934_v30, %v15246_v25  ;;  %v6086_v39 = vld [vmem:[#allocation2 + $0x48] sm:$0xff] }
 0x63a   : > { %v5936_v9 = vpop.permute.xlu1 %5935  ;;  %v6194_v58 = vor.u32 %v6193_v12, %v6189_v40  ;;  %v6203_v21 = vshll.u32 %v15411_v6, 16  ;;  %v6208_v60 = vshll.u32 %v15413_v49, 16  ;;  %v6201_v56 = vshrl.u32 %v15411_v6, 16 }
 0x63b   : > { %6053 = vst.msk [vmem:[#allocation2 + $0x79] sm:$0xff] %vm226_vm0, %v6021_v1  ;;  %v6022_v50 = vmul.f32 %v5936_v9, %v15254_v19  ;;  %v6087_v48 = vld [vmem:[#allocation2 + $0x50] sm:$0xff]  ;;  %v6088_v24 = vld [vmem:[#allocation2 + $0x58] sm:$0x3] }
 0x63c   : > { %v5938_v54 = vpop.permute.xlu0 %5937  ;;  %v15424_v25 = vsel %vm370_vm1, %v6194_v58, %v6198_v11  ;;  %v6205_v2 = vrot.slane %v6203_v21, 1  ;;  %v15427_v27 = vpack.c.bf16 %v6087_v48, %v6086_v39  ;;  %v15433_v19 = vpack.c.bf16 %v6088_v24, %v6088_v24 }
 0x63d   : > { %6054 = vst.msk [vmem:[#allocation2 + $0x81] sm:$0xff] %vm226_vm0, %v6022_v50  ;;  %v6023_v14 = vmul.f32 %v5938_v54, %v15243_v8  ;;  %11600 = vmatmul.mubr.msk.bf16.vlgmr.msra.gmra.mrb[32].mxu0 %vm226_vm0, %v15424_v25  ;;  %v6210_v57 = vrot.slane %v6208_v60, 1  ;;  %v6089_v43 = vld [vmem:[#allocation2 + $0x60] sm:$0xff] }
 0x63e   : > { %v5940_v3 = vpop.permute.xlu1 %5939  ;;  %11632 = vmatpush3.bf16.msra.mxu0 %v15315_v52  ;;  %v6206_v17 = vor.u32 %v6205_v2, %v6201_v56  ;;  %v6215_v22 = vshll.u32 %v15427_v27, 16  ;;  %v6213_v36 = vshrl.u32 %v15427_v27, 16  ;;  %v6220_v29 = vshll.u32 %v15433_v19, 16 }
 0x63f   : > { %6055 = vst.msk [vmem:[#allocation2 + $0x91] sm:$0xff] %vm226_vm0, %v6023_v14  ;;  %v6024_v8 = vmul.f32 %v5940_v3, %v15250_v5  ;;  %v6090_v13 = vld [vmem:[#allocation2 + $0x68] sm:$0xff]  ;;  %v6091_v4 = vld [vmem:[#allocation2 + $0x70] sm:$0x3]  ;;  %11633 = vmatprep.subr.bf16.mxu0 %v12816_v53 }
 0x640   : > { %v5942_v52 = vpop.permute.xlu0 %5941  ;;  %v15445_v15 = vsel %vm370_vm1, %v6206_v17, %v6210_v57  ;;  %v6217_v10 = vrot.slane %v6215_v22, 1  ;;  %v15447_v59 = vpack.c.bf16 %v6090_v13, %v6089_v43  ;;  %v15449_v34 = vpack.c.bf16 %v6091_v4, %v6091_v4 }
 0x641   : > { %6056 = vst.msk [vmem:[#allocation2 + $0x99] sm:$0xff] %vm226_vm0, %v6024_v8  ;;  %v6025_v5 = vmul.f32 %v5942_v52, %v15265_v62  ;;  %11603 = vmatprep.mubr.msk.bf16.mxu0 %vm226_vm0, %v15445_v15  ;;  %v6222_v12 = vrot.slane %v6220_v29, 1  ;;  %v12818_v62 = vld [vmem:[%s16523_s1 + $0x258] sm:$0xff]  }
 0x642   : > { %v5944_v30 = vpop.permute.xlu1 %5943  ;;  %v6218_v40 = vor.u32 %v6217_v10, %v6213_v36  ;;  %v6227_v1 = vshll.u32 %v15447_v59, 16  ;;  %v6232_v9 = vshll.u32 %v15449_v34, 16  ;;  %11634 = vmatpush3.bf16.msra.mxu0 %v12816_v53  ;;  %v6225_v60 = vshrl.u32 %v15447_v59, 16  ;;  %v6092_v39 = vld [vmem:[#allocation2 + $0x78] sm:$0xff] }
 0x643   : > { %6057 = vst.msk [vmem:[#allocation2 + $0xa9] sm:$0xff] %vm226_vm0, %v6025_v5  ;;  %v6026_v58 = vmul.f32 %v5944_v30, %v15273_v44  ;;  %11635 = vmatprep.subr.bf16.mxu0 %v12817_v28 }
 0x644   : > { %v5946_v11 = vpop.permute.xlu0 %5945  ;;  %v15463_v21 = vsel %vm370_vm1, %v6218_v40, %v6222_v12  ;;  %v6229_v50 = vrot.slane %v6227_v1, 1  ;;  %v6093_v48 = vld [vmem:[#allocation2 + $0x80] sm:$0xff]  ;;  %v6094_v24 = vld [vmem:[#allocation2 + $0x88] sm:$0x3]  ;;  %v6234_v14 = vrot.slane %v6232_v9, 1 }
 0x645   : > { %6058 = vst.msk [vmem:[#allocation2 + $0xb1] sm:$0xff] %vm226_vm0, %v6026_v58  ;;  %v6027_v53 = vmul.f32 %v5946_v11, %v15259_v0  ;;  %11604 = vmatmul.mubr.msk.bf16.gmra.mrb[36].mxu0 %vm226_vm0, %v15463_v21  ;;  %v15470_v44 = vpack.c.bf16 %v6093_v48, %v6092_v39  ;;  %v15472_v54 = vpack.c.bf16 %v6094_v24, %v6094_v24  ;;  %v15481_v0 = vld [vmem:[%s16523_s1 + $0x280] sm:$0xff]  }
 0x646   : > { %v5948_v56 = vpop.permute.xlu1 %5947  ;;  %v6230_v2 = vor.u32 %v6229_v50, %v6225_v60  ;;  %11636 = vmatpush3.bf16.msra.mxu0 %v12817_v28  ;;  %v6095_v8 = vld [vmem:[#allocation2 + $0x90] sm:$0xff] }
 0x647   : > { %6059 = vst.msk [vmem:[#allocation2 + $0xc1] sm:$0xff] %vm226_vm0, %v6027_v53  ;;  %v6028_v3 = vmul.f32 %v5948_v56, %v15269_v23  ;;  %v6239_v17 = vshll.u32 %v15470_v44, 16  ;;  %v6244_v57 = vshll.u32 %v15472_v54, 16  ;;  %11637 = vmatprep.subr.bf16.mxu0 %v12818_v62  ;;  %v6237_v23 = vshrl.u32 %v15470_v44, 16 }
 0x648   : > { %v15484_v22 = vsel %vm370_vm1, %v6230_v2, %v6234_v14  ;;  %v6096_v36 = vld [vmem:[#allocation2 + $0x98] sm:$0xff]  ;;  %v6097_v28 = vld [vmem:[#allocation2 + $0xa0] sm:$0x3] }
 0x649   : > { %6060 = vst.msk [vmem:[#allocation2 + $0xc9] sm:$0xff] %vm226_vm0, %v6028_v3  ;;  %v5950_v29 = vpop.permute.xlu0 %5949  ;;  %11607 = vmatprep.mubr.msk.bf16.mxu0 %vm226_vm0, %v15484_v22  ;;  %v6241_v43 = vrot.slane %v6239_v17, 1  ;;  %v15490_v13 = vpack.c.bf16 %v6096_v36, %v6095_v8  ;;  %v15492_v4 = vpack.c.bf16 %v6097_v28, %v6097_v28  ;;  %v6246_v30 = vrot.slane %v6244_v57, 1 }
 0x64a   : > { %v6029_v52 = vmul.f32 %v5950_v29, %v15282_v37  ;;  %11638 = vmatpush3.bf16.msra.mxu0 %v12818_v62  ;;  %v6098_v9 = vld [vmem:[#allocation2 + $0xa8] sm:$0xff] }
 0x64b   : > { %v5952_v10 = vpop.permute.xlu1 %5951  ;;  %v6242_v5 = vor.u32 %v6241_v43, %v6237_v23  ;;  %v6251_v40 = vshll.u32 %v15490_v13, 16  ;;  %v6256_v12 = vshll.u32 %v15492_v4, 16  ;;  %11671 = vmatprep.subr.bf16.mxu0 %v15481_v0  ;;  %v6249_v62 = vshrl.u32 %v15490_v13, 16 }
 0x64c   : > { %6061 = vst.msk [vmem:[#allocation2 + $0xd9] sm:$0xff] %vm226_vm0, %v6029_v52  ;;  %v6030_v1 = vmul.f32 %v5952_v10, %v15293_v55  ;;  %v6099_v58 = vld [vmem:[#allocation2 + $0xb0] sm:$0xff]  ;;  %v6100_v11 = vld [vmem:[#allocation2 + $0xb8] sm:$0x3] }
 0x64d   : > { %v5954_v60 = vpop.permute.xlu0 %5953  ;;  %v15501_v37 = vsel %vm370_vm1, %v6242_v5, %v6246_v30  ;;  %v6253_v50 = vrot.slane %v6251_v40, 1  ;;  %v15504_v39 = vpack.c.bf16 %v6099_v58, %v6098_v9  ;;  %v15510_v55 = vpack.c.bf16 %v6100_v11, %v6100_v11 }
 0x64e   : > { %6062 = vst.msk [vmem:[#allocation2 + $0xe1] sm:$0xff] %vm226_vm0, %v6030_v1  ;;  %v6031_v48 = vmul.f32 %v5954_v60, %v15279_v26  ;;  %11608 = vmatmul.mubr.msk.bf16.gmra.mrb[40].mxu0 %vm226_vm0, %v15501_v37  ;;  %v6258_v56 = vrot.slane %v6256_v12, 1  ;;  %v6101_v57 = vld [vmem:[#allocation2 + $0xc0] sm:$0xff] }
 0x64f   : > { %v5956_v24 = vpop.permute.xlu1 %5955  ;;  %v6254_v53 = vor.u32 %v6253_v50, %v6249_v62  ;;  %v6263_v2 = vshll.u32 %v15504_v39, 16  ;;  %v6261_v3 = vshrl.u32 %v15504_v39, 16  ;;  %v6268_v17 = vshll.u32 %v15510_v55, 16 }
 0x650   : > { %6063 = vst.msk [vmem:[#allocation2 + $0xf1] sm:$0xff] %vm226_vm0, %v6031_v48  ;;  %v6032_v14 = vmul.f32 %v5956_v24, %v15289_v32  ;;  %v6102_v26 = vld [vmem:[#allocation2 + $0xc8] sm:$0xff]  ;;  %v6103_v8 = vld [vmem:[#allocation2 + $0xd0] sm:$0x3] }
 0x651   : > { %v5958_v36 = vpop.permute.xlu0 %5957  ;;  %v15518_v28 = vsel %vm370_vm1, %v6254_v53, %v6258_v56  ;;  %v6265_v29 = vrot.slane %v6263_v2, 1  ;;  %v15520_v23 = vpack.c.bf16 %v6102_v26, %v6101_v57  ;;  %v15522_v43 = vpack.c.bf16 %v6103_v8, %v6103_v8 }
 0x652   : > { %6064 = vst.msk [vmem:[#allocation2 + $0xf9] sm:$0xff] %vm226_vm0, %v6032_v14  ;;  %v6033_v32 = vmul.f32 %v5958_v36, %v15309_v61  ;;  %11611 = vmatprep.mubr.msk.bf16.mxu0 %vm226_vm0, %v15518_v28  ;;  %v6270_v5 = vrot.slane %v6268_v17, 1 }
 0x653   : > { %v5960_v52 = vpop.permute.xlu1 %5959  ;;  %v6266_v10 = vor.u32 %v6265_v29, %v6261_v3  ;;  %v6275_v30 = vshll.u32 %v15520_v23, 16  ;;  %v6280_v40 = vshll.u32 %v15522_v43, 16  ;;  %v6273_v61 = vshrl.u32 %v15520_v23, 16  ;;  %v6104_v11 = vld [vmem:[#allocation2 + $0xd8] sm:$0xff] }
 0x654   : > { %6065 = vst.msk [vmem:[#allocation2 + $0x109] sm:$0xff] %vm226_vm0, %v6033_v32  ;;  %v6034_v12 = vmul.f32 %v5960_v52, %v15323_v16 }
 0x655   : > { %v5962_v1 = vpop.permute.xlu0 %5961  ;;  %v15533_v9 = vsel %vm370_vm1, %v6266_v10, %v6270_v5  ;;  %v6277_v58 = vrot.slane %v6275_v30, 1  ;;  %v6105_v60 = vld [vmem:[#allocation2 + $0xe0] sm:$0xff]  ;;  %v6106_v62 = vld [vmem:[#allocation2 + $0xe8] sm:$0x3]  ;;  %v6282_v56 = vrot.slane %v6280_v40, 1 }
 0x656   : > { %6066 = vst.msk [vmem:[#allocation2 + $0x111] sm:$0xff] %vm226_vm0, %v6034_v12  ;;  %v6035_v50 = vmul.f32 %v5962_v1, %v15305_v63  ;;  %11612 = vmatmul.mubr.msk.bf16.gmra.mrb[44].mxu0 %vm226_vm0, %v15533_v9  ;;  %v15540_v48 = vpack.c.bf16 %v6105_v60, %v6104_v11  ;;  %v15542_v16 = vpack.c.bf16 %v6106_v62, %v6106_v62 }
 0x657   : > { %v5964_v24 = vpop.permute.xlu1 %5963  ;;  %v6278_v53 = vor.u32 %v6277_v58, %v6273_v61  ;;  %v6107_v17 = vld [vmem:[#allocation2 + $0xf0] sm:$0xff] }
 0x658   : > { %6067 = vst.msk [vmem:[#allocation2 + $0x121] sm:$0xff] %vm226_vm0, %v6035_v50  ;;  %v6036_v2 = vmul.f32 %v5964_v24, %v15319_v46  ;;  %v6287_v14 = vshll.u32 %v15540_v48, 16  ;;  %v6292_v3 = vshll.u32 %v15542_v16, 16  ;;  %v6285_v36 = vshrl.u32 %v15540_v48, 16 }
 0x659   : > { %v15549_v63 = vsel %vm370_vm1, %v6278_v53, %v6282_v56  ;;  %v6108_v57 = vld [vmem:[#allocation2 + $0xf8] sm:$0xff]  ;;  %v6109_v26 = vld [vmem:[#allocation2 + $0x100] sm:$0x3] }
 0x65a   : > { %6068 = vst.msk [vmem:[#allocation2 + $0x129] sm:$0xff] %vm226_vm0, %v6036_v2  ;;  %v5966_v8 = vpop.permute.xlu0 %5965  ;;  %11615 = vmatprep.mubr.msk.bf16.mxu0 %vm226_vm0, %v15549_v63  ;;  %v6289_v29 = vrot.slane %v6287_v14, 1  ;;  %v15555_v46 = vpack.c.bf16 %v6108_v57, %v6107_v17  ;;  %v15557_v32 = vpack.c.bf16 %v6109_v26, %v6109_v26  ;;  %v6294_v30 = vrot.slane %v6292_v3, 1 }
 0x65b   : > { %v6037_v52 = vmul.f32 %v5966_v8, %v15336_v38  ;;  %v6110_v61 = vld [vmem:[#allocation2 + $0x108] sm:$0xff] }
 0x65c   : > { %v5968_v10 = vpop.permute.xlu1 %5967  ;;  %v6290_v5 = vor.u32 %v6289_v29, %v6285_v36  ;;  %v6299_v40 = vshll.u32 %v15555_v46, 16  ;;  %v6304_v12 = vshll.u32 %v15557_v32, 16  ;;  %v6297_v38 = vshrl.u32 %v15555_v46, 16 }
 0x65d   : > { %6069 = vst.msk [vmem:[#allocation2 + $0x139] sm:$0xff] %vm226_vm0, %v6037_v52  ;;  %v6038_v1 = vmul.f32 %v5968_v10, %v15346_v20  ;;  %v6111_v58 = vld [vmem:[#allocation2 + $0x110] sm:$0xff]  ;;  %v6112_v11 = vld [vmem:[#allocation2 + $0x118] sm:$0x3] }
 0x65e   : > { %v5970_v60 = vpop.permute.xlu0 %5969  ;;  %v15565_v62 = vsel %vm370_vm1, %v6290_v5, %v6294_v30  ;;  %v6301_v50 = vrot.slane %v6299_v40, 1  ;;  %v15568_v24 = vpack.c.bf16 %v6111_v58, %v6110_v61  ;;  %v15574_v20 = vpack.c.bf16 %v6112_v11, %v6112_v11 }
 0x65f   : > { %6070 = vst.msk [vmem:[#allocation2 + $0x141] sm:$0xff] %vm226_vm0, %v6038_v1  ;;  %v6039_v53 = vmul.f32 %v5970_v60, %v15332_v35  ;;  %11616 = vmatmul.mubr.msk.bf16.gmra.mrb[48].mxu0 %vm226_vm0, %v15565_v62  ;;  %v6306_v14 = vrot.slane %v6304_v12, 1  ;;  %v6113_v8 = vld [vmem:[#allocation2 + $0x120] sm:$0xff] }
 0x660   : > { %v5972_v56 = vpop.permute.xlu1 %5971  ;;  %v6302_v2 = vor.u32 %v6301_v50, %v6297_v38  ;;  %v6311_v3 = vshll.u32 %v15568_v24, 16  ;;  %v6309_v57 = vshrl.u32 %v15568_v24, 16  ;;  %v6316_v26 = vshll.u32 %v15574_v20, 16 }
 0x661   : > { %6071 = vst.msk [vmem:[#allocation2 + $0x151] sm:$0xff] %vm226_vm0, %v6039_v53  ;;  %v6040_v17 = vmul.f32 %v5972_v56, %v15342_v7  ;;  %v6114_v35 = vld [vmem:[#allocation2 + $0x128] sm:$0xff]  ;;  %v6115_v36 = vld [vmem:[#allocation2 + $0x130] sm:$0x3] }
 0x662   : > { %v5974_v29 = vpop.permute.xlu0 %5973  ;;  %v15582_v52 = vsel %vm370_vm1, %v6302_v2, %v6306_v14  ;;  %v6313_v10 = vrot.slane %v6311_v3, 1  ;;  %v15584_v5 = vpack.c.bf16 %v6114_v35, %v6113_v8  ;;  %v15586_v30 = vpack.c.bf16 %v6115_v36, %v6115_v36 }
 0x663   : > { %6072 = vst.msk [vmem:[#allocation2 + $0x159] sm:$0xff] %vm226_vm0, %v6040_v17  ;;  %v6041_v7 = vmul.f32 %v5974_v29, %v15357_v45  ;;  %11619 = vmatprep.mubr.msk.bf16.mxu0 %vm226_vm0, %v15582_v52  ;;  %v6318_v1 = vrot.slane %v6316_v26, 1 }
 0x664   : > { %v5976_v40 = vpop.permute.xlu1 %5975  ;;  %v6314_v12 = vor.u32 %v6313_v10, %v6309_v57  ;;  %v6323_v61 = vshll.u32 %v15584_v5, 16  ;;  %v6328_v58 = vshll.u32 %v15586_v30, 16  ;;  %v6321_v45 = vshrl.u32 %v15584_v5, 16  ;;  %v6116_v53 = vld [vmem:[#allocation2 + $0x138] sm:$0xff] }
 0x665   : > { %6073 = vst.msk [vmem:[#allocation2 + $0x169] sm:$0xff] %vm226_vm0, %v6041_v7  ;;  %v6042_v11 = vmul.f32 %v5976_v40, %v15366_v31 }
 0x666   : > { %v5978_v60 = vpop.permute.xlu0 %5977  ;;  %v15597_v38 = vsel %vm370_vm1, %v6314_v12, %v6318_v1  ;;  %v6325_v50 = vrot.slane %v6323_v61, 1  ;;  %v6117_v56 = vld [vmem:[#allocation2 + $0x140] sm:$0xff]  ;;  %v6118_v2 = vld [vmem:[#allocation2 + $0x148] sm:$0x3]  ;;  %v6330_v26 = vrot.slane %v6328_v58, 1 }
 0x667   : > { %6074 = vst.msk [vmem:[#allocation2 + $0x171] sm:$0xff] %vm226_vm0, %v6042_v11  ;;  %v6043_v14 = vmul.f32 %v5978_v60, %v15354_v18  ;;  %11620 = vmatmul.mubr.msk.bf16.gmra.mrb[52].mxu0 %vm226_vm0, %v15597_v38  ;;  %v15604_v3 = vpack.c.bf16 %v6117_v56, %v6116_v53  ;;  %v15606_v31 = vpack.c.bf16 %v6118_v2, %v6118_v2 }
 0x668   : > { %v5980_v17 = vpop.permute.xlu1 %5979  ;;  %v6326_v57 = vor.u32 %v6325_v50, %v6321_v45  ;;  %v6119_v29 = vld [vmem:[#allocation2 + $0x150] sm:$0xff] }
 0x669   : > { %6075 = vst.msk [vmem:[#allocation2 + $0x181] sm:$0xff] %vm226_vm0, %v6043_v14  ;;  %v6044_v8 = vmul.f32 %v5980_v17, %v15362_v33  ;;  %v6335_v35 = vshll.u32 %v15604_v3, 16  ;;  %v6340_v36 = vshll.u32 %v15606_v31, 16  ;;  %v6333_v40 = vshrl.u32 %v15604_v3, 16 }
 0x66a   : > { %v15613_v18 = vsel %vm370_vm1, %v6326_v57, %v6330_v26  ;;  %v6120_v10 = vld [vmem:[#allocation2 + $0x158] sm:$0xff]  ;;  %v6121_v7 = vld [vmem:[#allocation2 + $0x160] sm:$0x3] }
 0x66b   : > { %6076 = vst.msk [vmem:[#allocation2 + $0x189] sm:$0xff] %vm226_vm0, %v6044_v8  ;;  %11623 = vmatprep.mubr.msk.bf16.mxu0 %vm226_vm0, %v15613_v18  ;;  %v6337_v12 = vrot.slane %v6335_v35, 1  ;;  %v15619_v1 = vpack.c.bf16 %v6120_v10, %v6119_v29  ;;  %v15621_v33 = vpack.c.bf16 %v6121_v7, %v6121_v7  ;;  %v6342_v58 = vrot.slane %v6340_v36, 1 }
 0x66c   : > { %v6122_v45 = vld [vmem:[#allocation2 + $0x168] sm:$0xff] }
 0x66d   : > { %v6338_v61 = vor.u32 %v6337_v12, %v6333_v40  ;;  %v6347_v11 = vshll.u32 %v15619_v1, 16  ;;  %v6352_v60 = vshll.u32 %v15621_v33, 16  ;;  %v6345_v2 = vshrl.u32 %v15619_v1, 16 }
 0x66e   : > { %v6123_v50 = vld [vmem:[#allocation2 + $0x170] sm:$0xff]  ;;  %v6124_v53 = vld [vmem:[#allocation2 + $0x178] sm:$0x3] }
 0x66f   : > { %v15626_v56 = vsel %vm370_vm1, %v6338_v61, %v6342_v58  ;;  %v6349_v14 = vrot.slane %v6347_v11, 1  ;;  %v15629_v17 = vpack.c.bf16 %v6123_v50, %v6122_v45  ;;  %v15633_v57 = vpack.c.bf16 %v6124_v53, %v6124_v53  ;;  %v12820_v58 = vld [vmem:[%s16523_s1 + $0x288] sm:$0xff]   ;;  %v12821_v11 = vld [vmem:[%s16523_s1 + $0x290] sm:$0xff]  }
 0x670   : > { %11624 = vmatmul.mubr.msk.bf16.gmra.mrb[56].mxu0 %vm226_vm0, %v15626_v56  ;;  %v6354_v8 = vrot.slane %v6352_v60, 1  ;;  %v12822_v60 = vld [vmem:[%s16523_s1 + $0x298] sm:$0xff]   ;;  %v6859_v45 = vrot.slane %v15285_v47, 1  ;;  %v6860_v50 = vrot.slane %v15296_v42, 1 }
 0x671   : > { %v6350_v26 = vor.u32 %v6349_v14, %v6345_v2  ;;  %v6359_v35 = vshll.u32 %v15629_v17, 16  ;;  %v6364_v36 = vshll.u32 %v15633_v57, 16  ;;  %v6357_v10 = vshrl.u32 %v15629_v17, 16 }
 0x672   : > { %v6861_v53 = vsel %vm1054_vm2, %v6859_v45, %v6860_v50  ;;  %v6862_v2 = vrot.slane %v15401_v51, 1  ;;  %v6863_v14 = vrot.slane %v15403_v41, 1  ;;  %v12825_v41 = vld [vmem:[%s16523_s1 + $0x2b0] sm:$0xff]  }
 0x673   : > { %v15638_v29 = vsel %vm370_vm1, %v6350_v26, %v6354_v8  ;;  %v6361_v7 = vrot.slane %v6359_v35, 1  ;;  %v6366_v12 = vrot.slane %v6364_v36, 1  ;;  %v6865_v26 = vrot.slane %v15411_v6, 1 }
 0x674   : > { %11627 = vmatprep.mubr.msk.bf16.mxu0 %vm226_vm0, %v15638_v29  ;;  %v6866_v8 = vrot.slane %v15413_v49, 1  ;;  %v15705_v42 = vsel %vm1054_vm2, %v6862_v2, %v6863_v14  ;;  %v6868_v49 = vrot.slane %v15427_v27, 1  ;;  %v6869_v36 = vrot.slane %v15433_v19, 1  ;;  %v12827_v19 = vld [vmem:[%s16523_s1 + $0x2c0] sm:$0xff]  }
 0x675   : > { %v6362_v40 = vor.u32 %v6361_v7, %v6357_v10  ;;  %v6871_v10 = vrot.slane %v15447_v59, 1  ;;  %v6872_v7 = vrot.slane %v15449_v34, 1  ;;  %v6874_v34 = vrot.slane %v15470_v44, 1 }
 0x676   : > { %v15710_v35 = vsel %vm1054_vm2, %v6865_v26, %v6866_v8  ;;  %v6884_v2 = vrot.slane %v15522_v43, 1  ;;  %v6886_v8 = vrot.slane %v15540_v48, 1  ;;  %v6890_v43 = vrot.slane %v15557_v32, 1 }
 0x677   : > { %v15644_v61 = vsel %vm370_vm1, %v6362_v40, %v6366_v12  ;;  %v12826_v40 = vld [vmem:[%s16523_s1 + $0x2b8] sm:$0xff]   ;;  %v15725_v12 = vsel %vm1054_vm2, %v6868_v49, %v6869_v36  ;;  %v6892_v36 = vrot.slane %v15568_v24, 1  ;;  %v6896_v32 = vrot.slane %v15586_v30, 1 }
 0x678   : > { %11628 = vmatmul.mubr.msk.bf16.gmra.mrb[60].mxu0 %vm226_vm0, %v15644_v61  ;;  %v6902_v30 = vrot.slane %v15621_v33, 1  ;;  %v12828_v33 = vld [vmem:[%s16523_s1 + $0x2c8] sm:$0xff]  }
 0x679   : > { %11639 = vmatprep.mubr.msk.bf16.mxu0 %vm226_vm0, %v15285_v47  ;;  %v12824_v47 = vld [vmem:[%s16523_s1 + $0x2a8] sm:$0xff]  }
 0x680   : > { %11640 = vmatmul.mubr.msk.bf16.vlgmr.msra.gmra.mrb[32].mxu0 %vm226_vm0, %v15401_v51 }
 0x681   : > { %11643 = vmatprep.mubr.msk.bf16.mxu0 %vm226_vm0, %v15411_v6  ;;  %11672 = vmatpush3.bf16.msra.mxu0 %v15481_v0  ;;  %v12823_v0 = vld [vmem:[%s16523_s1 + $0x2a0] sm:$0xff]  }
 0x682   : > { %11673 = vmatprep.subr.bf16.mxu0 %v12820_v58 }
 0x685   : > { %11674 = vmatpush3.bf16.msra.mxu0 %v12820_v58  ;;  %v15730_v58 = vsel %vm1054_vm2, %v6871_v10, %v6872_v7  ;;  %v6895_v10 = vrot.slane %v15584_v5, 1 }
 0x686   : > { %11675 = vmatprep.subr.bf16.mxu0 %v12821_v11 }
 0x688   : > { %11644 = vmatmul.mubr.msk.bf16.gmra.mrb[36].mxu0 %vm226_vm0, %v15427_v27 }
 0x689   : > { %11647 = vmatprep.mubr.msk.bf16.mxu0 %vm226_vm0, %v15447_v59  ;;  %11676 = vmatpush3.bf16.msra.mxu0 %v12821_v11  ;;  %v6875_v11 = vrot.slane %v15472_v54, 1  ;;  %v6880_v54 = vrot.slane %v15504_v39, 1 }
 0x68a   : > { %11677 = vmatprep.subr.bf16.mxu0 %v12822_v60 }
 0x68b   : > { %v15742_v45 = vsel %vm1054_vm2, %v6874_v34, %v6875_v11  ;;  %v6898_v34 = vrot.slane %v15604_v3, 1  ;;  %v6901_v11 = vrot.slane %v15619_v1, 1 }
 0x68d   : > { %11678 = vmatpush3.bf16.msra.mxu0 %v12822_v60  ;;  %v6877_v60 = vrot.slane %v15490_v13, 1 }
 0x68e   : > { %11711 = vmatprep.subr.bf16.mxu0 %v12823_v0 }
 0x690   : > { %11648 = vmatmul.mubr.msk.bf16.gmra.mrb[40].mxu0 %vm226_vm0, %v15470_v44 }
 0x691   : > { %11651 = vmatprep.mubr.msk.bf16.mxu0 %vm226_vm0, %v15490_v13 }
 0x698   : > { %11652 = vmatmul.mubr.msk.bf16.gmra.mrb[44].mxu0 %vm226_vm0, %v15504_v39 }
 0x699   : > { %11655 = vmatprep.mubr.msk.bf16.mxu0 %vm226_vm0, %v15520_v23 }
 0x6a0   : > { %11656 = vmatmul.mubr.msk.bf16.gmra.mrb[48].mxu0 %vm226_vm0, %v15540_v48 }
 0x6a1   : > { %11659 = vmatprep.mubr.msk.bf16.mxu0 %vm226_vm0, %v15555_v46 }
 0x6a8   : > { %11660 = vmatmul.mubr.msk.bf16.gmra.mrb[52].mxu0 %vm226_vm0, %v15568_v24 }
 0x6a9   : > { %11663 = vmatprep.mubr.msk.bf16.mxu0 %vm226_vm0, %v15584_v5 }
 0x6b0   : > { %11664 = vmatmul.mubr.msk.bf16.gmra.mrb[56].mxu0 %vm226_vm0, %v15604_v3 }
 0x6b1   : > { %11667 = vmatprep.mubr.msk.bf16.mxu0 %vm226_vm0, %v15619_v1 }
 0x6b8   : > { %11668 = vmatmul.mubr.msk.bf16.gmra.mrb[60].mxu0 %vm226_vm0, %v15629_v17 }
 0x6b9   : > { %11679 = vmatprep.mubr.msk.bf16.mxu0 %vm226_vm0, %v6861_v53  ;;  %v6881_v53 = vrot.slane %v15510_v55, 1  ;;  %v6887_v55 = vrot.slane %v15542_v16, 1  ;;  %v6893_v16 = vrot.slane %v15574_v20, 1  ;;  %v6899_v20 = vrot.slane %v15606_v31, 1 }
 0x6ba   : > { %v6905_v31 = vrot.slane %v15633_v57, 1  ;;  %v12829_v57 = vld [vmem:[%s16523_s1 + $0x2d0] sm:$0xff]  }
 0x6bb   : > { %v15756_v14 = vsel %vm1054_vm2, %v6880_v54, %v6881_v53  ;;  %v15784_v7 = vsel %vm1054_vm2, %v6892_v36, %v6893_v16  ;;  %v6904_v54 = vrot.slane %v15629_v17, 1  ;;  %v6127_v36 = vld [vmem:[#allocation2 + $0x190] sm:$0x3] }
 0x6bd   : > { %v15810_v53 = vsel %vm1054_vm2, %v6904_v54, %v6905_v31  ;;  %v12836_v31 = vld [vmem:[%s16523_s1 + $0x308] sm:$0xff]  }
 0x6c0   : > { %11680 = vmatmul.mubr.msk.bf16.vlgmr.msra.gmra.mrb[32].mxu0 %vm226_vm0, %v15705_v42 }
 0x6c1   : > { %11683 = vmatprep.mubr.msk.bf16.mxu0 %vm226_vm0, %v15710_v35  ;;  %11712 = vmatpush3.bf16.msra.mxu0 %v12823_v0  ;;  %v6878_v0 = vrot.slane %v15492_v4, 1  ;;  %v6883_v4 = vrot.slane %v15520_v23, 1 }
 0x6c2   : > { %11713 = vmatprep.subr.bf16.mxu0 %v12824_v47 }
 0x6c3   : > { %v15747_v50 = vsel %vm1054_vm2, %v6877_v60, %v6878_v0  ;;  %v15761_v26 = vsel %vm1054_vm2, %v6883_v4, %v6884_v2  ;;  %v15798_v60 = vsel %vm1054_vm2, %v6898_v34, %v6899_v20  ;;  %v15803_v0 = vsel %vm1054_vm2, %v6901_v11, %v6902_v30  ;;  %v6126_v4 = vld [vmem:[#allocation2 + $0x188] sm:$0xff]  ;;  %v6125_v2 = vld [vmem:[#allocation2 + $0x180] sm:$0xff] }
 0x6c5   : > { %11714 = vmatpush3.bf16.msra.mxu0 %v12824_v47  ;;  %v6889_v47 = vrot.slane %v15555_v46, 1 }
 0x6c6   : > { %11715 = vmatprep.subr.bf16.mxu0 %v12825_v41 }
 0x6c7   : > { %v15775_v49 = vsel %vm1054_vm2, %v6889_v47, %v6890_v43  ;;  %v12833_v47 = vld [vmem:[%s16523_s1 + $0x2f0] sm:$0xff]   ;;  %v12835_v43 = vld [vmem:[%s16523_s1 + $0x300] sm:$0xff]  }
 0x6c8   : > { %11684 = vmatmul.mubr.msk.bf16.gmra.mrb[36].mxu0 %vm226_vm0, %v15725_v12 }
 0x6c9   : > { %11687 = vmatprep.mubr.msk.bf16.mxu0 %vm226_vm0, %v15730_v58  ;;  %11716 = vmatpush3.bf16.msra.mxu0 %v12825_v41  ;;  %v15770_v41 = vsel %vm1054_vm2, %v6886_v8, %v6887_v55  ;;  %v15856_v8 = vpack.c.bf16 %v6126_v4, %v6125_v2  ;;  %v12832_v55 = vld [vmem:[%s16523_s1 + $0x2e8] sm:$0xff]  }
 0x6ca   : > { %11717 = vmatprep.subr.bf16.mxu0 %v12826_v40  ;;  %v12840_v2 = vld [vmem:[%s16523_s1 + $0x328] sm:$0xff]  }
 0x6cb   : > { %v7412_v16 = vshll.u32 %v15856_v8, 16  ;;  %v7410_v34 = vshrl.u32 %v15856_v8, 16 }
 0x6cd   : > { %11718 = vmatpush3.bf16.msra.mxu0 %v12826_v40  ;;  %v15789_v40 = vsel %vm1054_vm2, %v6895_v10, %v6896_v32  ;;  %v6164_v10 = vpack.c.bf16 %v6127_v36, %v6127_v36  ;;  %v7414_v32 = vrot.slane %v7412_v16, 1 }
 0x6ce   : > { %11751 = vmatprep.subr.bf16.mxu0 %v12827_v19 }
 0x6cf   : > { %v7417_v20 = vshll.u32 %v6164_v10, 16  ;;  %v7415_v11 = vor.u32 %v7414_v32, %v7410_v34 }
 0x6d0   : > { %11688 = vmatmul.mubr.msk.bf16.gmra.mrb[40].mxu0 %vm226_vm0, %v15742_v45 }
 0x6d1   : > { %11691 = vmatprep.mubr.msk.bf16.mxu0 %vm226_vm0, %v15747_v50  ;;  %v7419_v30 = vrot.slane %v7417_v20, 1 }
 0x6d3   : > { %v15905_v54 = vsel %vm370_vm1, %v7415_v11, %v7419_v30 }
 0x6d8   : > { %11692 = vmatmul.mubr.msk.bf16.gmra.mrb[44].mxu0 %vm226_vm0, %v15756_v14 }
 0x6d9   : > { %11695 = vmatprep.mubr.msk.bf16.mxu0 %vm226_vm0, %v15761_v26 }
 0x6e0   : > { %11696 = vmatmul.mubr.msk.bf16.gmra.mrb[48].mxu0 %vm226_vm0, %v15770_v41 }
 0x6e1   : > { %11699 = vmatprep.mubr.msk.bf16.mxu0 %vm226_vm0, %v15775_v49 }
 0x6e8   : > { %11700 = vmatmul.mubr.msk.bf16.gmra.mrb[52].mxu0 %vm226_vm0, %v15784_v7 }
 0x6e9   : > { %11703 = vmatprep.mubr.msk.bf16.mxu0 %vm226_vm0, %v15789_v40 }
 0x6f0   : > { %11704 = vmatmul.mubr.msk.bf16.gmra.mrb[56].mxu0 %vm226_vm0, %v15798_v60 }
 0x6f1   : > { %11707 = vmatprep.mubr.msk.bf16.mxu0 %vm226_vm0, %v15803_v0 }
 0x6f8   : > { %11708 = vmatmul.mubr.msk.bf16.gmra.mrb[60].mxu0 %vm226_vm0, %v15810_v53 }
 0x6f9   : > { %11719 = vmatprep.mubr.msk.bf16.mxu0 %vm226_vm0, %v15401_v51  ;;  %v12830_v51 = vld [vmem:[%s16523_s1 + $0x2d8] sm:$0xff]  }
 0x700   : > { %11720 = vmatmul.mubr.msk.bf16.vlgmr.msra.gmra.mrb[32].mxu0 %vm226_vm0, %v15411_v6 }
 0x701   : > { %11723 = vmatprep.mubr.msk.bf16.mxu0 %vm226_vm0, %v15427_v27  ;;  %11752 = vmatpush3.bf16.msra.mxu0 %v12827_v19  ;;  %v12831_v19 = vld [vmem:[%s16523_s1 + $0x2e0] sm:$0xff]  }
 0x702   : > { %11753 = vmatprep.subr.bf16.mxu0 %v12828_v33 }
 0x705   : > { %11754 = vmatpush3.bf16.msra.mxu0 %v12828_v33  ;;  %v12837_v33 = vld [vmem:[%s16523_s1 + $0x310] sm:$0xff]  }
 0x706   : > { %11755 = vmatprep.subr.bf16.mxu0 %v12829_v57 }
 0x708   : > { %11724 = vmatmul.mubr.msk.bf16.gmra.mrb[36].mxu0 %vm226_vm0, %v15447_v59 }
 0x709   : > { %11727 = vmatprep.mubr.msk.bf16.mxu0 %vm226_vm0, %v15470_v44  ;;  %11756 = vmatpush3.bf16.msra.mxu0 %v12829_v57  ;;  %v12839_v57 = vld [vmem:[%s16523_s1 + $0x320] sm:$0xff]  }
 0x70a   : > { %11757 = vmatprep.subr.bf16.mxu0 %v12830_v51 }
 0x70d   : > { %11758 = vmatpush3.bf16.msra.mxu0 %v12830_v51  ;;  %v7652_v51 = vrot.slane %v15856_v8, 1 }
 0x70e   : > { %11791 = vmatprep.subr.bf16.mxu0 %v12831_v19 }
 0x710   : > { %11728 = vmatmul.mubr.msk.bf16.gmra.mrb[40].mxu0 %vm226_vm0, %v15490_v13 }
 0x711   : > { %11731 = vmatprep.mubr.msk.bf16.mxu0 %vm226_vm0, %v15504_v39 }
 0x718   : > { %11732 = vmatmul.mubr.msk.bf16.gmra.mrb[44].mxu0 %vm226_vm0, %v15520_v23 }
 0x719   : > { %11735 = vmatprep.mubr.msk.bf16.mxu0 %vm226_vm0, %v15540_v48 }
 0x720   : > { %11736 = vmatmul.mubr.msk.bf16.gmra.mrb[48].mxu0 %vm226_vm0, %v15555_v46 }
 0x721   : > { %11739 = vmatprep.mubr.msk.bf16.mxu0 %vm226_vm0, %v15568_v24 }
 0x728   : > { %11740 = vmatmul.mubr.msk.bf16.gmra.mrb[52].mxu0 %vm226_vm0, %v15584_v5 }
 0x729   : > { %11743 = vmatprep.mubr.msk.bf16.mxu0 %vm226_vm0, %v15604_v3 }
 0x730   : > { %11744 = vmatmul.mubr.msk.bf16.gmra.mrb[56].mxu0 %vm226_vm0, %v15619_v1 }
 0x731   : > { %11747 = vmatprep.mubr.msk.bf16.mxu0 %vm226_vm0, %v15629_v17 }
 0x738   : > { %11748 = vmatmul.mubr.msk.bf16.gmra.mrb[60].mxu0 %vm226_vm0, %v15856_v8 }
 0x739   : > { %11759 = vmatprep.mubr.msk.bf16.mxu0 %vm226_vm0, %v15424_v25  ;;  %v12834_v25 = vld [vmem:[%s16523_s1 + $0x2f8] sm:$0xff]  }
 0x740   : > { %11760 = vmatmul.mubr.msk.bf16.vlgmr.msra.gmra.mrb[32].mxu0 %vm226_vm0, %v15445_v15 }
 0x741   : > { %11763 = vmatprep.mubr.msk.bf16.mxu0 %vm226_vm0, %v15463_v21  ;;  %11792 = vmatpush3.bf16.msra.mxu0 %v12831_v19  ;;  %v7653_v19 = vrot.slane %v6164_v10, 1 }
 0x742   : > { %11793 = vmatprep.subr.bf16.mxu0 %v12832_v55 }
 0x743   : > { %v15953_v4 = vsel %vm1054_vm2, %v7652_v51, %v7653_v19 }
 0x745   : > { %11794 = vmatpush3.bf16.msra.mxu0 %v12832_v55  ;;  %v12841_v55 = vld [vmem:[%s16523_s1 + $0x330] sm:$0xff]  }
 0x746   : > { %11795 = vmatprep.subr.bf16.mxu0 %v12833_v47 }
 0x748   : > { %11764 = vmatmul.mubr.msk.bf16.gmra.mrb[36].mxu0 %vm226_vm0, %v15484_v22 }
 0x749   : > { %11767 = vmatprep.mubr.msk.bf16.mxu0 %vm226_vm0, %v15501_v37  ;;  %11796 = vmatpush3.bf16.msra.mxu0 %v12833_v47 }
 0x74a   : > { %11797 = vmatprep.subr.bf16.mxu0 %v12834_v25 }
 0x74d   : > { %11798 = vmatpush3.bf16.msra.mxu0 %v12834_v25 }
 0x74e   : > { %11831 = vmatprep.subr.bf16.mxu0 %v12835_v43 }
 0x750   : > { %11768 = vmatmul.mubr.msk.bf16.gmra.mrb[40].mxu0 %vm226_vm0, %v15518_v28 }
 0x751   : > { %11771 = vmatprep.mubr.msk.bf16.mxu0 %vm226_vm0, %v15533_v9 }
 0x758   : > { %11772 = vmatmul.mubr.msk.bf16.gmra.mrb[44].mxu0 %vm226_vm0, %v15549_v63 }
 0x759   : > { %11775 = vmatprep.mubr.msk.bf16.mxu0 %vm226_vm0, %v15565_v62 }
 0x760   : > { %11776 = vmatmul.mubr.msk.bf16.gmra.mrb[48].mxu0 %vm226_vm0, %v15582_v52 }
 0x761   : > { %11779 = vmatprep.mubr.msk.bf16.mxu0 %vm226_vm0, %v15597_v38 }
 0x768   : > { %11780 = vmatmul.mubr.msk.bf16.gmra.mrb[52].mxu0 %vm226_vm0, %v15613_v18 }
 0x769   : > { %11783 = vmatprep.mubr.msk.bf16.mxu0 %vm226_vm0, %v15626_v56 }
 0x770   : > { %11784 = vmatmul.mubr.msk.bf16.gmra.mrb[56].mxu0 %vm226_vm0, %v15638_v29 }
 0x771   : > { %11787 = vmatprep.mubr.msk.bf16.mxu0 %vm226_vm0, %v15644_v61 }
 0x778   : > { %11788 = vmatmul.mubr.msk.bf16.gmra.mrb[60].mxu0 %vm226_vm0, %v15905_v54 }
 0x779   : > { %11799 = vmatprep.mubr.msk.bf16.mxu0 %vm226_vm0, %v15705_v42  ;;  %v12838_v42 = vld [vmem:[%s16523_s1 + $0x318] sm:$0xff]  }
 0x780   : > { %11800 = vmatmul.mubr.msk.bf16.vlgmr.msra.gmra.mrb[32].mxu0 %vm226_vm0, %v15710_v35 }
 0x781   : > { %11803 = vmatprep.mubr.msk.bf16.mxu0 %vm226_vm0, %v15725_v12  ;;  %11832 = vmatpush3.bf16.msra.mxu0 %v12835_v43 }
 0x782   : > { %11833 = vmatprep.subr.bf16.mxu0 %v12836_v31 }
 0x785   : > { %11834 = vmatpush3.bf16.msra.mxu0 %v12836_v31 }
 0x786   : > { %11835 = vmatprep.subr.bf16.mxu0 %v12837_v33 }
 0x788   : > { %11804 = vmatmul.mubr.msk.bf16.gmra.mrb[36].mxu0 %vm226_vm0, %v15730_v58 }
 0x789   : > { %11807 = vmatprep.mubr.msk.bf16.mxu0 %vm226_vm0, %v15742_v45  ;;  %11836 = vmatpush3.bf16.msra.mxu0 %v12837_v33 }
 0x78a   : > { %11837 = vmatprep.subr.bf16.mxu0 %v12838_v42 }
 0x78d   : > { %11838 = vmatpush3.bf16.msra.mxu0 %v12838_v42 }
 0x78e   : > { %11871 = vmatprep.subr.bf16.mxu0 %v12839_v57 }
 0x790   : > { %11808 = vmatmul.mubr.msk.bf16.gmra.mrb[40].mxu0 %vm226_vm0, %v15747_v50 }
 0x791   : > { %11811 = vmatprep.mubr.msk.bf16.mxu0 %vm226_vm0, %v15756_v14 }
 0x798   : > { %11812 = vmatmul.mubr.msk.bf16.gmra.mrb[44].mxu0 %vm226_vm0, %v15761_v26 }
 0x799   : > { %11815 = vmatprep.mubr.msk.bf16.mxu0 %vm226_vm0, %v15770_v41 }
 0x7a0   : > { %11816 = vmatmul.mubr.msk.bf16.gmra.mrb[48].mxu0 %vm226_vm0, %v15775_v49 }
 0x7a1   : > { %11819 = vmatprep.mubr.msk.bf16.mxu0 %vm226_vm0, %v15784_v7 }
 0x7a8   : > { %11820 = vmatmul.mubr.msk.bf16.gmra.mrb[52].mxu0 %vm226_vm0, %v15789_v40 }
 0x7a9   : > { %11823 = vmatprep.mubr.msk.bf16.mxu0 %vm226_vm0, %v15798_v60 }
 0x7b0   : > { %11824 = vmatmul.mubr.msk.bf16.gmra.mrb[56].mxu0 %vm226_vm0, %v15803_v0 }
 0x7b1   : > { %11827 = vmatprep.mubr.msk.bf16.mxu0 %vm226_vm0, %v15810_v53 }
 0x7b8   : > { %11828 = vmatmul.mubr.msk.bf16.gmra.mrb[60].mxu0 %vm226_vm0, %v15953_v4 }
 0x7b9   : > { %11839 = vmatprep.mubr.msk.bf16.mxu0 %vm226_vm0, %v15411_v6  ;;  %v12842_v6 = vld [vmem:[%s16523_s1 + $0x338] sm:$0xff]  }
 0x7c0   : > { %11840 = vmatmul.mubr.msk.bf16.vlgmr.msra.gmra.mrb[32].mxu0 %vm226_vm0, %v15427_v27  ;;  %v12843_v27 = vld [vmem:[%s16523_s1 + $0x340] sm:$0xff]  }
 0x7c1   : > { %11843 = vmatprep.mubr.msk.bf16.mxu0 %vm226_vm0, %v15447_v59  ;;  %11872 = vmatpush3.bf16.msra.mxu0 %v12839_v57  ;;  %v6128_v59 = vld [vmem:[#allocation2 + $0x198] sm:$0xff] }
 0x7c2   : > { %11873 = vmatprep.subr.bf16.mxu0 %v12840_v2 }
 0x7c5   : > { %11874 = vmatpush3.bf16.msra.mxu0 %v12840_v2 }
 0x7c6   : > { %11875 = vmatprep.subr.bf16.mxu0 %v12841_v55 }
 0x7c8   : > { %11844 = vmatmul.mubr.msk.bf16.gmra.mrb[36].mxu0 %vm226_vm0, %v15470_v44  ;;  %v6129_v44 = vld [vmem:[#allocation2 + $0x1a0] sm:$0xff] }
 0x7c9   : > { %11847 = vmatprep.mubr.msk.bf16.mxu0 %vm226_vm0, %v15490_v13  ;;  %11876 = vmatpush3.bf16.msra.mxu0 %v12841_v55  ;;  %v6165_v13 = vpack.c.bf16 %v6129_v44, %v6128_v59 }
 0x7ca   : > { %11877 = vmatprep.subr.bf16.mxu0 %v12842_v6 }
 0x7cd   : > { %11878 = vmatpush3.bf16.msra.mxu0 %v12842_v6 }
 0x7ce   : > { %11911 = vmatprep.subr.bf16.mxu0 %v12843_v27 }
 0x7d0   : > { %11848 = vmatmul.mubr.msk.bf16.gmra.mrb[40].mxu0 %vm226_vm0, %v15504_v39  ;;  %v12844_v39 = vld [vmem:[%s16523_s1 + $0x348] sm:$0xff]  }
 0x7d1   : > { %11851 = vmatprep.mubr.msk.bf16.mxu0 %vm226_vm0, %v15520_v23  ;;  %v12845_v23 = vld [vmem:[%s16523_s1 + $0x350] sm:$0xff]  }
 0x7d8   : > { %11852 = vmatmul.mubr.msk.bf16.gmra.mrb[44].mxu0 %vm226_vm0, %v15540_v48 }
 0x7d9   : > { %11855 = vmatprep.mubr.msk.bf16.mxu0 %vm226_vm0, %v15555_v46 }
 0x7e0   : > { %11856 = vmatmul.mubr.msk.bf16.gmra.mrb[48].mxu0 %vm226_vm0, %v15568_v24  ;;  %v8355_v24 = vrot.slane %v6165_v13, 1 }
 0x7e1   : > { %11859 = vmatprep.mubr.msk.bf16.mxu0 %vm226_vm0, %v15584_v5 }
 0x7e8   : > { %11860 = vmatmul.mubr.msk.bf16.gmra.mrb[52].mxu0 %vm226_vm0, %v15604_v3  ;;  %v12849_v3 = vld [vmem:[%s16525_s3 + $0x4] ss:$8 sps:$4 sm:$0xff]  }
 0x7e9   : > { %11863 = vmatprep.mubr.msk.bf16.mxu0 %vm226_vm0, %v15619_v1  ;;  %9071 = vmatprep.subr.bf16.mxu1 %v12849_v3  ;;  %v12852_v1 = vld [vmem:[%s16525_s3 + $0x14] ss:$8 sps:$4 sm:$0xff]  }
 0x7f0   : > { %11864 = vmatmul.mubr.msk.bf16.gmra.mrb[56].mxu0 %vm226_vm0, %v15629_v17  ;;  %v12853_v17 = vld [vmem:[%s16525_s3 + $0x20] ss:$8 sps:$4 sm:$0xff]  }
 0x7f1   : > { %11867 = vmatprep.mubr.msk.bf16.mxu0 %vm226_vm0, %v15856_v8 }
 0x7f8   : > { %11868 = vmatmul.mubr.msk.bf16.gmra.mrb[60].mxu0 %vm226_vm0, %v6165_v13 }
 0x7f9   : > { %11879 = vmatprep.mubr.msk.bf16.mxu0 %vm226_vm0, %v15445_v15  ;;  %v12846_v15 = vld [vmem:[%s16523_s1 + $0x358] sm:$0xff]  }
 0x800   : > { %11880 = vmatmul.mubr.msk.bf16.vlgmr.msra.gmra.mrb[32].mxu0 %vm226_vm0, %v15463_v21  ;;  %v6130_v21 = vld [vmem:[#allocation2 + $0x1a8] sm:$0x3] }
 0x801   : > { %11883 = vmatprep.mubr.msk.bf16.mxu0 %vm226_vm0, %v15484_v22  ;;  %11912 = vmatpush3.bf16.msra.mxu0 %v12843_v27  ;;  %v6166_v22 = vpack.c.bf16 %v6130_v21, %v6130_v21 }
 0x802   : > { %11913 = vmatprep.subr.bf16.mxu0 %v12844_v39 }
 0x803   : > { %v8120_v48 = vshll.u32 %v6166_v22, 16 }
 0x805   : > { %11914 = vmatpush3.bf16.msra.mxu0 %v12844_v39  ;;  %v8122_v46 = vrot.slane %v8120_v48, 1 }
 0x806   : > { %11915 = vmatprep.subr.bf16.mxu0 %v12845_v23 }
 0x808   : > { %11884 = vmatmul.mubr.msk.bf16.gmra.mrb[36].mxu0 %vm226_vm0, %v15501_v37  ;;  %v8115_v37 = vshll.u32 %v6165_v13, 16 }
 0x809   : > { %11887 = vmatprep.mubr.msk.bf16.mxu0 %vm226_vm0, %v15518_v28  ;;  %11916 = vmatpush3.bf16.msra.mxu0 %v12845_v23  ;;  %v8113_v28 = vshrl.u32 %v6165_v13, 16 }
 0x80a   : > { %11917 = vmatprep.subr.bf16.mxu0 %v12846_v15 }
 0x80d   : > { %11918 = vmatpush3.bf16.msra.mxu0 %v12846_v15 }
 0x810   : > { %11888 = vmatmul.mubr.msk.bf16.gmra.mrb[40].mxu0 %vm226_vm0, %v15533_v9  ;;  %v8117_v9 = vrot.slane %v8115_v37, 1 }
 0x811   : > { %11891 = vmatprep.mubr.msk.bf16.mxu0 %vm226_vm0, %v15549_v63 }
 0x812   : > { %v8118_v63 = vor.u32 %v8117_v9, %v8113_v28 }
 0x818   : > { %11892 = vmatmul.mubr.msk.bf16.gmra.mrb[44].mxu0 %vm226_vm0, %v15565_v62  ;;  %v8123_v62 = vsel %vm370_vm1, %v8118_v63, %v8122_v46 }
 0x819   : > { %11895 = vmatprep.mubr.msk.bf16.mxu0 %vm226_vm0, %v15582_v52  ;;  %v8356_v52 = vrot.slane %v6166_v22, 1 }
 0x81b   : > { %v8357_v5 = vsel %vm1054_vm2, %v8355_v24, %v8356_v52 }
 0x820   : > { %11896 = vmatmul.mubr.msk.bf16.gmra.mrb[48].mxu0 %vm226_vm0, %v15597_v38  ;;  %v12847_v38 = vld [vmem:[%s16525_s3] ss:$8 sps:$4 sm:$0xff]  }
 0x821   : > { %11899 = vmatprep.mubr.msk.bf16.mxu0 %vm226_vm0, %v15613_v18  ;;  %9072 = vmatpush1.bf16.msra.mxu1 %v12847_v38  ;;  %v12850_v18 = vld [vmem:[%s16525_s3 + $0x10] ss:$8 sps:$4 sm:$0xff]  }
 0x822   : > { %9073 = vmatprep.subr.bf16.mxu1 %v12852_v1 }
 0x825   : > { %9074 = vmatpush1.bf16.msra.mxu1 %v12850_v18  ;;  %v13385_v18 = vmov 0  }
 0x826   : > { %9103 = vmatprep.mubr.bf16.mxu1 %v13385_v18 }
 0x828   : > { %11900 = vmatmul.mubr.msk.bf16.gmra.mrb[52].mxu0 %vm226_vm0, %v15626_v56  ;;  %v12855_v56 = vld [vmem:[%s16525_s3 + $0x24] ss:$8 sps:$4 sm:$0xff]  }
 0x829   : > { %11903 = vmatprep.mubr.msk.bf16.mxu0 %vm226_vm0, %v15638_v29  ;;  %9075 = vmatprep.subr.bf16.mxu1 %v12855_v56  ;;  %v12858_v29 = vld [vmem:[%s16525_s3 + $0x34] ss:$8 sps:$4 sm:$0xff]  }
 0x82a   : > { %9076 = vmatpush1.bf16.msra.mxu1 %v12853_v17 }
 0x82b   : > { %9077 = vmatprep.subr.bf16.mxu1 %v12858_v29 }
 0x830   : > { %11904 = vmatmul.mubr.msk.bf16.gmra.mrb[56].mxu0 %vm226_vm0, %v15644_v61  ;;  %v12856_v61 = vld [vmem:[%s16525_s3 + $0x30] ss:$8 sps:$4 sm:$0xff]  }
 0x831   : > { %11907 = vmatprep.mubr.msk.bf16.mxu0 %vm226_vm0, %v15905_v54  ;;  %9078 = vmatpush1.bf16.msra.mxu1 %v12856_v61 }
 0x838   : > { %11908 = vmatmul.mubr.msk.bf16.gmra.mrb[60].mxu0 %vm226_vm0, %v8123_v62 }
 0x839   : > { %11919 = vmatprep.mubr.msk.bf16.mxu0 %vm226_vm0, %v15710_v35  ;;  %v16100_v35 = vld [vmem:[%s16524_s2 + $0x2] ss:$0 sm:$0xff] }
 0x840   : > { %11920 = vmatmul.mubr.msk.bf16.vlgmr.msra.gmra.mrb[32].mxu0 %vm226_vm0, %v15725_v12 }
 0x841   : > { %11923 = vmatprep.mubr.msk.bf16.mxu0 %vm226_vm0, %v15730_v58 }
 0x848   : > { %11924 = vmatmul.mubr.msk.bf16.gmra.mrb[36].mxu0 %vm226_vm0, %v15742_v45 }
 0x849   : > { %11927 = vmatprep.mubr.msk.bf16.mxu0 %vm226_vm0, %v15747_v50 }
 0x850   : > { %11928 = vmatmul.mubr.msk.bf16.gmra.mrb[40].mxu0 %vm226_vm0, %v15756_v14 }
 0x851   : > { %11931 = vmatprep.mubr.msk.bf16.mxu0 %vm226_vm0, %v15761_v26 }
 0x858   : > { %11932 = vmatmul.mubr.msk.bf16.gmra.mrb[44].mxu0 %vm226_vm0, %v15770_v41 }
 0x859   : > { %11935 = vmatprep.mubr.msk.bf16.mxu0 %vm226_vm0, %v15775_v49 }
 0x860   : > { %11936 = vmatmul.mubr.msk.bf16.gmra.mrb[48].mxu0 %vm226_vm0, %v15784_v7 }
 0x861   : > { %11939 = vmatprep.mubr.msk.bf16.mxu0 %vm226_vm0, %v15789_v40 }
 0x868   : > { %11940 = vmatmul.mubr.msk.bf16.gmra.mrb[52].mxu0 %vm226_vm0, %v15798_v60 }
 0x869   : > { %11943 = vmatprep.mubr.msk.bf16.mxu0 %vm226_vm0, %v15803_v0 }
 0x870   : > { %11944 = vmatmul.mubr.msk.bf16.gmra.mrb[56].mxu0 %vm226_vm0, %v15810_v53 }
 0x871   : > { %11947 = vmatprep.mubr.msk.bf16.mxu0 %vm226_vm0, %v15953_v4 }
 0x878   : > { %11948 = vmatmul.mubr.msk.bf16.gmra.mrb[60].mxu0 %vm226_vm0, %v8357_v5 }
 0x913   : > { %v11921_v12 = vpop.f32.mrb[32].mxu0 }
 0x914   : > { %v16103_v58 = vadd.f32 %v11921_v12, %v16100_v35  ;;  %v8428_v45 = vpop.f32.mrb[33].mxu0 }
 0x915   : > { %v16106_v50 = vadd.f32 %v16100_v35, %v8428_v45  ;;  %v11922_v14 = vpop.f32.mrb[34].mxu0 }
 0x916   : > { %v8629_v26 = vsub.f32 0.0, %v16103_v58  ;;  %v16110_v41 = vadd.f32 %v11922_v14, %v16100_v35  ;;  %v8431_v49 = vpop.f32.mrb[35].mxu0 }
 0x917   : > { %v8627_v7 = vsub.f32 0.0, %v16106_v50  ;;  %v16114_v40 = vadd.f32 %v16100_v35, %v8431_v49 }
 0x918   : > { %v8663_v60 = vmul.f32 1.442695, %v8629_v26  ;;  %v8630_v0 = vsub.f32 0.0, %v16110_v41 }
 0x919   : > { %v8659_v53 = vmul.f32 1.442695, %v8627_v7  ;;  %v8628_v8 = vsub.f32 0.0, %v16114_v40 }
 0x91a   : > { %13115 = vpow2.f32 %v8663_v60  ;;  %v8665_v47 = vmul.f32 1.442695, %v8630_v0 }
 0x91b   : > { %13117 = vpow2.f32 %v8659_v53  ;;  %v8661_v25 = vmul.f32 1.442695, %v8628_v8  ;;  %v11925_v43 = vpop.f32.mrb[36].mxu0 }
 0x91c   : > { %13119 = vpow2.f32 %v8665_v47  ;;  %v16119_v36 = vadd.f32 %v11925_v43, %v16100_v35  ;;  %v8444_v16 = vpop.f32.mrb[37].mxu0 }
 0x91d   : > { %13121 = vpow2.f32 %v8661_v25  ;;  %v16122_v10 = vadd.f32 %v16100_v35, %v8444_v16  ;;  %v11926_v32 = vpop.f32.mrb[38].mxu0 }
 0x91e   : > { %v8633_v34 = vsub.f32 0.0, %v16119_v36  ;;  %v16126_v20 = vadd.f32 %v11926_v32, %v16100_v35  ;;  %v8447_v11 = vpop.f32.mrb[39].mxu0 }
 0x91f   : > { %v8631_v30 = vsub.f32 0.0, %v16122_v10  ;;  %v16130_v54 = vadd.f32 %v16100_v35, %v8447_v11 }
 0x920   : > { %v8671_v31 = vmul.f32 1.442695, %v8633_v34  ;;  %v8634_v33 = vsub.f32 0.0, %v16126_v20 }
 0x921   : > { %v8667_v42 = vmul.f32 1.442695, %v8631_v30  ;;  %v8632_v57 = vsub.f32 0.0, %v16130_v54 }
 0x922   : > { %13123 = vpow2.f32 %v8671_v31  ;;  %v8673_v51 = vmul.f32 1.442695, %v8634_v33 }
 0x923   : > { %13125 = vpow2.f32 %v8667_v42  ;;  %v8669_v19 = vmul.f32 1.442695, %v8632_v57  ;;  %v11929_v4 = vpop.f32.mrb[40].mxu0 }
 0x924   : > { %v13116_v2 = vpop.eup %13115  ;;  %13127 = vpow2.f32 %v8673_v51  ;;  %v16135_v55 = vadd.f32 %v11929_v4, %v16100_v35  ;;  %v8460_v6 = vpop.f32.mrb[41].mxu0 }
 0x925   : > { %v13118_v27 = vpop.eup %13117  ;;  %v8725_v59 = vadd.f32 1.0, %v13116_v2  ;;  %13129 = vpow2.f32 %v8669_v19  ;;  %v16138_v44 = vadd.f32 %v16100_v35, %v8460_v6  ;;  %v11930_v13 = vpop.f32.mrb[42].mxu0 }
 0x926   : > { %v13120_v39 = vpop.eup %13119  ;;  %v8723_v23 = vadd.f32 1.0, %v13118_v27  ;;  %v8637_v15 = vsub.f32 0.0, %v16135_v55  ;;  %v16142_v21 = vadd.f32 %v11930_v13, %v16100_v35  ;;  %v8463_v22 = vpop.f32.mrb[43].mxu0 }
 0x927   : > { %v13122_v37 = vpop.eup %13121  ;;  %13131 = vrcp.f32 %v8725_v59  ;;  %v8726_v28 = vadd.f32 1.0, %v13120_v39  ;;  %v8635_v9 = vsub.f32 0.0, %v16138_v44  ;;  %v16146_v48 = vadd.f32 %v16100_v35, %v8463_v22 }
 0x928   : > { %13133 = vrcp.f32 %v8723_v23  ;;  %v8724_v63 = vadd.f32 1.0, %v13122_v37  ;;  %v8679_v46 = vmul.f32 1.442695, %v8637_v15  ;;  %v8638_v62 = vsub.f32 0.0, %v16142_v21 }
 0x929   : > { %13135 = vrcp.f32 %v8726_v28  ;;  %v8675_v24 = vmul.f32 1.442695, %v8635_v9  ;;  %v8636_v52 = vsub.f32 0.0, %v16146_v48 }
 0x92a   : > { %13137 = vrcp.f32 %v8724_v63  ;;  %v8681_v5 = vmul.f32 1.442695, %v8638_v62 }
 0x92b   : > { %13139 = vpow2.f32 %v8679_v46  ;;  %v8677_v38 = vmul.f32 1.442695, %v8636_v52  ;;  %v11933_v3 = vpop.f32.mrb[44].mxu0 }
 0x92c   : > { %v13124_v1 = vpop.eup %13123  ;;  %13141 = vpow2.f32 %v8675_v24  ;;  %v16152_v56 = vadd.f32 %v11933_v3, %v16100_v35  ;;  %v8476_v17 = vpop.f32.mrb[45].mxu0 }
 0x92d   : > { %v13126_v29 = vpop.eup %13125  ;;  %v8729_v61 = vadd.f32 1.0, %v13124_v1  ;;  %13143 = vpow2.f32 %v8681_v5  ;;  %v16155_v12 = vadd.f32 %v16100_v35, %v8476_v17  ;;  %v11934_v45 = vpop.f32.mrb[46].mxu0 }
 0x92e   : > { %v13128_v14 = vpop.eup %13127  ;;  %v8727_v26 = vadd.f32 1.0, %v13126_v29  ;;  %13145 = vpow2.f32 %v8677_v38  ;;  %v8641_v49 = vsub.f32 0.0, %v16152_v56  ;;  %v16159_v7 = vadd.f32 %v11934_v45, %v16100_v35  ;;  %v8479_v60 = vpop.f32.mrb[47].mxu0 }
 0x92f   : > { %v13130_v0 = vpop.eup %13129  ;;  %13147 = vrcp.f32 %v8729_v61  ;;  %v8730_v53 = vadd.f32 1.0, %v13128_v14  ;;  %v8639_v8 = vsub.f32 0.0, %v16155_v12  ;;  %v16163_v47 = vadd.f32 %v16100_v35, %v8479_v60 }
 0x930   : > { %13149 = vrcp.f32 %v8727_v26  ;;  %v8728_v25 = vadd.f32 1.0, %v13130_v0  ;;  %v8687_v43 = vmul.f32 1.442695, %v8641_v49  ;;  %v8642_v16 = vsub.f32 0.0, %v16159_v7 }
 0x931   : > { %v13132_v32 = vpop.eup %13131  ;;  %13151 = vrcp.f32 %v8730_v53  ;;  %v8683_v34 = vmul.f32 1.442695, %v8639_v8  ;;  %v8640_v11 = vsub.f32 0.0, %v16163_v47 }
 0x932   : > { %v13134_v30 = vpop.eup %13133  ;;  %13153 = vrcp.f32 %v8728_v25  ;;  %v8689_v31 = vmul.f32 1.442695, %v8642_v16 }
 0x933   : > { %v13136_v33 = vpop.eup %13135  ;;  %13155 = vpow2.f32 %v8687_v43  ;;  %v8685_v42 = vmul.f32 1.442695, %v8640_v11  ;;  %8819 = vrot.lane.b32.xlu0 %v13134_v30, %s13384_s22  ;;  %v11937_v57 = vpop.f32.mrb[48].mxu0 }
 0x934   : > { %v13138_v51 = vpop.eup %13137  ;;  %13157 = vpow2.f32 %v8683_v34  ;;  %v16169_v19 = vadd.f32 %v11937_v57, %v16100_v35  ;;  %v8492_v4 = vpop.f32.mrb[49].mxu0 }
 0x935   : > { %v13140_v2 = vpop.eup %13139  ;;  %13159 = vpow2.f32 %v8689_v31  ;;  %v16172_v6 = vadd.f32 %v16100_v35, %v8492_v4  ;;  %8821 = vrot.lane.b32.xlu1 %v13138_v51, %s13384_s22  ;;  %v11938_v27 = vpop.f32.mrb[50].mxu0 }
 0x936   : > { %v13142_v59 = vpop.eup %13141  ;;  %v8733_v13 = vadd.f32 1.0, %v13140_v2  ;;  %13161 = vpow2.f32 %v8685_v42  ;;  %v8645_v39 = vsub.f32 0.0, %v16169_v19  ;;  %v16177_v23 = vadd.f32 %v11938_v27, %v16100_v35  ;;  %v8495_v15 = vpop.f32.mrb[51].mxu0 }
 0x937   : > { %v13144_v22 = vpop.eup %13143  ;;  %v8731_v37 = vadd.f32 1.0, %v13142_v59  ;;  %v8643_v28 = vsub.f32 0.0, %v16172_v6  ;;  %v16181_v9 = vadd.f32 %v16100_v35, %v8495_v15  ;;  %8823 = vrot.lane.b32.xlu0 %v13132_v32, %s13384_s22 }
 0x938   : > { %v13146_v63 = vpop.eup %13145  ;;  %13163 = vrcp.f32 %v8733_v13  ;;  %v8734_v46 = vadd.f32 1.0, %v13144_v22  ;;  %v8695_v62 = vmul.f32 1.442695, %v8645_v39  ;;  %v8646_v24 = vsub.f32 0.0, %v16177_v23 }
 0x939   : > { %v13148_v52 = vpop.eup %13147  ;;  %13165 = vrcp.f32 %v8731_v37  ;;  %v8732_v5 = vadd.f32 1.0, %v13146_v63  ;;  %v8691_v38 = vmul.f32 1.442695, %v8643_v28  ;;  %v8644_v3 = vsub.f32 0.0, %v16181_v9  ;;  %8825 = vrot.lane.b32.xlu1 %v13136_v33, %s13384_s22 }
 0x93a   : > { %v13150_v1 = vpop.eup %13149  ;;  %13167 = vrcp.f32 %v8734_v46  ;;  %v8697_v17 = vmul.f32 1.442695, %v8646_v24 }
 0x93b   : > { %v13152_v29 = vpop.eup %13151  ;;  %13169 = vrcp.f32 %v8732_v5  ;;  %v8693_v61 = vmul.f32 1.442695, %v8644_v3  ;;  %8827 = vrot.lane.b32.xlu0 %v13150_v1, %s13384_s22  ;;  %v11941_v45 = vpop.f32.mrb[52].mxu0 }
 0x93c   : > { %v13154_v14 = vpop.eup %13153  ;;  %13171 = vpow2.f32 %v8695_v62  ;;  %v16189_v26 = vadd.f32 %v11941_v45, %v16100_v35  ;;  %v8508_v49 = vpop.f32.mrb[53].mxu0 }
 0x93d   : > { %v13156_v60 = vpop.eup %13155  ;;  %13173 = vpow2.f32 %v8691_v38  ;;  %v16192_v0 = vadd.f32 %v16100_v35, %v8508_v49  ;;  %8829 = vrot.lane.b32.xlu1 %v13154_v14, %s13384_s22  ;;  %v11942_v53 = vpop.f32.mrb[54].mxu0 }
 0x93e   : > { %v13158_v8 = vpop.eup %13157  ;;  %v8737_v25 = vadd.f32 1.0, %v13156_v60  ;;  %13175 = vpow2.f32 %v8697_v17  ;;  %v8649_v43 = vsub.f32 0.0, %v16189_v26  ;;  %v16197_v16 = vadd.f32 %v11942_v53, %v16100_v35  ;;  %v8511_v32 = vpop.f32.mrb[55].mxu0 }
 0x93f   : > { %v13160_v34 = vpop.eup %13159  ;;  %v8735_v11 = vadd.f32 1.0, %v13158_v8  ;;  %13177 = vpow2.f32 %v8693_v61  ;;  %v8647_v30 = vsub.f32 0.0, %v16192_v0  ;;  %v16201_v31 = vadd.f32 %v16100_v35, %v8511_v32  ;;  %8831 = vrot.lane.b32.xlu0 %v13148_v52, %s13384_s22 }
 0x940   : > { %v13162_v33 = vpop.eup %13161  ;;  %13179 = vrcp.f32 %v8737_v25  ;;  %v8738_v42 = vadd.f32 1.0, %v13160_v34  ;;  %v8703_v57 = vmul.f32 1.442695, %v8649_v43  ;;  %v8650_v51 = vsub.f32 0.0, %v16197_v16 }
 0x941   : > { %13181 = vrcp.f32 %v8735_v11  ;;  %v8736_v4 = vadd.f32 1.0, %v13162_v33  ;;  %v8699_v2 = vmul.f32 1.442695, %v8647_v30  ;;  %v8648_v27 = vsub.f32 0.0, %v16201_v31  ;;  %8833 = vrot.lane.b32.xlu1 %v13152_v29, %s13384_s22 }
 0x942   : > { %v13164_v59 = vpop.eup %13163  ;;  %13183 = vrcp.f32 %v8738_v42  ;;  %v8705_v13 = vmul.f32 1.442695, %v8650_v51 }
 0x943   : > { %v13166_v39 = vpop.eup %13165  ;;  %13185 = vrcp.f32 %v8736_v4  ;;  %v8701_v15 = vmul.f32 1.442695, %v8648_v27  ;;  %v11945_v22 = vpop.f32.mrb[56].mxu0 }
 0x944   : > { %v13168_v37 = vpop.eup %13167  ;;  %13187 = vpow2.f32 %v8703_v57  ;;  %8835 = vrot.lane.b32.xlu0 %v13166_v39, %s13384_s22  ;;  %v16209_v28 = vadd.f32 %v11945_v22, %v16100_v35  ;;  %v8524_v63 = vpop.f32.mrb[57].mxu0 }
 0x945   : > { %v13170_v46 = vpop.eup %13169  ;;  %13189 = vpow2.f32 %v8699_v2  ;;  %v16212_v62 = vadd.f32 %v16100_v35, %v8524_v63  ;;  %v11946_v24 = vpop.f32.mrb[58].mxu0 }
 0x946   : > { %v13172_v52 = vpop.eup %13171  ;;  %13191 = vpow2.f32 %v8705_v13  ;;  %v8653_v5 = vsub.f32 0.0, %v16209_v28  ;;  %8837 = vrot.lane.b32.xlu1 %v13170_v46, %s13384_s22  ;;  %v16217_v38 = vadd.f32 %v11946_v24, %v16100_v35  ;;  %v8527_v3 = vpop.f32.mrb[59].mxu0 }
 0x947   : > { %v13174_v1 = vpop.eup %13173  ;;  %v8741_v17 = vadd.f32 1.0, %v13172_v52  ;;  %13193 = vpow2.f32 %v8701_v15  ;;  %v8651_v29 = vsub.f32 0.0, %v16212_v62  ;;  %v16221_v61 = vadd.f32 %v16100_v35, %v8527_v3 }
 0x948   : > { %v13176_v45 = vpop.eup %13175  ;;  %v8739_v14 = vadd.f32 1.0, %v13174_v1  ;;  %v8654_v49 = vsub.f32 0.0, %v16217_v38  ;;  %8839 = vrot.lane.b32.xlu0 %v13164_v59, %s13384_s22  ;;  %v8711_v8 = vmul.f32 1.442695, %v8653_v5 }
 0x949   : > { %v13178_v60 = vpop.eup %13177  ;;  %13195 = vrcp.f32 %v8741_v17  ;;  %v8742_v53 = vadd.f32 1.0, %v13176_v45  ;;  %v8652_v25 = vsub.f32 0.0, %v16221_v61  ;;  %v8707_v34 = vmul.f32 1.442695, %v8651_v29 }
 0x94a   : > { %v13180_v43 = vpop.eup %13179  ;;  %13197 = vrcp.f32 %v8739_v14  ;;  %v8740_v32 = vadd.f32 1.0, %v13178_v60  ;;  %8841 = vrot.lane.b32.xlu1 %v13168_v37, %s13384_s22  ;;  %v8713_v30 = vmul.f32 1.442695, %v8654_v49 }
 0x94b   : > { %v13182_v11 = vpop.eup %13181  ;;  %13199 = vrcp.f32 %v8742_v53  ;;  %v11949_v33 = vpop.f32.mrb[60].mxu0  ;;  %v8709_v57 = vmul.f32 1.442695, %v8652_v25 }
 0x94c   : > { %v13184_v42 = vpop.eup %13183  ;;  %13201 = vrcp.f32 %v8740_v32  ;;  %8843 = vrot.lane.b32.xlu0 %v13182_v11, %s13384_s22  ;;  %v16229_v51 = vadd.f32 %v11949_v33, %v16100_v35  ;;  %v8540_v4 = vpop.f32.mrb[61].mxu0 }
 0x94d   : > { %v13186_v2 = vpop.eup %13185  ;;  %13203 = vpow2.f32 %v8711_v8  ;;  %v16232_v27 = vadd.f32 %v16100_v35, %v8540_v4  ;;  %v11950_v59 = vpop.f32.mrb[62].mxu0 }
 0x94e   : > { %v13188_v13 = vpop.eup %13187  ;;  %13205 = vpow2.f32 %v8707_v34  ;;  %v8657_v39 = vsub.f32 0.0, %v16229_v51  ;;  %8845 = vrot.lane.b32.xlu1 %v13186_v2, %s13384_s22  ;;  %v16237_v15 = vadd.f32 %v11950_v59, %v16100_v35  ;;  %v8543_v22 = vpop.f32.mrb[63].mxu0 }
 0x94f   : > { %v13190_v37 = vpop.eup %13189  ;;  %v8745_v63 = vadd.f32 1.0, %v13188_v13  ;;  %13207 = vpow2.f32 %v8713_v30  ;;  %v8655_v46 = vsub.f32 0.0, %v16232_v27  ;;  %v16241_v24 = vadd.f32 %v16100_v35, %v8543_v22 }
 0x950   : > { %v13192_v52 = vpop.eup %13191  ;;  %v8743_v5 = vadd.f32 1.0, %v13190_v37  ;;  %13209 = vpow2.f32 %v8709_v57  ;;  %v8658_v3 = vsub.f32 0.0, %v16237_v15  ;;  %8847 = vrot.lane.b32.xlu0 %v13180_v43, %s13384_s22  ;;  %v8719_v29 = vmul.f32 1.442695, %v8657_v39 }
 0x951   : > { %v13194_v1 = vpop.eup %13193  ;;  %13211 = vrcp.f32 %v8745_v63  ;;  %v8746_v17 = vadd.f32 1.0, %v13192_v52  ;;  %v8656_v45 = vsub.f32 0.0, %v16241_v24  ;;  %v8715_v49 = vmul.f32 1.442695, %v8655_v46 }
 0x952   : > { %13213 = vrcp.f32 %v8743_v5  ;;  %v8744_v14 = vadd.f32 1.0, %v13194_v1  ;;  %8849 = vrot.lane.b32.xlu1 %v13184_v42, %s13384_s22  ;;  %v8721_v60 = vmul.f32 1.442695, %v8658_v3 }
 0x953   : > { %v13196_v35 = vpop.eup %13195  ;;  %13215 = vrcp.f32 %v8746_v17  ;;  %v8717_v8 = vmul.f32 1.442695, %v8656_v45 }
 0x954   : > { %v13198_v53 = vpop.eup %13197  ;;  %13217 = vrcp.f32 %v8744_v14 }
 0x955   : > { %v13200_v25 = vpop.eup %13199  ;;  %13219 = vpow2.f32 %v8719_v29  ;;  %8851 = vrot.lane.b32.xlu0 %v13198_v53, %s13384_s22 }
 0x956   : > { %v13202_v43 = vpop.eup %13201  ;;  %13221 = vpow2.f32 %v8715_v49 }
 0x957   : > { %v13204_v32 = vpop.eup %13203  ;;  %13223 = vpow2.f32 %v8721_v60  ;;  %8853 = vrot.lane.b32.xlu1 %v13202_v43, %s13384_s22 }
 0x958   : > { %v13206_v34 = vpop.eup %13205  ;;  %13225 = vpow2.f32 %v8717_v8  ;;  %v8749_v57 = vadd.f32 1.0, %v13204_v32 }
 0x959   : > { %v13208_v11 = vpop.eup %13207  ;;  %v8747_v30 = vadd.f32 1.0, %v13206_v34  ;;  %8855 = vrot.lane.b32.xlu0 %v13196_v35, %s13384_s22 }
 0x95a   : > { %v13210_v33 = vpop.eup %13209  ;;  %v8750_v13 = vadd.f32 1.0, %v13208_v11 }
 0x95b   : > { %v13212_v42 = vpop.eup %13211  ;;  %13227 = vrcp.f32 %v8747_v30  ;;  %v8748_v4 = vadd.f32 1.0, %v13210_v33  ;;  %8857 = vrot.lane.b32.xlu1 %v13200_v25, %s13384_s22 }
 0x95c   : > { %v13214_v2 = vpop.eup %13213 }
 0x95d   : > { %v13216_v59 = vpop.eup %13215  ;;  %13229 = vrcp.f32 %v8748_v4  ;;  %8859 = vrot.lane.b32.xlu0 %v13214_v2, %s13384_s22 }
 0x95e   : > { %v13218_v39 = vpop.eup %13217  ;;  %13231 = vrcp.f32 %v8749_v57 }
 0x95f   : > { %v13220_v22 = vpop.eup %13219  ;;  %8861 = vrot.lane.b32.xlu1 %v13218_v39, %s13384_s22  ;;  %13233 = vrcp.f32 %v8750_v13 }
 0x960   : > { %v13222_v37 = vpop.eup %13221  ;;  %v8753_v5 = vadd.f32 1.0, %v13220_v22 }
 0x961   : > { %v13224_v63 = vpop.eup %13223  ;;  %v8751_v46 = vadd.f32 1.0, %v13222_v37  ;;  %8863 = vrot.lane.b32.xlu0 %v13212_v42, %s13384_s22 }
 0x962   : > { %v13226_v52 = vpop.eup %13225  ;;  %v8754_v17 = vadd.f32 1.0, %v13224_v63 }
 0x963   : > { %13235 = vrcp.f32 %v8751_v46  ;;  %v8752_v3 = vadd.f32 1.0, %v13226_v52  ;;  %8865 = vrot.lane.b32.xlu1 %v13216_v59, %s13384_s22 }
 0x965   : > { %v13228_v1 = vpop.eup %13227  ;;  %13237 = vrcp.f32 %v8752_v3 }
 0x966   : > { %8867 = vrot.lane.b32.xlu0 %v13228_v1, %s13384_s22  ;;  %13239 = vrcp.f32 %v8753_v5 }
 0x967   : > { %v13230_v29 = vpop.eup %13229  ;;  %13241 = vrcp.f32 %v8754_v17 }
 0x968   : > { %8869 = vrot.lane.b32.xlu1 %v13230_v29, %s13384_s22  ;;  %v13232_v45 = vpop.eup %13231 }
 0x969   : > { %v13234_v14 = vpop.eup %13233 }
 0x96a   : > { %8871 = vrot.lane.b32.xlu0 %v13232_v45, %s13384_s22 }
 0x96c   : > { %8873 = vrot.lane.b32.xlu1 %v13234_v14, %s13384_s22 }
 0x96d   : > { %v13236_v49 = vpop.eup %13235 }
 0x96e   : > { %8875 = vrot.lane.b32.xlu0 %v13236_v49, %s13384_s22 }
 0x96f   : > { %v13238_v35 = vpop.eup %13237 }
 0x970   : > { %8877 = vrot.lane.b32.xlu1 %v13238_v35, %s13384_s22  ;;  %v13240_v60 = vpop.eup %13239 }
 0x971   : > { %v13242_v53 = vpop.eup %13241 }
 0x972   : > { %8879 = vrot.lane.b32.xlu0 %v13240_v60, %s13384_s22 }
 0x974   : > { %8881 = vrot.lane.b32.xlu1 %v13242_v53, %s13384_s22 }
 0x9a5   : > { %v8820_v8 = vpop.permute.xlu0 %8819 }
 0x9a6   : > { %v8915_v43 = vmul.f32 %v8820_v8, %v16106_v50 }
 0x9a7   : > { %v8822_v25 = vpop.permute.xlu1 %8821 }
 0x9a8   : > { %v8916_v32 = vmul.f32 %v8822_v25, %v16114_v40 }
 0x9a9   : > { %v8824_v30 = vpop.permute.xlu0 %8823 }
 0x9aa   : > { %v8947_v34 = vpack.c.bf16 %v8916_v32, %v8915_v43  ;;  %v8917_v42 = vmul.f32 %v8824_v30, %v16103_v58 }
 0x9ab   : > { %v8826_v11 = vpop.permute.xlu1 %8825 }
 0x9ac   : > { %10312 = vmatmul.mubr.msk.bf16.vlgmr.msra.gmra.mrb[64].mxu1 %vm226_vm0, %v8947_v34  ;;  %v8918_v33 = vmul.f32 %v8826_v11, %v16110_v41 }
 0x9ad   : > { %9113 = vmatprep.mubr.bf16.mxu1 %v13385_v18  ;;  %v8828_v2 = vpop.permute.xlu0 %8827 }
 0x9ae   : > { %v8948_v57 = vpack.c.bf16 %v8918_v33, %v8917_v42  ;;  %v8919_v40 = vmul.f32 %v8828_v2, %v16122_v10 }
 0x9af   : > { %v8830_v4 = vpop.permute.xlu1 %8829 }
 0x9b0   : > { %v8920_v50 = vmul.f32 %v8830_v4, %v16130_v54 }
 0x9b1   : > { %v8832_v39 = vpop.permute.xlu0 %8831 }
 0x9b2   : > { %v8949_v59 = vpack.c.bf16 %v8920_v50, %v8919_v40  ;;  %v8921_v41 = vmul.f32 %v8832_v39, %v16119_v36 }
 0x9b3   : > { %v8834_v13 = vpop.permute.xlu1 %8833 }
 0x9b4   : > { %10313 = vmatmul.mubr.msk.bf16.gmra.mrb[68].mxu1 %vm226_vm0, %v8948_v57  ;;  %v8922_v58 = vmul.f32 %v8834_v13, %v16126_v20 }
 0x9b5   : > { %9123 = vmatprep.mubr.bf16.mxu1 %v13385_v18 }
 0x9b6   : > { %v8950_v22 = vpack.c.bf16 %v8922_v58, %v8921_v41  ;;  %v8836_v63 = vpop.permute.xlu0 %8835 }
 0x9b7   : > { %v8923_v54 = vmul.f32 %v8836_v63, %v16138_v44  ;;  %v8973_v63 = vlaneseq }
 0x9b8   : > { %v8838_v37 = vpop.permute.xlu1 %8837 }
 0x9b9   : > { %v8924_v10 = vmul.f32 %v8838_v37, %v16146_v48 }
 0x9ba   : > { %v8840_v5 = vpop.permute.xlu0 %8839 }
 0x9bb   : > { %v8951_v46 = vpack.c.bf16 %v8924_v10, %v8923_v54  ;;  %v8925_v20 = vmul.f32 %v8840_v5, %v16135_v55  ;;  %v8974_v10 = vshrl.u32 %v8973_v63, 7 }
 0x9bc   : > { %10314 = vmatmul.mubr.msk.bf16.gmra.mrb[72].mxu1 %vm226_vm0, %v8949_v59  ;;  %v8842_v52 = vpop.permute.xlu1 %8841 }
 0x9bd   : > { %9133 = vmatprep.mubr.bf16.mxu1 %v13385_v18  ;;  %v8926_v36 = vmul.f32 %v8842_v52, %v16142_v21  ;;  %v8979_v54 = vsub.s32 1, %v8974_v10 }
 0x9be   : > { %v8844_v17 = vpop.permute.xlu0 %8843 }
 0x9bf   : > { %v8952_v3 = vpack.c.bf16 %v8926_v36, %v8925_v20  ;;  %v8927_v48 = vmul.f32 %v8844_v17, %v16155_v12 }
 0x9c0   : > { %v8846_v1 = vpop.permute.xlu1 %8845 }
 0x9c1   : > { %v8928_v44 = vmul.f32 %v8846_v1, %v16163_v47 }
 0x9c2   : > { %v8848_v14 = vpop.permute.xlu0 %8847 }
 0x9c3   : > { %v8953_v29 = vpack.c.bf16 %v8928_v44, %v8927_v48  ;;  %v8929_v21 = vmul.f32 %v8848_v14, %v16152_v56 }
 0x9c4   : > { %10315 = vmatmul.mubr.msk.bf16.gmra.mrb[76].mxu1 %vm226_vm0, %v8950_v22  ;;  %v8850_v45 = vpop.permute.xlu1 %8849 }
 0x9c5   : > { %9143 = vmatprep.mubr.bf16.mxu1 %v13385_v18  ;;  %v8930_v55 = vmul.f32 %v8850_v45, %v16159_v7 }
 0x9c7   : > { %v8954_v49 = vpack.c.bf16 %v8930_v55, %v8929_v21  ;;  %v8852_v60 = vpop.permute.xlu0 %8851 }
 0x9c8   : > { %v8931_v47 = vmul.f32 %v8852_v60, %v16172_v6 }
 0x9c9   : > { %v8854_v35 = vpop.permute.xlu1 %8853 }
 0x9ca   : > { %v8932_v12 = vmul.f32 %v8854_v35, %v16181_v9 }
 0x9cb   : > { %v8856_v25 = vpop.permute.xlu0 %8855 }
 0x9cc   : > { %10316 = vmatmul.mubr.msk.bf16.gmra.mrb[80].mxu1 %vm226_vm0, %v8951_v46  ;;  %v8955_v53 = vpack.c.bf16 %v8932_v12, %v8931_v47  ;;  %v8933_v7 = vmul.f32 %v8856_v25, %v16169_v19 }
 0x9cd   : > { %9153 = vmatprep.mubr.bf16.mxu1 %v13385_v18  ;;  %v8858_v8 = vpop.permute.xlu1 %8857 }
 0x9ce   : > { %v8934_v56 = vmul.f32 %v8858_v8, %v16177_v23 }
 0x9cf   : > { %v8860_v34 = vpop.permute.xlu0 %8859 }
 0x9d0   : > { %v8956_v43 = vpack.c.bf16 %v8934_v56, %v8933_v7  ;;  %v8935_v9 = vmul.f32 %v8860_v34, %v16192_v0 }
 0x9d1   : > { %v8862_v32 = vpop.permute.xlu1 %8861 }
 0x9d2   : > { %v8936_v6 = vmul.f32 %v8862_v32, %v16201_v31 }
 0x9d3   : > { %v8864_v33 = vpop.permute.xlu0 %8863 }
 0x9d4   : > { %10317 = vmatmul.mubr.msk.bf16.gmra.mrb[84].mxu1 %vm226_vm0, %v8952_v3  ;;  %v8957_v11 = vpack.c.bf16 %v8936_v6, %v8935_v9  ;;  %v8937_v23 = vmul.f32 %v8864_v33, %v16189_v26  ;;  %v8975_v6 = vsub.s32 0, %v8974_v10 }
 0x9d5   : > { %9163 = vmatprep.mubr.bf16.mxu1 %v13385_v18  ;;  %v8866_v30 = vpop.permute.xlu1 %8865 }
 0x9d6   : > { %v8938_v19 = vmul.f32 %v8866_v30, %v16197_v16 }
 0x9d8   : > { %v8958_v42 = vpack.c.bf16 %v8938_v19, %v8937_v23  ;;  %v8868_v4 = vpop.permute.xlu0 %8867 }
 0x9d9   : > { %v8939_v31 = vmul.f32 %v8868_v4, %v16212_v62 }
 0x9da   : > { %v8870_v57 = vpop.permute.xlu1 %8869 }
 0x9db   : > { %v8940_v0 = vmul.f32 %v8870_v57, %v16221_v61 }
 0x9dc   : > { %10318 = vmatmul.mubr.msk.bf16.gmra.mrb[88].mxu1 %vm226_vm0, %v8953_v29  ;;  %v8872_v40 = vpop.permute.xlu0 %8871 }
 0x9dd   : > { %9173 = vmatprep.mubr.bf16.mxu1 %v13385_v18  ;;  %v8959_v2 = vpack.c.bf16 %v8940_v0, %v8939_v31  ;;  %v8941_v16 = vmul.f32 %v8872_v40, %v16209_v28 }
 0x9de   : > { %v8874_v50 = vpop.permute.xlu1 %8873 }
 0x9df   : > { %v8942_v26 = vmul.f32 %v8874_v50, %v16217_v38 }
 0x9e0   : > { %v8876_v39 = vpop.permute.xlu0 %8875 }
 0x9e1   : > { %v8960_v59 = vpack.c.bf16 %v8942_v26, %v8941_v16  ;;  %v8943_v61 = vmul.f32 %v8876_v39, %v16232_v27  ;;  %v8971_v27 = vld [vmem:[%s16526_s4] sm:$0x3] }
 0x9e2   : > { %v8878_v13 = vpop.permute.xlu1 %8877 }
 0x9e3   : > { %v8944_v62 = vmul.f32 %v8878_v13, %v16241_v24  ;;  %v16329_v24 = vrot.slane %v8971_v27, %v8979_v54 }
 0x9e4   : > { %10319 = vmatmul.mubr.msk.bf16.gmra.mrb[92].mxu1 %vm226_vm0, %v8954_v49  ;;  %v8880_v22 = vpop.permute.xlu0 %8879 }
 0x9e5   : > { %9183 = vmatprep.mubr.bf16.mxu1 %v13385_v18  ;;  %v8961_v58 = vpack.c.bf16 %v8944_v62, %v8943_v61  ;;  %v8945_v38 = vmul.f32 %v8880_v22, %v16229_v51 }
 0x9e6   : > { %v8882_v41 = vpop.permute.xlu1 %8881 }
 0x9e7   : > { %v8946_v28 = vmul.f32 %v8882_v41, %v16237_v15 }
 0x9e9   : > { %v8962_v37 = vpack.c.bf16 %v8946_v28, %v8945_v38 }
 0x9ec   : > { %10320 = vmatmul.mubr.msk.bf16.gmra.mrb[96].mxu1 %vm226_vm0, %v8955_v53 }
 0x9ed   : > { %9193 = vmatprep.mubr.bf16.mxu1 %v13385_v18 }
 0x9f4   : > { %10321 = vmatmul.mubr.msk.bf16.gmra.mrb[100].mxu1 %vm226_vm0, %v8956_v43 }
 0x9f5   : > { %9203 = vmatprep.mubr.bf16.mxu1 %v13385_v18 }
 0x9fc   : > { %10322 = vmatmul.mubr.msk.bf16.gmra.mrb[104].mxu1 %vm226_vm0, %v8957_v11 }
 0x9fd   : > { %9213 = vmatprep.mubr.bf16.mxu1 %v13385_v18 }
 0xa04   : > { %10323 = vmatmul.mubr.msk.bf16.gmra.mrb[108].mxu1 %vm226_vm0, %v8958_v42  ;;  %v16347_v42 = vrot.slane %v8971_v27, %v8975_v6 }
 0xa05   : > { %9223 = vmatprep.mubr.bf16.mxu1 %v13385_v18 }
 0xa0c   : > { %10324 = vmatmul.mubr.msk.bf16.gmra.mrb[112].mxu1 %vm226_vm0, %v8959_v2 }
 0xa0d   : > { %9233 = vmatprep.mubr.bf16.mxu1 %v13385_v18 }
 0xa14   : > { %10325 = vmatmul.mubr.msk.bf16.gmra.mrb[116].mxu1 %vm226_vm0, %v8960_v59 }
 0xa15   : > { %9243 = vmatprep.mubr.bf16.mxu1 %v13385_v18 }
 0xa1c   : > { %10326 = vmatmul.mubr.msk.bf16.gmra.mrb[120].mxu1 %vm226_vm0, %v8961_v58 }
 0xa1d   : > { %9253 = vmatprep.mubr.bf16.mxu1 %v13385_v18 }
 0xa24   : > { %10327 = vmatmul.mubr.msk.bf16.gmra.mrb[124].mxu1 %vm226_vm0, %v8962_v37 }
 0xa7f   : > { %v9105_v46 = vpop.f32.mrb[64].mxu1 }
 0xa80   : > { %v9107_v52 = vpop.f32.mrb[65].mxu1  ;;  %v9106_v16 = vadd.f32 %v9105_v46, %v16347_v42 }
 0xa81   : > { %v9108_v18 = vadd.f32 %v9107_v52, %v16329_v24  ;;  %v9109_v5 = vpop.f32.mrb[66].mxu1 }
 0xa82   : > { %v9111_v15 = vpop.f32.mrb[67].mxu1  ;;  %v9110_v61 = vadd.f32 %v9109_v5, %v16347_v42 }
 0xa83   : > { %v9264_v36 = vsub.f32 0.0, %v9108_v18  ;;  %v9112_v51 = vadd.f32 %v9111_v15, %v16329_v24 }
 0xa85   : > { %v9296_v20 = vmul.f32 1.442695, %v9264_v36  ;;  %v9265_v3 = vsub.f32 0.0, %v9112_v51 }
 0xa87   : > { %13243 = vpow2.f32 %v9296_v20  ;;  %v9298_v1 = vmul.f32 1.442695, %v9265_v3  ;;  %v16333_v17 = vpop.f32.mrb[68].mxu1 }
 0xa88   : > { %v9117_v44 = vpop.f32.mrb[69].mxu1  ;;  %v9116_v15 = vadd.f32 %v16333_v17, %v16347_v42 }
 0xa89   : > { %13245 = vpow2.f32 %v9298_v1  ;;  %v9118_v48 = vadd.f32 %v9117_v44, %v16329_v24  ;;  %v16336_v29 = vpop.f32.mrb[70].mxu1 }
 0xa8a   : > { %v9121_v45 = vpop.f32.mrb[71].mxu1  ;;  %v9120_v1 = vadd.f32 %v16336_v29, %v16347_v42 }
 0xa8b   : > { %v9266_v14 = vsub.f32 0.0, %v9118_v48  ;;  %v9122_v55 = vadd.f32 %v9121_v45, %v16329_v24 }
 0xa8d   : > { %v9300_v21 = vmul.f32 1.442695, %v9266_v14  ;;  %v9267_v49 = vsub.f32 0.0, %v9122_v55 }
 0xa8f   : > { %13247 = vpow2.f32 %v9300_v21  ;;  %v9302_v35 = vmul.f32 1.442695, %v9267_v49  ;;  %v16339_v60 = vpop.f32.mrb[72].mxu1 }
 0xa90   : > { %v9127_v12 = vpop.f32.mrb[73].mxu1 }
 0xa91   : > { %v13244_v47 = vpop.eup %13243  ;;  %13249 = vpow2.f32 %v9302_v35  ;;  %v9128_v53 = vadd.f32 %v9127_v12, %v16329_v24  ;;  %v16342_v8 = vpop.f32.mrb[74].mxu1 }
 0xa92   : > { %v9360_v25 = vadd.f32 1.0, %v13244_v47  ;;  %v9131_v56 = vpop.f32.mrb[75].mxu1  ;;  %v9130_v6 = vadd.f32 %v16342_v8, %v16347_v42 }
 0xa93   : > { %v13246_v7 = vpop.eup %13245  ;;  %v9268_v43 = vsub.f32 0.0, %v9128_v53  ;;  %v9132_v32 = vadd.f32 %v9131_v56, %v16329_v24  ;;  %v9126_v56 = vadd.f32 %v16339_v60, %v16347_v42 }
 0xa94   : > { %13251 = vrcp.f32 %v9360_v25  ;;  %v9361_v34 = vadd.f32 1.0, %v13246_v7 }
 0xa95   : > { %v9304_v9 = vmul.f32 1.442695, %v9268_v43  ;;  %v9269_v11 = vsub.f32 0.0, %v9132_v32 }
 0xa96   : > { %13253 = vrcp.f32 %v9361_v34 }
 0xa97   : > { %13255 = vpow2.f32 %v9304_v9  ;;  %v9306_v30 = vmul.f32 1.442695, %v9269_v11  ;;  %v16345_v33 = vpop.f32.mrb[76].mxu1 }
 0xa98   : > { %v9137_v19 = vpop.f32.mrb[77].mxu1 }
 0xa99   : > { %v13248_v23 = vpop.eup %13247  ;;  %13257 = vpow2.f32 %v9306_v30  ;;  %v9138_v57 = vadd.f32 %v9137_v19, %v16329_v24  ;;  %v16350_v4 = vpop.f32.mrb[78].mxu1 }
 0xa9a   : > { %v9362_v0 = vadd.f32 1.0, %v13248_v23  ;;  %v9141_v31 = vpop.f32.mrb[79].mxu1 }
 0xa9b   : > { %v13250_v2 = vpop.eup %13249  ;;  %v9270_v50 = vsub.f32 0.0, %v9138_v57  ;;  %v9142_v40 = vadd.f32 %v9141_v31, %v16329_v24 }
 0xa9c   : > { %13259 = vrcp.f32 %v9362_v0  ;;  %v9363_v26 = vadd.f32 1.0, %v13250_v2 }
 0xa9d   : > { %v9308_v59 = vmul.f32 1.442695, %v9270_v50  ;;  %v9271_v13 = vsub.f32 0.0, %v9142_v40 }
 0xa9e   : > { %v13252_v39 = vpop.eup %13251  ;;  %13261 = vrcp.f32 %v9363_v26 }
 0xa9f   : > { %v9424_v62 = vmul.f32 %v13252_v39, %v9106_v16  ;;  %13263 = vpow2.f32 %v9308_v59  ;;  %v9310_v58 = vmul.f32 1.442695, %v9271_v13  ;;  %v16361_v41 = vpop.f32.mrb[80].mxu1  ;;  %v9136_v16 = vadd.f32 %v16345_v33, %v16347_v42 }
 0xaa0   : > { %v13254_v22 = vpop.eup %13253  ;;  %v9147_v28 = vpop.f32.mrb[81].mxu1 }
 0xaa1   : > { %v13256_v38 = vpop.eup %13255  ;;  %9456 = vst [vmem:[%s16358_s6] sm:$0xff] %v9424_v62  ;;  %v9425_v37 = vmul.f32 %v13254_v22, %v9110_v61  ;;  %13265 = vpow2.f32 %v9310_v58  ;;  %v9148_v63 = vadd.f32 %v9147_v28, %v16329_v24  ;;  %v16365_v10 = vpop.f32.mrb[82].mxu1  ;;  %v9140_v61 = vadd.f32 %v16350_v4, %v16347_v42 }
 0xaa2   : > { %v9364_v54 = vadd.f32 1.0, %v13256_v38  ;;  %v9151_v27 = vpop.f32.mrb[83].mxu1 }
 0xaa3   : > { %v13258_v46 = vpop.eup %13257  ;;  %9457 = vst [vmem:[%s16358_s6 + $0x8] sm:$0xff] %v9425_v37  ;;  %v9272_v52 = vsub.f32 0.0, %v9148_v63  ;;  %v9152_v18 = vadd.f32 %v9151_v27, %v16329_v24 }
 0xaa4   : > { %13267 = vrcp.f32 %v9364_v54  ;;  %v9365_v5 = vadd.f32 1.0, %v13258_v46 }
 0xaa5   : > { %v9312_v36 = vmul.f32 1.442695, %v9272_v52  ;;  %v9273_v51 = vsub.f32 0.0, %v9152_v18 }
 0xaa6   : > { %v13260_v20 = vpop.eup %13259  ;;  %13269 = vrcp.f32 %v9365_v5 }
 0xaa7   : > { %v9426_v3 = vmul.f32 %v13260_v20, %v9116_v15  ;;  %13271 = vpow2.f32 %v9312_v36  ;;  %v9314_v44 = vmul.f32 1.442695, %v9273_v51  ;;  %v16373_v48 = vpop.f32.mrb[84].mxu1  ;;  %v9146_v15 = vadd.f32 %v16361_v41, %v16347_v42 }
 0xaa8   : > { %v13262_v45 = vpop.eup %13261  ;;  %v9157_v14 = vpop.f32.mrb[85].mxu1 }
 0xaa9   : > { %v13264_v55 = vpop.eup %13263  ;;  %9458 = vst [vmem:[%s16358_s6 + $0x10] sm:$0xff] %v9426_v3  ;;  %v9427_v21 = vmul.f32 %v13262_v45, %v9120_v1  ;;  %13273 = vpow2.f32 %v9314_v44  ;;  %v9158_v17 = vadd.f32 %v9157_v14, %v16329_v24  ;;  %v16377_v49 = vpop.f32.mrb[86].mxu1  ;;  %v9150_v1 = vadd.f32 %v16365_v10, %v16347_v42 }
 0xaaa   : > { %v9366_v35 = vadd.f32 1.0, %v13264_v55  ;;  %v9161_v12 = vpop.f32.mrb[87].mxu1 }
 0xaab   : > { %v13266_v47 = vpop.eup %13265  ;;  %9459 = vst [vmem:[%s16358_s6 + $0x18] sm:$0xff] %v9427_v21  ;;  %v9274_v53 = vsub.f32 0.0, %v9158_v17  ;;  %v9162_v29 = vadd.f32 %v9161_v12, %v16329_v24 }
 0xaac   : > { %13275 = vrcp.f32 %v9366_v35  ;;  %v9367_v25 = vadd.f32 1.0, %v13266_v47 }
 0xaad   : > { %v9316_v7 = vmul.f32 1.442695, %v9274_v53  ;;  %v9275_v43 = vsub.f32 0.0, %v9162_v29 }
 0xaae   : > { %v13268_v32 = vpop.eup %13267  ;;  %13277 = vrcp.f32 %v9367_v25 }
 0xaaf   : > { %v9428_v34 = vmul.f32 %v13268_v32, %v9126_v56  ;;  %13279 = vpow2.f32 %v9316_v7  ;;  %v9318_v9 = vmul.f32 1.442695, %v9275_v43  ;;  %v16385_v11 = vpop.f32.mrb[88].mxu1  ;;  %v9156_v56 = vadd.f32 %v16373_v48, %v16347_v42 }
 0xab0   : > { %v13270_v30 = vpop.eup %13269  ;;  %v9167_v19 = vpop.f32.mrb[89].mxu1 }
 0xab1   : > { %v13272_v23 = vpop.eup %13271  ;;  %9460 = vst [vmem:[%s16358_s6 + $0x20] sm:$0xff] %v9428_v34  ;;  %v9429_v57 = vmul.f32 %v13270_v30, %v9130_v6  ;;  %13281 = vpow2.f32 %v9318_v9  ;;  %v9168_v60 = vadd.f32 %v9167_v19, %v16329_v24  ;;  %v16389_v0 = vpop.f32.mrb[90].mxu1  ;;  %v9160_v6 = vadd.f32 %v16377_v49, %v16347_v42 }
 0xab2   : > { %v9368_v31 = vadd.f32 1.0, %v13272_v23  ;;  %v9171_v2 = vpop.f32.mrb[91].mxu1 }
 0xab3   : > { %v13274_v50 = vpop.eup %13273  ;;  %9461 = vst [vmem:[%s16358_s6 + $0x28] sm:$0xff] %v9429_v57  ;;  %v9276_v40 = vsub.f32 0.0, %v9168_v60  ;;  %v9172_v8 = vadd.f32 %v9171_v2, %v16329_v24 }
 0xab4   : > { %13283 = vrcp.f32 %v9368_v31  ;;  %v9369_v26 = vadd.f32 1.0, %v13274_v50 }
 0xab5   : > { %v9320_v59 = vmul.f32 1.442695, %v9276_v40  ;;  %v9277_v13 = vsub.f32 0.0, %v9172_v8 }
 0xab6   : > { %v13276_v39 = vpop.eup %13275  ;;  %13285 = vrcp.f32 %v9369_v26 }
 0xab7   : > { %v9430_v62 = vmul.f32 %v13276_v39, %v9136_v16  ;;  %13287 = vpow2.f32 %v9320_v59  ;;  %v9322_v58 = vmul.f32 1.442695, %v9277_v13  ;;  %v16397_v22 = vpop.f32.mrb[92].mxu1  ;;  %v9166_v16 = vadd.f32 %v16385_v11, %v16347_v42 }
 0xab8   : > { %v13278_v28 = vpop.eup %13277  ;;  %v9177_v38 = vpop.f32.mrb[93].mxu1 }
 0xab9   : > { %v13280_v37 = vpop.eup %13279  ;;  %9462 = vst [vmem:[%s16358_s6 + $0x30] sm:$0xff] %v9430_v62  ;;  %v9431_v63 = vmul.f32 %v13278_v28, %v9140_v61  ;;  %13289 = vpow2.f32 %v9322_v58  ;;  %v9178_v33 = vadd.f32 %v9177_v38, %v16329_v24  ;;  %v16401_v54 = vpop.f32.mrb[94].mxu1  ;;  %v9170_v61 = vadd.f32 %v16389_v0, %v16347_v42 }
 0xaba   : > { %v9370_v27 = vadd.f32 1.0, %v13280_v37  ;;  %v9181_v46 = vpop.f32.mrb[95].mxu1 }
 0xabb   : > { %v13282_v52 = vpop.eup %13281  ;;  %9463 = vst [vmem:[%s16358_s6 + $0x38] sm:$0xff] %v9431_v63  ;;  %v9278_v18 = vsub.f32 0.0, %v9178_v33  ;;  %v9182_v4 = vadd.f32 %v9181_v46, %v16329_v24 }
 0xabc   : > { %13291 = vrcp.f32 %v9370_v27  ;;  %v9371_v5 = vadd.f32 1.0, %v13282_v52 }
 0xabd   : > { %v9324_v36 = vmul.f32 1.442695, %v9278_v18  ;;  %v9279_v51 = vsub.f32 0.0, %v9182_v4 }
 0xabe   : > { %v13284_v20 = vpop.eup %13283  ;;  %13293 = vrcp.f32 %v9371_v5 }
 0xabf   : > { %v9432_v3 = vmul.f32 %v13284_v20, %v9146_v15  ;;  %13295 = vpow2.f32 %v9324_v36  ;;  %v9326_v44 = vmul.f32 1.442695, %v9279_v51  ;;  %v16409_v45 = vpop.f32.mrb[96].mxu1  ;;  %v9176_v15 = vadd.f32 %v16397_v22, %v16347_v42 }
 0xac0   : > { %v13286_v14 = vpop.eup %13285  ;;  %v9187_v55 = vpop.f32.mrb[97].mxu1 }
 0xac1   : > { %v13288_v21 = vpop.eup %13287  ;;  %9464 = vst [vmem:[%s16358_s6 + $0x40] sm:$0xff] %v9432_v3  ;;  %v9433_v17 = vmul.f32 %v13286_v14, %v9150_v1  ;;  %13297 = vpow2.f32 %v9326_v44  ;;  %v9188_v41 = vadd.f32 %v9187_v55, %v16329_v24  ;;  %v16413_v35 = vpop.f32.mrb[98].mxu1  ;;  %v9180_v1 = vadd.f32 %v16401_v54, %v16347_v42 }
 0xac2   : > { %v9372_v12 = vadd.f32 1.0, %v13288_v21  ;;  %v9191_v47 = vpop.f32.mrb[99].mxu1 }
 0xac3   : > { %v13290_v53 = vpop.eup %13289  ;;  %9465 = vst [vmem:[%s16358_s6 + $0x48] sm:$0xff] %v9433_v17  ;;  %v9280_v29 = vsub.f32 0.0, %v9188_v41  ;;  %v9192_v10 = vadd.f32 %v9191_v47, %v16329_v24 }
 0xac4   : > { %13299 = vrcp.f32 %v9372_v12  ;;  %v9373_v25 = vadd.f32 1.0, %v13290_v53 }
 0xac5   : > { %v9328_v7 = vmul.f32 1.442695, %v9280_v29  ;;  %v9281_v43 = vsub.f32 0.0, %v9192_v10 }
 0xac6   : > { %v13292_v32 = vpop.eup %13291  ;;  %13301 = vrcp.f32 %v9373_v25 }
 0xac7   : > { %v9434_v34 = vmul.f32 %v13292_v32, %v9156_v56  ;;  %13303 = vpow2.f32 %v9328_v7  ;;  %v9330_v9 = vmul.f32 1.442695, %v9281_v43  ;;  %v16421_v30 = vpop.f32.mrb[100].mxu1  ;;  %v9186_v56 = vadd.f32 %v16409_v45, %v16347_v42 }
 0xac8   : > { %v13294_v19 = vpop.eup %13293  ;;  %v9197_v23 = vpop.f32.mrb[101].mxu1 }
 0xac9   : > { %v13296_v57 = vpop.eup %13295  ;;  %9466 = vst [vmem:[%s16358_s6 + $0x50] sm:$0xff] %v9434_v34  ;;  %v9435_v60 = vmul.f32 %v13294_v19, %v9160_v6  ;;  %13305 = vpow2.f32 %v9330_v9  ;;  %v9198_v48 = vadd.f32 %v9197_v23, %v16329_v24  ;;  %v16425_v31 = vpop.f32.mrb[102].mxu1  ;;  %v9190_v6 = vadd.f32 %v16413_v35, %v16347_v42 }
 0xaca   : > { %v9374_v2 = vadd.f32 1.0, %v13296_v57  ;;  %v9201_v50 = vpop.f32.mrb[103].mxu1 }
 0xacb   : > { %v13298_v40 = vpop.eup %13297  ;;  %9467 = vst [vmem:[%s16358_s6 + $0x58] sm:$0xff] %v9435_v60  ;;  %v9282_v8 = vsub.f32 0.0, %v9198_v48  ;;  %v9202_v49 = vadd.f32 %v9201_v50, %v16329_v24 }
 0xacc   : > { %13307 = vrcp.f32 %v9374_v2  ;;  %v9375_v26 = vadd.f32 1.0, %v13298_v40 }
 0xacd   : > { %v9332_v59 = vmul.f32 1.442695, %v9282_v8  ;;  %v9283_v13 = vsub.f32 0.0, %v9202_v49 }
 0xace   : > { %v13300_v39 = vpop.eup %13299  ;;  %13309 = vrcp.f32 %v9375_v26 }
 0xacf   : > { %v9436_v62 = vmul.f32 %v13300_v39, %v9166_v16  ;;  %13311 = vpow2.f32 %v9332_v59  ;;  %v9334_v58 = vmul.f32 1.442695, %v9283_v13  ;;  %v16433_v28 = vpop.f32.mrb[104].mxu1  ;;  %v9196_v16 = vadd.f32 %v16421_v30, %v16347_v42 }
 0xad0   : > { %v13302_v38 = vpop.eup %13301  ;;  %v9207_v37 = vpop.f32.mrb[105].mxu1 }
 0xad1   : > { %v13304_v63 = vpop.eup %13303  ;;  %9468 = vst [vmem:[%s16358_s6 + $0x60] sm:$0xff] %v9436_v62  ;;  %v9437_v33 = vmul.f32 %v13302_v38, %v9170_v61  ;;  %13313 = vpow2.f32 %v9334_v58  ;;  %v9208_v11 = vadd.f32 %v9207_v37, %v16329_v24  ;;  %v16437_v27 = vpop.f32.mrb[106].mxu1  ;;  %v9200_v61 = vadd.f32 %v16425_v31, %v16347_v42 }
 0xad2   : > { %v9376_v46 = vadd.f32 1.0, %v13304_v63  ;;  %v9211_v52 = vpop.f32.mrb[107].mxu1 }
 0xad3   : > { %v13306_v18 = vpop.eup %13305  ;;  %9469 = vst [vmem:[%s16358_s6 + $0x68] sm:$0xff] %v9437_v33  ;;  %v9284_v4 = vsub.f32 0.0, %v9208_v11  ;;  %v9212_v0 = vadd.f32 %v9211_v52, %v16329_v24 }
 0xad4   : > { %13315 = vrcp.f32 %v9376_v46  ;;  %v9377_v5 = vadd.f32 1.0, %v13306_v18 }
 0xad5   : > { %v9336_v36 = vmul.f32 1.442695, %v9284_v4  ;;  %v9285_v51 = vsub.f32 0.0, %v9212_v0 }
 0xad6   : > { %v13308_v20 = vpop.eup %13307  ;;  %13317 = vrcp.f32 %v9377_v5 }
 0xad7   : > { %v9438_v3 = vmul.f32 %v13308_v20, %v9176_v15  ;;  %13319 = vpow2.f32 %v9336_v36  ;;  %v9338_v44 = vmul.f32 1.442695, %v9285_v51  ;;  %v16445_v14 = vpop.f32.mrb[108].mxu1  ;;  %v9206_v15 = vadd.f32 %v16433_v28, %v16347_v42 }
 0xad8   : > { %v13310_v55 = vpop.eup %13309  ;;  %v9217_v21 = vpop.f32.mrb[109].mxu1 }
 0xad9   : > { %v13312_v17 = vpop.eup %13311  ;;  %9470 = vst [vmem:[%s16358_s6 + $0x70] sm:$0xff] %v9438_v3  ;;  %v9439_v41 = vmul.f32 %v13310_v55, %v9180_v1  ;;  %13321 = vpow2.f32 %v9338_v44  ;;  %v9218_v22 = vadd.f32 %v9217_v21, %v16329_v24  ;;  %v16449_v12 = vpop.f32.mrb[110].mxu1  ;;  %v9210_v1 = vadd.f32 %v16437_v27, %v16347_v42 }
 0xada   : > { %v9378_v47 = vadd.f32 1.0, %v13312_v17  ;;  %v9221_v53 = vpop.f32.mrb[111].mxu1 }
 0xadb   : > { %v13314_v29 = vpop.eup %13313  ;;  %9471 = vst [vmem:[%s16358_s6 + $0x78] sm:$0xff] %v9439_v41  ;;  %v9286_v10 = vsub.f32 0.0, %v9218_v22  ;;  %v9222_v54 = vadd.f32 %v9221_v53, %v16329_v24 }
 0xadc   : > { %13323 = vrcp.f32 %v9378_v47  ;;  %v9379_v25 = vadd.f32 1.0, %v13314_v29 }
 0xadd   : > { %v9340_v7 = vmul.f32 1.442695, %v9286_v10  ;;  %v9287_v43 = vsub.f32 0.0, %v9222_v54 }
 0xade   : > { %v13316_v32 = vpop.eup %13315  ;;  %13325 = vrcp.f32 %v9379_v25 }
 0xadf   : > { %v9440_v34 = vmul.f32 %v13316_v32, %v9186_v56  ;;  %13327 = vpow2.f32 %v9340_v7  ;;  %v9342_v9 = vmul.f32 1.442695, %v9287_v43  ;;  %v16457_v19 = vpop.f32.mrb[112].mxu1  ;;  %v9216_v56 = vadd.f32 %v16445_v14, %v16347_v42 }
 0xae0   : > { %v13318_v23 = vpop.eup %13317  ;;  %v9227_v57 = vpop.f32.mrb[113].mxu1 }
 0xae1   : > { %v13320_v60 = vpop.eup %13319  ;;  %9472 = vst [vmem:[%s16358_s6 + $0x80] sm:$0xff] %v9440_v34  ;;  %v9441_v48 = vmul.f32 %v13318_v23, %v9190_v6  ;;  %13329 = vpow2.f32 %v9342_v9  ;;  %v9228_v45 = vadd.f32 %v9227_v57, %v16329_v24  ;;  %v16461_v2 = vpop.f32.mrb[114].mxu1  ;;  %v9220_v6 = vadd.f32 %v16449_v12, %v16347_v42 }
 0xae2   : > { %v9380_v50 = vadd.f32 1.0, %v13320_v60  ;;  %v9231_v40 = vpop.f32.mrb[115].mxu1 }
 0xae3   : > { %v13322_v8 = vpop.eup %13321  ;;  %9473 = vst [vmem:[%s16358_s6 + $0x88] sm:$0xff] %v9441_v48  ;;  %v9288_v49 = vsub.f32 0.0, %v9228_v45  ;;  %v9232_v35 = vadd.f32 %v9231_v40, %v16329_v24 }
 0xae4   : > { %13331 = vrcp.f32 %v9380_v50  ;;  %v9381_v26 = vadd.f32 1.0, %v13322_v8 }
 0xae5   : > { %v9344_v59 = vmul.f32 1.442695, %v9288_v49  ;;  %v9289_v13 = vsub.f32 0.0, %v9232_v35 }
 0xae6   : > { %v13324_v39 = vpop.eup %13323  ;;  %13333 = vrcp.f32 %v9381_v26 }
 0xae7   : > { %v9442_v62 = vmul.f32 %v13324_v39, %v9196_v16  ;;  %13335 = vpow2.f32 %v9344_v59  ;;  %v9346_v58 = vmul.f32 1.442695, %v9289_v13  ;;  %v16469_v38 = vpop.f32.mrb[116].mxu1  ;;  %v9226_v16 = vadd.f32 %v16457_v19, %v16347_v42 }
 0xae8   : > { %v13326_v37 = vpop.eup %13325  ;;  %v9237_v63 = vpop.f32.mrb[117].mxu1 }
 0xae9   : > { %v13328_v33 = vpop.eup %13327  ;;  %9474 = vst [vmem:[%s16358_s6 + $0x90] sm:$0xff] %v9442_v62  ;;  %v9443_v11 = vmul.f32 %v13326_v37, %v9200_v61  ;;  %13337 = vpow2.f32 %v9346_v58  ;;  %v9238_v30 = vadd.f32 %v9237_v63, %v16329_v24  ;;  %v16473_v46 = vpop.f32.mrb[118].mxu1  ;;  %v9230_v61 = vadd.f32 %v16461_v2, %v16347_v42 }
 0xaea   : > { %v9382_v52 = vadd.f32 1.0, %v13328_v33  ;;  %v9241_v18 = vpop.f32.mrb[119].mxu1 }
 0xaeb   : > { %v13330_v4 = vpop.eup %13329  ;;  %9475 = vst [vmem:[%s16358_s6 + $0x98] sm:$0xff] %v9443_v11  ;;  %v9290_v0 = vsub.f32 0.0, %v9238_v30  ;;  %v9242_v31 = vadd.f32 %v9241_v18, %v16329_v24  ;;  %v9236_v30 = vadd.f32 %v16469_v38, %v16347_v42  ;;  %v9240_v18 = vadd.f32 %v16473_v46, %v16347_v42 }
 0xaec   : > { %13339 = vrcp.f32 %v9382_v52  ;;  %v9383_v5 = vadd.f32 1.0, %v13330_v4 }
 0xaed   : > { %v9348_v36 = vmul.f32 1.442695, %v9290_v0  ;;  %v9291_v51 = vsub.f32 0.0, %v9242_v31 }
 0xaee   : > { %v13332_v20 = vpop.eup %13331  ;;  %13341 = vrcp.f32 %v9383_v5 }
 0xaef   : > { %v9444_v3 = vmul.f32 %v13332_v20, %v9206_v15  ;;  %13343 = vpow2.f32 %v9348_v36  ;;  %v9350_v44 = vmul.f32 1.442695, %v9291_v51  ;;  %v16481_v55 = vpop.f32.mrb[120].mxu1 }
 0xaf0   : > { %v13334_v21 = vpop.eup %13333  ;;  %v9247_v17 = vpop.f32.mrb[121].mxu1  ;;  %v9246_v38 = vadd.f32 %v16481_v55, %v16347_v42 }
 0xaf1   : > { %v13336_v41 = vpop.eup %13335  ;;  %9476 = vst [vmem:[%s16358_s6 + $0xa0] sm:$0xff] %v9444_v3  ;;  %v9445_v22 = vmul.f32 %v13334_v21, %v9210_v1  ;;  %13345 = vpow2.f32 %v9350_v44  ;;  %v9248_v28 = vadd.f32 %v9247_v17, %v16329_v24  ;;  %v16485_v47 = vpop.f32.mrb[122].mxu1 }
 0xaf2   : > { %v9384_v53 = vadd.f32 1.0, %v13336_v41  ;;  %v9251_v29 = vpop.f32.mrb[123].mxu1  ;;  %v9250_v46 = vadd.f32 %v16485_v47, %v16347_v42 }
 0xaf3   : > { %v13338_v10 = vpop.eup %13337  ;;  %9477 = vst [vmem:[%s16358_s6 + $0xa8] sm:$0xff] %v9445_v22  ;;  %v9292_v54 = vsub.f32 0.0, %v9248_v28  ;;  %v9252_v27 = vadd.f32 %v9251_v29, %v16329_v24 }
 0xaf4   : > { %13347 = vrcp.f32 %v9384_v53  ;;  %v9385_v25 = vadd.f32 1.0, %v13338_v10 }
 0xaf5   : > { %v9352_v7 = vmul.f32 1.442695, %v9292_v54  ;;  %v9293_v43 = vsub.f32 0.0, %v9252_v27 }
 0xaf6   : > { %v13340_v32 = vpop.eup %13339  ;;  %13349 = vrcp.f32 %v9385_v25 }
 0xaf7   : > { %v9446_v34 = vmul.f32 %v13340_v32, %v9216_v56  ;;  %13351 = vpow2.f32 %v9352_v7  ;;  %v9354_v9 = vmul.f32 1.442695, %v9293_v43  ;;  %v9255_v23 = vpop.f32.mrb[124].mxu1 }
 0xaf8   : > { %v13342_v57 = vpop.eup %13341  ;;  %v9257_v60 = vpop.f32.mrb[125].mxu1  ;;  %v9256_v44 = vadd.f32 %v9255_v23, %v16347_v42 }
 0xaf9   : > { %v13344_v48 = vpop.eup %13343  ;;  %9478 = vst [vmem:[%s16358_s6 + $0xb0] sm:$0xff] %v9446_v34  ;;  %v9447_v45 = vmul.f32 %v13342_v57, %v9220_v6  ;;  %13353 = vpow2.f32 %v9354_v9  ;;  %v9258_v14 = vadd.f32 %v9257_v60, %v16329_v24  ;;  %v9259_v50 = vpop.f32.mrb[126].mxu1 }
 0xafa   : > { %v9386_v40 = vadd.f32 1.0, %v13344_v48  ;;  %v9261_v8 = vpop.f32.mrb[127].mxu1  ;;  %v9260_v41 = vadd.f32 %v9259_v50, %v16347_v42 }
 0xafb   : > { %v13346_v49 = vpop.eup %13345  ;;  %9479 = vst [vmem:[%s16358_s6 + $0xb8] sm:$0xff] %v9447_v45  ;;  %v9294_v35 = vsub.f32 0.0, %v9258_v14  ;;  %v9262_v12 = vadd.f32 %v9261_v8, %v16329_v24 }
 0xafc   : > { %13355 = vrcp.f32 %v9386_v40  ;;  %v9387_v26 = vadd.f32 1.0, %v13346_v49 }
 0xafd   : > { %v9356_v59 = vmul.f32 1.442695, %v9294_v35  ;;  %v9295_v13 = vsub.f32 0.0, %v9262_v12 }
 0xafe   : > { %v13348_v39 = vpop.eup %13347  ;;  %13357 = vrcp.f32 %v9387_v26 }
 0xaff   : > { %v9448_v62 = vmul.f32 %v13348_v39, %v9226_v16  ;;  %13359 = vpow2.f32 %v9356_v59  ;;  %v9358_v58 = vmul.f32 1.442695, %v9295_v13 }
 0xb00   : > { %v13350_v37 = vpop.eup %13349 }
 0xb01   : > { %v13352_v63 = vpop.eup %13351  ;;  %9480 = vst [vmem:[%s16358_s6 + $0xc0] sm:$0xff] %v9448_v62  ;;  %v9449_v24 = vmul.f32 %v13350_v37, %v9230_v61  ;;  %13361 = vpow2.f32 %v9358_v58 }
 0xb02   : > { %v9388_v33 = vadd.f32 1.0, %v13352_v63 }
 0xb03   : > { %v13354_v19 = vpop.eup %13353  ;;  %9481 = vst [vmem:[%s16358_s6 + $0xc8] sm:$0xff] %v9449_v24 }
 0xb04   : > { %13363 = vrcp.f32 %v9388_v33  ;;  %v9389_v11 = vadd.f32 1.0, %v13354_v19 }
 0xb06   : > { %v13356_v52 = vpop.eup %13355  ;;  %13365 = vrcp.f32 %v9389_v11 }
 0xb07   : > { %v9450_v2 = vmul.f32 %v13356_v52, %v9236_v30 }
 0xb08   : > { %v13358_v4 = vpop.eup %13357 }
 0xb09   : > { %v13360_v0 = vpop.eup %13359  ;;  %9482 = vst [vmem:[%s16358_s6 + $0xd0] sm:$0xff] %v9450_v2  ;;  %v9451_v31 = vmul.f32 %v13358_v4, %v9240_v18 }
 0xb0a   : > { %v9390_v5 = vadd.f32 1.0, %v13360_v0 }
 0xb0b   : > { %v13362_v15 = vpop.eup %13361  ;;  %9483 = vst [vmem:[%s16358_s6 + $0xd8] sm:$0xff] %v9451_v31 }
 0xb0c   : > { %13367 = vrcp.f32 %v9390_v5  ;;  %v9391_v36 = vadd.f32 1.0, %v13362_v15 }
 0xb0e   : > { %v13364_v51 = vpop.eup %13363  ;;  %13369 = vrcp.f32 %v9391_v36 }
 0xb0f   : > { %v9452_v20 = vmul.f32 %v13364_v51, %v9246_v38 }
 0xb10   : > { %v13366_v3 = vpop.eup %13365 }
 0xb11   : > { %9484 = vst [vmem:[%s16358_s6 + $0xe0] sm:$0xff] %v9452_v20  ;;  %v9453_v1 = vmul.f32 %v13366_v3, %v9250_v46 }
 0xb13   : > { %9485 = vst [vmem:[%s16358_s6 + $0xe8] sm:$0xff] %v9453_v1 }
 0xb16   : > { %v13368_v21 = vpop.eup %13367 }
 0xb17   : > { %v9454_v17 = vmul.f32 %v13368_v21, %v9256_v44 }
 0xb18   : > { %v13370_v22 = vpop.eup %13369 }
 0xb19   : > { %9486 = vst [vmem:[%s16358_s6 + $0xf0] sm:$0xff] %v9454_v17  ;;  %v9455_v55 = vmul.f32 %v13370_v22, %v9260_v41 }
 0xb1b   : > { %9487 = vst [vmem:[%s16358_s6 + $0xf8] sm:$0xff] %v9455_v55 }
 0xb1c PF: > { %s15_s18 = sadd.s32 1, %s13381_s18  }
 0xb1d   : > { %p12_p4 = scmp.ge.s32.totalorder %s15_s18, 4  }
 0xb1f   :  { %14 = sbr.rel (!%p12_p4) target bundleno = 1 (0x1), region = 100 }

</bundles_post_ra>
